<compile_context>
chip_gen: v7x
topology: tpu7x:2x2x1
jax: 0.10.0
libtpu: 0.0.40
codegen_flags: <defaults>
</compile_context>

<pallas_src>
import functools

import jax
import jax.numpy as jnp
from jax.experimental import pallas as pl
from jax.experimental.pallas import tpu as pltpu


def _make_sws_kernel(num_mlp_layers, use_bf16_dots):
    """Fused kernel body: per-row MLP gate + gated partial sum over a seq tile."""

    def kernel(x_ref, *refs):
        # refs = (w0, b0, w1, b1, ..., w_head, b_head, o_ref, acc_ref)
        acc_ref = refs[-1]
        o_ref = refs[-2]
        p_refs = refs[:-2]

        s = pl.program_id(1)

        @pl.when(s == 0)
        def _():
            acc_ref[...] = jnp.zeros_like(acc_ref)

        x3 = x_ref[...]                           # (TB, TS, D) f32
        tb, ts, d = x3.shape
        x2d = x3.reshape(tb * ts, d)              # leading-dim collapse (free when TS%8==0)

        # ---- MLP stack (Linear + ReLU); activations stay in vregs/VMEM ----
        h = x2d
        for l in range(num_mlp_layers):
            w = p_refs[2 * l][...]                # (K, N), bf16 if use_bf16_dots
            b = p_refs[2 * l + 1][...]            # (1, N), f32
            lhs = h.astype(jnp.bfloat16) if use_bf16_dots else h
            acc = jnp.dot(lhs, w, preferred_element_type=jnp.float32)
            h = jnp.maximum(acc + b, 0.0)         # bias/ReLU in f32

        # ---- head: Linear(last_dim, 1) + sigmoid, via lane reduction ----
        w_head = p_refs[-2][...]                  # (1, last_dim) f32
        b_head = p_refs[-1][...]                  # (1, 1) f32
        logits = jnp.sum(h * w_head, axis=-1, keepdims=True) + b_head   # (rows, 1)
        # gate is lane-sparse (rows, 1); explicit sigmoid is negligible cost here.
        gate = 1.0 / (1.0 + jnp.exp(-logits))

        # ---- gated partial sum over this sequence tile ----
        weighted = gate * x2d                                          # (rows, D) f32
        acc_ref[...] += weighted.reshape(tb, ts, d).sum(axis=1)        # (TB, D)

        @pl.when(s == pl.num_programs(1) - 1)
        def _():
            o_ref[...] = acc_ref[...].astype(o_ref.dtype)

    return kernel


def _prefer_multi_core():
    """True on chips with >1 TensorCore (v7x): keep grid>=2 so the 'parallel'
    batch axis actually shards work across both cores."""
    try:
        kind = jax.devices()[0].device_kind.lower()
    except Exception:
        return False
    return "v7" in kind


def _pick_tiles(batch, seq, emb_dim, *, prefer_multi_core,
                x_block_budget_bytes=6 * 1024 * 1024):
    """Pick (batch_block, seq_block).

    Keeps the per-step x block <= ~6 MiB (=> double-buffered x ~12 MiB, total
    footprint well under the explicit 32 MiB vmem limit), keeps the output
    block (TB, D) (8,128)-legal, and on multi-TC chips keeps the parallel grid
    axis >= 2 when possible.
    """
    bytes_per_row = emb_dim * 4
    max_rows = max(8, x_block_budget_bytes // bytes_per_row)   # ~2048 for D=768

    bmin = 8 if (batch % 8 == 0 and batch >= 8) else batch

    # --- sequence tile: whole S if it fits, else largest mult-of-8 divisor ---
    if bmin * seq <= max_rows:
        ts = seq
    else:
        ts = 0
        for cand in range(seq, 0, -1):
            if seq % cand == 0 and cand % 8 == 0 and bmin * cand <= max_rows:
                ts = cand
                break
        if ts == 0:
            ts = seq   # no legal divisor; fall back to full sequence

    # --- batch tile: largest legal divisor fitting the row budget ---
    if batch % 8 != 0 or batch < 8:
        legal_tb = [batch]
    else:
        legal_tb = sorted({d for d in range(8, batch + 1, 8) if batch % d == 0}
                          | {batch})
    fitting = [t for t in legal_tb if t * ts <= max_rows]
    tb = max(fitting) if fitting else min(legal_tb)

    # --- v7x: never collapse to a single grid step if we can split the batch ---
    if prefer_multi_core and (batch // tb) * (seq // ts) < 2:
        smaller = [t for t in legal_tb if t < tb]
        if smaller:
            tb = max(smaller)

    return tb, ts


@functools.partial(jax.jit,
                   static_argnames=("batch_block", "seq_block", "use_bf16_dots"))
def self_weighted_summation_forward(x, params, *, batch_block=None, seq_block=None,
                                    use_bf16_dots=True):
    """Pallas forward of SelfWeightedSummation.

    x:      (B, S, D) float32
    params: {"mlp": [(W_i (in,out) pre-transposed, b_i (out,)), ...],
             "head": (w (1, last_out), b (1,))}
    returns (B, D): sum_s sigmoid(head(mlp(x[:, s, :]))) * x[:, s, :]
    """
    B, S, D = x.shape
    mlp_params = params["mlp"]
    w_head, b_head = params["head"]
    last_dim = mlp_params[-1][0].shape[1]

    if batch_block is None or seq_block is None:
        tb, ts = _pick_tiles(B, S, D, prefer_multi_core=_prefer_multi_core())
        batch_block = batch_block if batch_block is not None else tb
        seq_block = seq_block if seq_block is not None else ts
    assert B % batch_block == 0 and S % seq_block == 0
    assert batch_block == B or batch_block % 8 == 0, "output block must be (8,.)-legal"
    grid = (B // batch_block, S // seq_block)

    w_dtype = jnp.bfloat16 if use_bf16_dots else x.dtype

    inputs = [x]
    in_specs = [pl.BlockSpec((batch_block, seq_block, D), lambda i, s: (i, s, 0))]
    for w, b in mlp_params:
        inputs.append(w.astype(w_dtype))
        in_specs.append(pl.BlockSpec(w.shape, lambda i, s: (0, 0)))
        inputs.append(b.reshape(1, -1).astype(jnp.float32))
        in_specs.append(pl.BlockSpec((1, b.shape[-1]), lambda i, s: (0, 0)))
    inputs.append(w_head.reshape(1, last_dim).astype(jnp.float32))
    in_specs.append(pl.BlockSpec((1, last_dim), lambda i, s: (0, 0)))
    inputs.append(b_head.reshape(1, 1).astype(jnp.float32))
    in_specs.append(pl.BlockSpec((1, 1), lambda i, s: (0, 0)))

    kernel = _make_sws_kernel(len(mlp_params), use_bf16_dots)

    return pl.pallas_call(
        kernel,
        out_shape=jax.ShapeDtypeStruct((B, D), x.dtype),
        grid_spec=pltpu.PrefetchScalarGridSpec(
            num_scalar_prefetch=0,
            grid=grid,
            in_specs=in_specs,
            out_specs=pl.BlockSpec((batch_block, D), lambda i, s: (i, 0)),
            scratch_shapes=[pltpu.VMEM((batch_block, D), jnp.float32)]),
        compiler_params=pltpu.CompilerParams(
            # batch axis parallel (megacore on v7x); seq axis is the reduction.
            dimension_semantics=("parallel", "arbitrary"),
            # v5e scoped-VMEM default is 16 MiB; request 32 MiB explicitly
            # (safe on v5e/v6e/v7x, and the tile picker stays well under it).
            vmem_limit_bytes=32 * 1024 * 1024),
    )(*inputs)


def init_params(key, input_dim=768, mlp_structure=(128, 64, 32), dtype=jnp.float32):
    """torch.nn.Linear default init: U(-1/sqrt(fan_in), 1/sqrt(fan_in)).
    MLP weights are stored pre-transposed as (in_features, out_features)."""
    mlp = []
    dims = [input_dim] + list(mlp_structure)
    for in_f, out_f in zip(dims[:-1], dims[1:]):
        key, kw, kb = jax.random.split(key, 3)
        bound = 1.0 / (in_f ** 0.5)
        w = jax.random.uniform(kw, (in_f, out_f), dtype, -bound, bound)
        b = jax.random.uniform(kb, (out_f,), dtype, -bound, bound)
        mlp.append((w, b))
    key, kw, kb = jax.random.split(key, 3)
    bound = 1.0 / (mlp_structure[-1] ** 0.5)
    w_head = jax.random.uniform(kw, (1, mlp_structure[-1]), dtype, -bound, bound)
    b_head = jax.random.uniform(kb, (1,), dtype, -bound, bound)
    return {"mlp": mlp, "head": (w_head, b_head)}


def self_weighted_summation_reference(x, params):
    """Pure-JAX reference mirroring the PyTorch forward."""
    B, S, D = x.shape
    h = x.reshape(B * S, D)
    for w, b in params["mlp"]:
        h = jnp.maximum(
            jnp.dot(h, w, precision=jax.lax.Precision.HIGHEST) + b[None, :], 0.0)
    w_head, b_head = params["head"]
    logits = (jnp.dot(h, w_head.reshape(-1, 1),
                      precision=jax.lax.Precision.HIGHEST) + b_head.reshape(1, 1))
    gate = 1.0 / (1.0 + jnp.exp(-logits))
    weighted = gate * x.reshape(B * S, D)
    return weighted.reshape(B, S, D).sum(axis=1)


if __name__ == "__main__":
    key = jax.random.PRNGKey(0)
    batch, seq_len, emb_dim = 16, 8, 768          # module defaults for D / MLP
    mlp_structure = [128, 64, 32]

    kx, kp = jax.random.split(key)
    x = jax.random.normal(kx, (batch, seq_len, emb_dim), jnp.float32)
    params = init_params(kp, emb_dim, mlp_structure)

    ref = self_weighted_summation_reference(x, params)

    # f32-operand MXU path: tight tolerance vs. the HIGHEST-precision reference.
    out_f32 = jax.block_until_ready(
        self_weighted_summation_forward(x, params, use_bf16_dots=False))
    assert out_f32.shape == (batch, emb_dim), out_f32.shape
    err_f32 = float(jnp.max(jnp.abs(out_f32 - ref)))
    assert jnp.allclose(out_f32, ref, atol=1e-3, rtol=1e-3), \
        f"f32 path mismatch, max_err={err_f32}"

    # bf16-operand MXU path (default; MXU-native on v6e/v7x). bf16 operands with
    # f32 accumulation -> documented looser tolerance vs. the f32 reference.
    out_bf16 = jax.block_until_ready(
        self_weighted_summation_forward(x, params, use_bf16_dots=True))
    assert out_bf16.shape == (batch, emb_dim), out_bf16.shape
    err_bf16 = float(jnp.max(jnp.abs(out_bf16 - ref)))
    assert jnp.allclose(out_bf16, ref, atol=5e-2, rtol=5e-2), \
        f"bf16 path mismatch, max_err={err_bf16}"

    print("KERNEL_OK")
</pallas_src>

<mosaic_0001>
module attributes {stable_mosaic.version = 11 : i64} {
  func.func @kernel(%arg0: i32, %arg1: i32, %arg2: memref<16x8x768xf32, #tpu.memory_space<vmem>>, %arg3: memref<768x128xf32, #tpu.memory_space<vmem>>, %arg4: memref<1x128xf32, #tpu.memory_space<vmem>>, %arg5: memref<128x64xf32, #tpu.memory_space<vmem>>, %arg6: memref<1x64xf32, #tpu.memory_space<vmem>>, %arg7: memref<64x32xf32, #tpu.memory_space<vmem>>, %arg8: memref<1x32xf32, #tpu.memory_space<vmem>>, %arg9: memref<1x32xf32, #tpu.memory_space<vmem>>, %arg10: memref<1x1xf32, #tpu.memory_space<vmem>>, %arg11: memref<16x768xf32, #tpu.memory_space<vmem>>, %arg12: memref<16x768xf32, #tpu.memory_space<vmem>>) attributes {dimension_semantics = [#tpu.dimension_semantics<parallel>, #tpu.dimension_semantics<arbitrary>], iteration_bounds = array<i64: 1, 1>, scalar_prefetch = 0 : i64, scratch_operands = 1 : i64, tpu.core_type = #tpu.core_type<tc>, window_params = [{transform_indices = @transform_0, window_bounds = array<i64: 16, 8, 768>}, {pipeline_mode = #tpu.pipeline_mode<synchronous>, transform_indices = @transform_1, window_bounds = array<i64: 768, 128>}, {pipeline_mode = #tpu.pipeline_mode<synchronous>, transform_indices = @transform_2, window_bounds = array<i64: 1, 128>}, {pipeline_mode = #tpu.pipeline_mode<synchronous>, transform_indices = @transform_3, window_bounds = array<i64: 128, 64>}, {pipeline_mode = #tpu.pipeline_mode<synchronous>, transform_indices = @transform_4, window_bounds = array<i64: 1, 64>}, {pipeline_mode = #tpu.pipeline_mode<synchronous>, transform_indices = @transform_5, window_bounds = array<i64: 64, 32>}, {pipeline_mode = #tpu.pipeline_mode<synchronous>, transform_indices = @transform_6, window_bounds = array<i64: 1, 32>}, {pipeline_mode = #tpu.pipeline_mode<synchronous>, transform_indices = @transform_7, window_bounds = array<i64: 1, 32>}, {pipeline_mode = #tpu.pipeline_mode<synchronous>, transform_indices = @transform_8, window_bounds = array<i64: 1, 1>}, {transform_indices = @transform_9, window_bounds = array<i64: 16, 768>}]} {
    %c0_i32 = arith.constant 0 : i32
    %0 = arith.cmpi eq, %arg1, %c0_i32 : i32
    %1 = arith.extui %0 : i1 to i32
    %c0_i32_0 = arith.constant 0 : i32
    %2 = arith.cmpi ne, %1, %c0_i32_0 : i32
    scf.if %2 {
      %cst_35 = arith.constant 0.000000e+00 : f32
      %51 = vector.broadcast %cst_35 : f32 to vector<16x768xf32>
      %c0_36 = arith.constant 0 : index
      %c0_37 = arith.constant 0 : index
      %52 = vector.load %arg12[%c0_36, %c0_37] : memref<16x768xf32, #tpu.memory_space<vmem>>, vector<16x768xf32>
      tpu.vector_store %arg12[%c0_36, %c0_37], %51 {strides = array<i32>} : memref<16x768xf32, #tpu.memory_space<vmem>>, vector<16x768xf32>,
    } else {
    }
    %c0 = arith.constant 0 : index
    %c0_1 = arith.constant 0 : index
    %c0_2 = arith.constant 0 : index
    %3 = vector.load %arg2[%c0, %c0_1, %c0_2] : memref<16x8x768xf32, #tpu.memory_space<vmem>>, vector<16x8x768xf32>
    %4 = vector.shape_cast %3 : vector<16x8x768xf32> to vector<128x768xf32>
    %c0_3 = arith.constant 0 : index
    %c0_4 = arith.constant 0 : index
    %5 = vector.load %arg3[%c0_3, %c0_4] : memref<768x128xf32, #tpu.memory_space<vmem>>, vector<768x128xf32>
    %c0_5 = arith.constant 0 : index
    %c0_6 = arith.constant 0 : index
    %6 = vector.load %arg4[%c0_5, %c0_6] : memref<1x128xf32, #tpu.memory_space<vmem>>, vector<1x128xf32>
    %cst = arith.constant dense<0.000000e+00> : vector<128x128xf32>
    %7 = tpu.matmul %4, %5, %cst {dimension_numbers = #tpu.dot_dimension_numbers<[1], [0], [0], [1], [0, 0, 1, 1], [], []>} : vector<128x768xf32>, vector<768x128xf32>, vector<128x128xf32> -> vector<128x128xf32>
    %8 = vector.broadcast %6 : vector<1x128xf32> to vector<128x128xf32>
    %9 = arith.addf %7, %8 : vector<128x128xf32>
    %cst_7 = arith.constant 0.000000e+00 : f32
    %10 = vector.broadcast %cst_7 : f32 to vector<128x128xf32>
    %11 = arith.maximumf %9, %10 : vector<128x128xf32>
    %c0_8 = arith.constant 0 : index
    %c0_9 = arith.constant 0 : index
    %12 = vector.load %arg5[%c0_8, %c0_9] : memref<128x64xf32, #tpu.memory_space<vmem>>, vector<128x64xf32>
    %c0_10 = arith.constant 0 : index
    %c0_11 = arith.constant 0 : index
    %13 = vector.load %arg6[%c0_10, %c0_11] : memref<1x64xf32, #tpu.memory_space<vmem>>, vector<1x64xf32>
    %cst_12 = arith.constant dense<0.000000e+00> : vector<128x64xf32>
    %14 = tpu.matmul %11, %12, %cst_12 {dimension_numbers = #tpu.dot_dimension_numbers<[1], [0], [0], [1], [0, 0, 1, 1], [], []>} : vector<128x128xf32>, vector<128x64xf32>, vector<128x64xf32> -> vector<128x64xf32>
    %15 = vector.broadcast %13 : vector<1x64xf32> to vector<128x64xf32>
    %16 = arith.addf %14, %15 : vector<128x64xf32>
    %cst_13 = arith.constant 0.000000e+00 : f32
    %17 = vector.broadcast %cst_13 : f32 to vector<128x64xf32>
    %18 = arith.maximumf %16, %17 : vector<128x64xf32>
    %c0_14 = arith.constant 0 : index
    %c0_15 = arith.constant 0 : index
    %19 = vector.load %arg7[%c0_14, %c0_15] : memref<64x32xf32, #tpu.memory_space<vmem>>, vector<64x32xf32>
    %c0_16 = arith.constant 0 : index
    %c0_17 = arith.constant 0 : index
    %20 = vector.load %arg8[%c0_16, %c0_17] : memref<1x32xf32, #tpu.memory_space<vmem>>, vector<1x32xf32>
    %cst_18 = arith.constant dense<0.000000e+00> : vector<128x32xf32>
    %21 = tpu.matmul %18, %19, %cst_18 {dimension_numbers = #tpu.dot_dimension_numbers<[1], [0], [0], [1], [0, 0, 1, 1], [], []>} : vector<128x64xf32>, vector<64x32xf32>, vector<128x32xf32> -> vector<128x32xf32>
    %22 = vector.broadcast %20 : vector<1x32xf32> to vector<128x32xf32>
    %23 = arith.addf %21, %22 : vector<128x32xf32>
    %cst_19 = arith.constant 0.000000e+00 : f32
    %24 = vector.broadcast %cst_19 : f32 to vector<128x32xf32>
    %25 = arith.maximumf %23, %24 : vector<128x32xf32>
    %c0_20 = arith.constant 0 : index
    %c0_21 = arith.constant 0 : index
    %26 = vector.load %arg9[%c0_20, %c0_21] : memref<1x32xf32, #tpu.memory_space<vmem>>, vector<1x32xf32>
    %c0_22 = arith.constant 0 : index
    %c0_23 = arith.constant 0 : index
    %27 = vector.load %arg10[%c0_22, %c0_23] : memref<1x1xf32, #tpu.memory_space<vmem>>, vector<1x1xf32>
    %28 = vector.broadcast %26 : vector<1x32xf32> to vector<128x32xf32>
    %29 = arith.mulf %25, %28 : vector<128x32xf32>
    %cst_24 = arith.constant dense<0.000000e+00> : vector<128xf32>
    %30 = vector.multi_reduction <add>, %29, %cst_24 [1] : vector<128x32xf32> to vector<128xf32>
    %31 = vector.shape_cast %30 : vector<128xf32> to vector<128x1xf32>
    %32 = vector.broadcast %27 : vector<1x1xf32> to vector<128x1xf32>
    %33 = arith.addf %31, %32 : vector<128x1xf32>
    %cst_25 = arith.constant 0.000000e+00 : f32
    %34 = vector.broadcast %cst_25 : f32 to vector<128x1xf32>
    %35 = arith.subf %34, %33 : vector<128x1xf32>
    %36 = math.exp %35 : vector<128x1xf32>
    %cst_26 = arith.constant 1.000000e+00 : f32
    %37 = vector.broadcast %cst_26 : f32 to vector<128x1xf32>
    %38 = arith.addf %37, %36 : vector<128x1xf32>
    %cst_27 = arith.constant 1.000000e+00 : f32
    %39 = vector.broadcast %cst_27 : f32 to vector<128x1xf32>
    %40 = arith.divf %39, %38 : vector<128x1xf32>
    %41 = vector.broadcast %40 : vector<128x1xf32> to vector<128x768xf32>
    %42 = arith.mulf %41, %4 : vector<128x768xf32>
    %c0_28 = arith.constant 0 : index
    %c0_29 = arith.constant 0 : index
    %43 = vector.load %arg12[%c0_28, %c0_29] : memref<16x768xf32, #tpu.memory_space<vmem>>, vector<16x768xf32>
    %44 = vector.shape_cast %42 : vector<128x768xf32> to vector<16x8x768xf32>
    %cst_30 = arith.constant dense<0.000000e+00> : vector<16x768xf32>
    %45 = vector.multi_reduction <add>, %44, %cst_30 [1] : vector<16x8x768xf32> to vector<16x768xf32>
    %46 = arith.addf %43, %45 : vector<16x768xf32>
    %c0_31 = arith.constant 0 : index
    %c0_32 = arith.constant 0 : index
    %47 = vector.load %arg12[%c0_31, %c0_32] : memref<16x768xf32, #tpu.memory_space<vmem>>, vector<16x768xf32>
    tpu.vector_store %arg12[%c0_31, %c0_32], %46 {strides = array<i32>} : memref<16x768xf32, #tpu.memory_space<vmem>>, vector<16x768xf32>,
    %c0_i32_33 = arith.constant 0 : i32
    %48 = arith.cmpi eq, %arg1, %c0_i32_33 : i32
    %49 = arith.extui %48 : i1 to i32
    %c0_i32_34 = arith.constant 0 : i32
    %50 = arith.cmpi ne, %49, %c0_i32_34 : i32
    scf.if %50 {
      %c0_35 = arith.constant 0 : index
      %c0_36 = arith.constant 0 : index
      %51 = vector.load %arg12[%c0_35, %c0_36] : memref<16x768xf32, #tpu.memory_space<vmem>>, vector<16x768xf32>
      %c0_37 = arith.constant 0 : index
      %c0_38 = arith.constant 0 : index
      %52 = vector.load %arg11[%c0_37, %c0_38] : memref<16x768xf32, #tpu.memory_space<vmem>>, vector<16x768xf32>
      tpu.vector_store %arg11[%c0_37, %c0_38], %51 {strides = array<i32>} : memref<16x768xf32, #tpu.memory_space<vmem>>, vector<16x768xf32>,
    } else {
    }
    return
  }
  func.func @transform_0(%arg0: i32, %arg1: i32) -> (i32, i32, i32) {
    %c0_i32 = arith.constant 0 : i32
    %c0_i32_0 = arith.constant 0 : i32
    return %arg0, %arg1, %c0_i32 : i32, i32, i32
  }
  func.func @transform_1(%arg0: i32, %arg1: i32) -> (i32, i32) {
    %c0_i32 = arith.constant 0 : i32
    %c0_i32_0 = arith.constant 0 : i32
    %c0_i32_1 = arith.constant 0 : i32
    return %c0_i32, %c0_i32_0 : i32, i32
  }
  func.func @transform_2(%arg0: i32, %arg1: i32) -> (i32, i32) {
    %c0_i32 = arith.constant 0 : i32
    %c0_i32_0 = arith.constant 0 : i32
    %c0_i32_1 = arith.constant 0 : i32
    return %c0_i32, %c0_i32_0 : i32, i32
  }
  func.func @transform_3(%arg0: i32, %arg1: i32) -> (i32, i32) {
    %c0_i32 = arith.constant 0 : i32
    %c0_i32_0 = arith.constant 0 : i32
    %c0_i32_1 = arith.constant 0 : i32
    return %c0_i32, %c0_i32_0 : i32, i32
  }
  func.func @transform_4(%arg0: i32, %arg1: i32) -> (i32, i32) {
    %c0_i32 = arith.constant 0 : i32
    %c0_i32_0 = arith.constant 0 : i32
    %c0_i32_1 = arith.constant 0 : i32
    return %c0_i32, %c0_i32_0 : i32, i32
  }
  func.func @transform_5(%arg0: i32, %arg1: i32) -> (i32, i32) {
    %c0_i32 = arith.constant 0 : i32
    %c0_i32_0 = arith.constant 0 : i32
    %c0_i32_1 = arith.constant 0 : i32
    return %c0_i32, %c0_i32_0 : i32, i32
  }
  func.func @transform_6(%arg0: i32, %arg1: i32) -> (i32, i32) {
    %c0_i32 = arith.constant 0 : i32
    %c0_i32_0 = arith.constant 0 : i32
    %c0_i32_1 = arith.constant 0 : i32
    return %c0_i32, %c0_i32_0 : i32, i32
  }
  func.func @transform_7(%arg0: i32, %arg1: i32) -> (i32, i32) {
    %c0_i32 = arith.constant 0 : i32
    %c0_i32_0 = arith.constant 0 : i32
    %c0_i32_1 = arith.constant 0 : i32
    return %c0_i32, %c0_i32_0 : i32, i32
  }
  func.func @transform_8(%arg0: i32, %arg1: i32) -> (i32, i32) {
    %c0_i32 = arith.constant 0 : i32
    %c0_i32_0 = arith.constant 0 : i32
    %c0_i32_1 = arith.constant 0 : i32
    return %c0_i32, %c0_i32_0 : i32, i32
  }
  func.func @transform_9(%arg0: i32, %arg1: i32) -> (i32, i32) {
    %c0_i32 = arith.constant 0 : i32
    %c0_i32_0 = arith.constant 0 : i32
    return %arg0, %c0_i32 : i32, i32
  }
}

</mosaic_0001>

<bundles_post_ra>
// kernel: self_weighted_summation_forward.1
= control target key start
LH: loop header
LB: loop body
LE: loop exit
PB: predicated region body
PF: predicated region fallthrough
CT: control target
= control target key end

     0   :  { %s3796_s0 = inlined_call_operand.hbm [shape: f32[16,8,768], index: 0, kind: input, shape index: {}]   ;;  %s3797_s1 = inlined_call_operand.hbm [shape: f32[768,128], index: 1, kind: input, shape index: {}]   ;;  %s3798_s2 = inlined_call_operand.vmem [shape: f32[1,128], index: 2, kind: input, shape index: {}]   ;;  %s3799_s3 = inlined_call_operand.vmem [shape: f32[128,64], index: 3, kind: input, shape index: {}]   ;;  %s3800_s4 = inlined_call_operand.vmem [shape: f32[1,64], index: 4, kind: input, shape index: {}]   ;;  %s3801_s5 = inlined_call_operand.vmem [shape: f32[64,32], index: 5, kind: input, shape index: {}]   ;;  %s3802_s6 = inlined_call_operand.vmem [shape: f32[1,32], index: 6, kind: input, shape index: {}]   ;;  %s3803_s7 = inlined_call_operand.vmem [shape: f32[1,32], index: 7, kind: input, shape index: {}]   ;;  %s3804_s8 = inlined_call_operand.<no memory space> [shape: f32[1,1], index: 8, kind: input, shape index: {}]   ;;  %s3805_s9 = inlined_call_operand.hbm [shape: f32[16,768], index: 9, kind: output, shape index: {}]  }
   0x1   :  { %v14_v0 = vstv %s3804_s8 }
   0x2   :  { %15 = vst [vmem:[#allocation3] sm:$0x1] %v14_v0 }
   0x3   :  { %16 = vsyncpa [#allocation5], 0 }
   0x4   :  { %17 = vsyncpa [#allocation8], 0 }
   0x5   :  { %18 = vsyncpa [#allocation6], 0  ;;  %s3160_s11 = smov [#allocation4]   ;;  %s3088_s15 = scalar_lea.hbm %s3796_s0, 12288 }
   0x6   :  { %s24_s12 = sshll.u32 %s3160_s11, 4  ;;  %p3089_p0 = scmp.ne.s32.totalorder %s3796_s0, %s3088_s15  ;;  %s25_s12 = int_to_ptr.vmem [resolvable:$true] %s24_s12 }
   0x7   :  { %p3092_p1 = scmp.lt.u32.totalorder %s3088_s15, %s3796_s0 }
   0x9   :  { %p3094_p2 = pnand %p3092_p1, %p3089_p0 }
   0xb   :  { %3097 = shalt.err (!%p3094_p2)
}
   0xc   :  { %s3098_s8 = scalar_lea.vmem %s25_s12, 12288  ;;  %p3103_p4 = scmp.lt.s32.totalorder %s25_s12, %s25_s12 }
   0xd   :  { %p3099_p3 = scmp.ne.s32.totalorder %s25_s12, %s3098_s8  ;;  %p3104_p5 = scmp.lt.s32.totalorder %s3098_s8, %s3098_s8 }
   0xf   :  { %p3105_p6 = por %p3104_p5, %p3103_p4 }
  0x11   :  { %p3106_p7 = pnand %p3105_p6, %p3099_p3 }
  0x13   :  { %3109 = shalt.err (!%p3106_p7)
}
  0x14   :  { %s3161_s20 = smov 768   ;;  %s3162_s21 = smov 48  }
  0x15   :  { %30 = dma.hbm_to_vmem [thread:$0]  %s3796_s0, 12288, %s25_s12, [#allocation5], %s3161_s20, %s3161_s20, %s3162_s21  }
  0x16   :  { %s3163_s24 = smov [#allocation7]   ;;  %s3110_s28 = scalar_lea.hbm %s3797_s1, 12288 }
  0x17   :  { %s36_s25 = sshll.u32 %s3163_s24, 4  ;;  %p3111_p8 = scmp.ne.s32.totalorder %s3797_s1, %s3110_s28  ;;  %s37_s25 = int_to_ptr.vmem [resolvable:$true] %s36_s25 }
  0x18   :  { %p3114_p9 = scmp.lt.u32.totalorder %s3110_s28, %s3797_s1 }
  0x1a   :  { %p3116_p10 = pnand %p3114_p9, %p3111_p8 }
  0x1c   :  { %3119 = shalt.err (!%p3116_p10)
}
  0x1d   :  { %s3120_s13 = scalar_lea.vmem %s37_s25, 12288  ;;  %p3125_p12 = scmp.lt.s32.totalorder %s37_s25, %s37_s25 }
  0x1e   :  { %p3121_p11 = scmp.ne.s32.totalorder %s37_s25, %s3120_s13  ;;  %p3126_p13 = scmp.lt.s32.totalorder %s3120_s13, %s3120_s13 }
  0x20   :  { %p3127_p0 = por %p3126_p13, %p3125_p12 }
  0x22   :  { %p3128_p1 = pnand %p3127_p0, %p3121_p11 }
  0x24   :  { %3131 = shalt.err (!%p3128_p1)
}
  0x25   :  { %s3164_s0 = smov 128   ;;  %s3165_s12 = smov 8  }
  0x26   :  { %42 = dma.hbm_to_vmem [thread:$0]  %s3797_s1, 12288, %s37_s25, [#allocation8], %s3164_s0, %s3164_s0, %s3165_s12  }
  0x27   :  { %3154 = dma.done.wait [#allocation5], 12288  }
  0x28   :  { %3155 = vsyncadd [#allocation5], 4294955008 }
  0x29   :  { %3156 = dma.done.wait [#allocation8], 12288  }
  0x2a   :  { %3157 = vsyncadd [#allocation8], 4294955008  ;;  %v191_v1 = vld [vmem:[#allocation7 + $0x80] sm:$0xff]  ;;  %v192_v2 = vld [vmem:[#allocation7 + $0x88] sm:$0xff]  ;;  %vm928_vm0 = vcmask 523264   ;;  %vm1162_vm1 = vcmask 261120  }
  0x2b   :  { %v175_v3 = vld [vmem:[#allocation7] sm:$0xff]  ;;  %v2774_v4 = vpack.c.bf16 %v192_v2, %v191_v1  ;;  %v176_v5 = vld [vmem:[#allocation7 + $0x8] sm:$0xff]  ;;  %v193_v12 = vld [vmem:[#allocation7 + $0x90] sm:$0xff]  ;;  %vm2189_vm2 = vcmask 1041409   ;;  %vm2191_vm3 = vcmask 1042434   ;;  %vm2193_vm4 = vcmask 1043459  }
  0x2c   :  { %v223_v6 = vld [vmem:[#allocation7 + $0x180] sm:$0xff]  ;;  %v224_v7 = vld [vmem:[#allocation7 + $0x188] sm:$0xff]  ;;  %v2776_v8 = vpack.c.bf16 %v176_v5, %v175_v3  ;;  %v194_v14 = vld [vmem:[#allocation7 + $0x98] sm:$0xff]  ;;  %vm2195_vm5 = vcmask 1044484   ;;  %vm2197_vm6 = vcmask 1045509   ;;  %vm2199_vm7 = vcmask 1046534  }
  0x2d   :  { %v2806_v9 = vpack.c.bf16 %v224_v7, %v223_v6  ;;  %v207_v10 = vld [vmem:[#allocation7 + $0x100] sm:$0xff]  ;;  %v208_v11 = vld [vmem:[#allocation7 + $0x108] sm:$0xff]  ;;  %2775 = vmatprep.subr.bf16.mxu0 %v2774_v4  ;;  %v177_v15 = vld [vmem:[#allocation7 + $0x10] sm:$0xff]  ;;  %v2778_v17 = vpack.c.bf16 %v194_v14, %v193_v12  ;;  %vm2201_vm8 = vcmask 1047559  }
  0x2e   :  { %v2808_v13 = vpack.c.bf16 %v208_v11, %v207_v10  ;;  %v178_v16 = vld [vmem:[#allocation7 + $0x18] sm:$0xff]  ;;  %2777 = vmatpush3.bf16.msra.mxu0 %v2776_v8  ;;  %v225_v19 = vld [vmem:[#allocation7 + $0x190] sm:$0xff]  ;;  %v195_v24 = vld [vmem:[#allocation7 + $0xa0] sm:$0xff] }
  0x2f   :  { %2807 = vmatprep.subr.bf16.mxu1 %v2806_v9  ;;  %v2780_v18 = vpack.c.bf16 %v178_v16, %v177_v15  ;;  %v226_v20 = vld [vmem:[#allocation7 + $0x198] sm:$0xff]  ;;  %v209_v21 = vld [vmem:[#allocation7 + $0x110] sm:$0xff]  ;;  %v196_v25 = vld [vmem:[#allocation7 + $0xa8] sm:$0xff]  ;;  %2779 = vmatprep.subr.bf16.mxu0 %v2778_v17 }
  0x30   :  { %2809 = vmatpush3.bf16.msra.mxu1 %v2808_v13  ;;  %v2810_v22 = vpack.c.bf16 %v226_v20, %v225_v19  ;;  %v210_v23 = vld [vmem:[#allocation7 + $0x118] sm:$0xff]  ;;  %v2782_v27 = vpack.c.bf16 %v196_v25, %v195_v24  ;;  %v179_v28 = vld [vmem:[#allocation7 + $0x20] sm:$0xff]  ;;  %v180_v29 = vld [vmem:[#allocation7 + $0x28] sm:$0xff] }
  0x31   :  { %v2812_v26 = vpack.c.bf16 %v210_v23, %v209_v21  ;;  %v227_v30 = vld [vmem:[#allocation7 + $0x1a0] sm:$0xff]  ;;  %v228_v31 = vld [vmem:[#allocation7 + $0x1a8] sm:$0xff]  ;;  %v2784_v34 = vpack.c.bf16 %v180_v29, %v179_v28  ;;  %v197_v36 = vld [vmem:[#allocation7 + $0xb0] sm:$0xff] }
  0x32   :  { %2811 = vmatprep.subr.bf16.mxu1 %v2810_v22  ;;  %v211_v32 = vld [vmem:[#allocation7 + $0x120] sm:$0xff]  ;;  %v212_v33 = vld [vmem:[#allocation7 + $0x128] sm:$0xff]  ;;  %2781 = vmatpush3.bf16.msra.mxu0 %v2780_v18  ;;  %v2814_v35 = vpack.c.bf16 %v228_v31, %v227_v30  ;;  %v198_v37 = vld [vmem:[#allocation7 + $0xb8] sm:$0xff] }
  0x33   :  { %v181_v38 = vld [vmem:[#allocation7 + $0x30] sm:$0xff]  ;;  %2783 = vmatprep.subr.bf16.mxu0 %v2782_v27  ;;  %v2816_v39 = vpack.c.bf16 %v212_v33, %v211_v32  ;;  %v2786_v40 = vpack.c.bf16 %v198_v37, %v197_v36  ;;  %v182_v41 = vld [vmem:[#allocation7 + $0x38] sm:$0xff]  ;;  %v199_v47 = vld [vmem:[#allocation7 + $0xc0] sm:$0xff] }
  0x34   :  { %2813 = vmatpush3.bf16.msra.mxu1 %v2812_v26  ;;  %v229_v42 = vld [vmem:[#allocation7 + $0x1b0] sm:$0xff]  ;;  %v230_v43 = vld [vmem:[#allocation7 + $0x1b8] sm:$0xff]  ;;  %v200_v48 = vld [vmem:[#allocation7 + $0xc8] sm:$0xff]  ;;  %v2788_v49 = vpack.c.bf16 %v182_v41, %v181_v38 }
  0x35   :  { %2815 = vmatprep.subr.bf16.mxu1 %v2814_v35  ;;  %v2818_v44 = vpack.c.bf16 %v230_v43, %v229_v42  ;;  %v213_v45 = vld [vmem:[#allocation7 + $0x130] sm:$0xff]  ;;  %v214_v46 = vld [vmem:[#allocation7 + $0x138] sm:$0xff]  ;;  %v231_v50 = vld [vmem:[#allocation7 + $0x1c0] sm:$0xff]  ;;  %v2790_v53 = vpack.c.bf16 %v200_v48, %v199_v47 }
  0x36   :  { %2785 = vmatpush3.bf16.msra.mxu0 %v2784_v34  ;;  %v232_v51 = vld [vmem:[#allocation7 + $0x1c8] sm:$0xff]  ;;  %v2820_v52 = vpack.c.bf16 %v214_v46, %v213_v45  ;;  %v183_v54 = vld [vmem:[#allocation7 + $0x40] sm:$0xff]  ;;  %v201_v59 = vld [vmem:[#allocation7 + $0xd0] sm:$0xff] }
  0x37   :  { %2787 = vmatprep.subr.bf16.mxu0 %v2786_v40  ;;  %v184_v55 = vld [vmem:[#allocation7 + $0x48] sm:$0xff]  ;;  %v215_v56 = vld [vmem:[#allocation7 + $0x140] sm:$0xff]  ;;  %v2822_v57 = vpack.c.bf16 %v232_v51, %v231_v50  ;;  %v202_v60 = vld [vmem:[#allocation7 + $0xd8] sm:$0xff] }
  0x38   :  { %2817 = vmatpush3.bf16.msra.mxu1 %v2816_v39  ;;  %v216_v58 = vld [vmem:[#allocation7 + $0x148] sm:$0xff]  ;;  %v233_v61 = vld [vmem:[#allocation7 + $0x1d0] sm:$0xff]  ;;  %v234_v62 = vld [vmem:[#allocation7 + $0x1d8] sm:$0xff]  ;;  %v2792_v63 = vpack.c.bf16 %v184_v55, %v183_v54  ;;  %v2794_v1 = vpack.c.bf16 %v202_v60, %v201_v59 }
  0x39   :  { %2819 = vmatprep.subr.bf16.mxu1 %v2818_v44  ;;  %v2824_v0 = vpack.c.bf16 %v216_v58, %v215_v56  ;;  %v185_v2 = vld [vmem:[#allocation7 + $0x50] sm:$0xff]  ;;  %v186_v3 = vld [vmem:[#allocation7 + $0x58] sm:$0xff]  ;;  %v2826_v5 = vpack.c.bf16 %v234_v62, %v233_v61  ;;  %v203_v7 = vld [vmem:[#allocation7 + $0xe0] sm:$0xff] }
  0x3a   :  { %2789 = vmatpush3.bf16.msra.mxu0 %v2788_v49  ;;  %v217_v4 = vld [vmem:[#allocation7 + $0x150] sm:$0xff]  ;;  %v218_v6 = vld [vmem:[#allocation7 + $0x158] sm:$0xff]  ;;  %v204_v8 = vld [vmem:[#allocation7 + $0xe8] sm:$0xff]  ;;  %v2796_v11 = vpack.c.bf16 %v186_v3, %v185_v2 }
  0x3b   :  { %2791 = vmatprep.subr.bf16.mxu0 %v2790_v53  ;;  %v235_v9 = vld [vmem:[#allocation7 + $0x1e0] sm:$0xff]  ;;  %v236_v10 = vld [vmem:[#allocation7 + $0x1e8] sm:$0xff]  ;;  %v2828_v14 = vpack.c.bf16 %v218_v6, %v217_v4  ;;  %v2798_v15 = vpack.c.bf16 %v204_v8, %v203_v7  ;;  %v205_v20 = vld [vmem:[#allocation7 + $0xf0] sm:$0xff] }
  0x3c   :  { %2821 = vmatpush3.bf16.msra.mxu1 %v2820_v52  ;;  %v187_v12 = vld [vmem:[#allocation7 + $0x60] sm:$0xff]  ;;  %v80_v13 = vld [vmem:[#allocation4 + $0x8] sm:$0xff]  ;;  %v2830_v19 = vpack.c.bf16 %v236_v10, %v235_v9  ;;  %v206_v21 = vld [vmem:[#allocation7 + $0xf8] sm:$0xff] }
  0x3d   :  { %2823 = vmatprep.subr.bf16.mxu1 %v2822_v57  ;;  %v188_v16 = vld [vmem:[#allocation7 + $0x68] sm:$0xff]  ;;  %v219_v17 = vld [vmem:[#allocation7 + $0x160] sm:$0xff]  ;;  %342 = vmatprep.mubr.f32.mxu0 %v80_v13  ;;  %v82_v22 = vld [vmem:[#allocation4 + $0x18] sm:$0xff]  ;;  %v2802_v27 = vpack.c.bf16 %v206_v21, %v205_v20 }
  0x3e   :  { %2793 = vmatpush3.bf16.msra.mxu0 %v2792_v63  ;;  %v220_v18 = vld [vmem:[#allocation7 + $0x168] sm:$0xff]  ;;  %v237_v23 = vld [vmem:[#allocation7 + $0x1f0] sm:$0xff]  ;;  %v238_v24 = vld [vmem:[#allocation7 + $0x1f8] sm:$0xff]  ;;  %487 = vmatprep.mubr.f32.mxu1 %v82_v22  ;;  %v2800_v25 = vpack.c.bf16 %v188_v16, %v187_v12 }
  0x3f   :  { %2795 = vmatprep.subr.bf16.mxu0 %v2794_v1  ;;  %v2832_v26 = vpack.c.bf16 %v220_v18, %v219_v17  ;;  %v189_v28 = vld [vmem:[#allocation7 + $0x70] sm:$0xff]  ;;  %v190_v29 = vld [vmem:[#allocation7 + $0x78] sm:$0xff]  ;;  %v2834_v31 = vpack.c.bf16 %v238_v24, %v237_v23  ;;  %v255_v33 = vld [vmem:[#allocation7 + $0x280] sm:$0xff] }
  0x40   :  { %2825 = vmatpush3.bf16.msra.mxu1 %v2824_v0  ;;  %v221_v30 = vld [vmem:[#allocation7 + $0x170] sm:$0xff]  ;;  %v222_v32 = vld [vmem:[#allocation7 + $0x178] sm:$0xff]  ;;  %v256_v34 = vld [vmem:[#allocation7 + $0x288] sm:$0xff]  ;;  %v2804_v35 = vpack.c.bf16 %v190_v29, %v189_v28 }
  0x41   :  { %2827 = vmatprep.subr.bf16.mxu1 %v2826_v5  ;;  %v2836_v36 = vpack.c.bf16 %v222_v32, %v221_v30  ;;  %v2838_v37 = vpack.c.bf16 %v256_v34, %v255_v33  ;;  %v239_v38 = vld [vmem:[#allocation7 + $0x200] sm:$0xff]  ;;  %v240_v39 = vld [vmem:[#allocation7 + $0x208] sm:$0xff]  ;;  %v257_v40 = vld [vmem:[#allocation7 + $0x290] sm:$0xff] }
  0x42   :  { %2797 = vmatpush3.bf16.msra.mxu0 %v2796_v11  ;;  %v258_v41 = vld [vmem:[#allocation7 + $0x298] sm:$0xff]  ;;  %v79_v42 = vld [vmem:[#allocation4] sm:$0xff]  ;;  %v2840_v43 = vpack.c.bf16 %v240_v39, %v239_v38  ;;  %v81_v44 = vld [vmem:[#allocation4 + $0x10] sm:$0xff] }
  0x43   :  { %2799 = vmatprep.subr.bf16.mxu0 %v2798_v15  ;;  %v86_v45 = vld [vmem:[#allocation4 + $0x38] sm:$0xff]  ;;  %v88_v46 = vld [vmem:[#allocation4 + $0x48] sm:$0xff]  ;;  %v2842_v47 = vpack.c.bf16 %v258_v41, %v257_v40  ;;  %v241_v48 = vld [vmem:[#allocation7 + $0x210] sm:$0xff] }
  0x44   :  { %2829 = vmatpush3.bf16.msra.mxu1 %v2828_v14  ;;  %v242_v49 = vld [vmem:[#allocation7 + $0x218] sm:$0xff]  ;;  %v259_v50 = vld [vmem:[#allocation7 + $0x2a0] sm:$0xff]  ;;  %v260_v51 = vld [vmem:[#allocation7 + $0x2a8] sm:$0xff] }
  0x45   :  { %2831 = vmatprep.subr.bf16.mxu1 %v2830_v19  ;;  %v85_v52 = vld [vmem:[#allocation4 + $0x30] sm:$0xff]  ;;  %v87_v53 = vld [vmem:[#allocation4 + $0x40] sm:$0xff]  ;;  %v92_v54 = vld [vmem:[#allocation4 + $0x68] sm:$0xff]  ;;  %v2844_v55 = vpack.c.bf16 %v242_v49, %v241_v48  ;;  %v2846_v57 = vpack.c.bf16 %v260_v51, %v259_v50 }
  0x46   :  { %2801 = vmatpush3.bf16.msra.mxu0 %v2800_v25  ;;  %v94_v56 = vld [vmem:[#allocation4 + $0x78] sm:$0xff]  ;;  %v243_v58 = vld [vmem:[#allocation7 + $0x220] sm:$0xff]  ;;  %v244_v59 = vld [vmem:[#allocation7 + $0x228] sm:$0xff] }
  0x47   :  { %2803 = vmatprep.subr.bf16.mxu0 %v2802_v27  ;;  %v261_v60 = vld [vmem:[#allocation7 + $0x2b0] sm:$0xff]  ;;  %v262_v61 = vld [vmem:[#allocation7 + $0x2b8] sm:$0xff]  ;;  %v91_v62 = vld [vmem:[#allocation4 + $0x60] sm:$0xff]  ;;  %v2848_v1 = vpack.c.bf16 %v244_v59, %v243_v58 }
  0x48   :  { %2833 = vmatpush3.bf16.msra.mxu1 %v2832_v26  ;;  %v93_v63 = vld [vmem:[#allocation4 + $0x70] sm:$0xff]  ;;  %v98_v0 = vld [vmem:[#allocation4 + $0x98] sm:$0xff]  ;;  %v100_v2 = vld [vmem:[#allocation4 + $0xa8] sm:$0xff]  ;;  %v2850_v3 = vpack.c.bf16 %v262_v61, %v261_v60 }
  0x49   :  { %2835 = vmatprep.subr.bf16.mxu1 %v2834_v31  ;;  %v245_v4 = vld [vmem:[#allocation7 + $0x230] sm:$0xff]  ;;  %v246_v5 = vld [vmem:[#allocation7 + $0x238] sm:$0xff]  ;;  %v263_v6 = vld [vmem:[#allocation7 + $0x2c0] sm:$0xff] }
  0x4a   :  { %2805 = vmatpush3.bf16.msra.mxu0 %v2804_v35  ;;  %v264_v7 = vld [vmem:[#allocation7 + $0x2c8] sm:$0xff]  ;;  %v97_v8 = vld [vmem:[#allocation4 + $0x90] sm:$0xff]  ;;  %v99_v9 = vld [vmem:[#allocation4 + $0xa0] sm:$0xff]  ;;  %v2852_v11 = vpack.c.bf16 %v246_v5, %v245_v4 }
  0x4b   :  { %2839 = vmatprep.subr.bf16.mxu0 %v2838_v37  ;;  %v104_v10 = vld [vmem:[#allocation4 + $0xc8] sm:$0xff]  ;;  %v106_v12 = vld [vmem:[#allocation4 + $0xd8] sm:$0xff]  ;;  %v2854_v13 = vpack.c.bf16 %v264_v7, %v263_v6  ;;  %v247_v14 = vld [vmem:[#allocation7 + $0x240] sm:$0xff] }
  0x4c   :  { %2837 = vmatpush3.bf16.msra.mxu1 %v2836_v36  ;;  %v248_v15 = vld [vmem:[#allocation7 + $0x248] sm:$0xff]  ;;  %v265_v16 = vld [vmem:[#allocation7 + $0x2d0] sm:$0xff]  ;;  %v266_v17 = vld [vmem:[#allocation7 + $0x2d8] sm:$0xff] }
  0x4d   :  { %343 = vmatmul.mubr.f32.vlgmr.msra.gmra.mrb[0].mxu0 %v79_v42  ;;  %v103_v18 = vld [vmem:[#allocation4 + $0xc0] sm:$0xff]  ;;  %v105_v19 = vld [vmem:[#allocation4 + $0xd0] sm:$0xff]  ;;  %v110_v20 = vld [vmem:[#allocation4 + $0xf8] sm:$0xff]  ;;  %v2856_v21 = vpack.c.bf16 %v248_v15, %v247_v14  ;;  %v2858_v23 = vpack.c.bf16 %v266_v17, %v265_v16 }
  0x4e   :  { %2841 = vmatpush3.bf16.msra.mxu0 %v2840_v43  ;;  %347 = vmatprep.mubr.f32.mxu0 %v86_v45  ;;  %v112_v22 = vld [vmem:[#allocation4 + $0x108] sm:$0xff]  ;;  %v249_v24 = vld [vmem:[#allocation7 + $0x250] sm:$0xff]  ;;  %v250_v25 = vld [vmem:[#allocation7 + $0x258] sm:$0xff] }
  0x4f   :  { %488 = vmatmul.mubr.f32.vlgmr.msra.gmra.mrb[0].mxu1 %v81_v44  ;;  %2843 = vmatprep.subr.bf16.mxu0 %v2842_v47  ;;  %v267_v26 = vld [vmem:[#allocation7 + $0x2e0] sm:$0xff]  ;;  %v268_v27 = vld [vmem:[#allocation7 + $0x2e8] sm:$0xff]  ;;  %v109_v28 = vld [vmem:[#allocation4 + $0xf0] sm:$0xff]  ;;  %v2860_v31 = vpack.c.bf16 %v250_v25, %v249_v24 }
  0x50   :  { %492 = vmatprep.mubr.f32.mxu1 %v88_v46  ;;  %v111_v29 = vld [vmem:[#allocation4 + $0x100] sm:$0xff]  ;;  %v116_v30 = vld [vmem:[#allocation4 + $0x128] sm:$0xff]  ;;  %v118_v32 = vld [vmem:[#allocation4 + $0x138] sm:$0xff]  ;;  %v2862_v33 = vpack.c.bf16 %v268_v27, %v267_v26 }
  0x51   :  { %348 = vmatmul.mubr.f32.gmra.mrb[2].mxu0 %v85_v52  ;;  %v251_v34 = vld [vmem:[#allocation7 + $0x260] sm:$0xff]  ;;  %v252_v35 = vld [vmem:[#allocation7 + $0x268] sm:$0xff]  ;;  %v269_v36 = vld [vmem:[#allocation7 + $0x2f0] sm:$0xff] }
  0x52   :  { %352 = vmatprep.mubr.f32.mxu0 %v92_v54  ;;  %2845 = vmatpush3.bf16.msra.mxu0 %v2844_v55  ;;  %v270_v37 = vld [vmem:[#allocation7 + $0x2f8] sm:$0xff]  ;;  %v115_v38 = vld [vmem:[#allocation4 + $0x120] sm:$0xff]  ;;  %v117_v39 = vld [vmem:[#allocation4 + $0x130] sm:$0xff]  ;;  %v2864_v41 = vpack.c.bf16 %v252_v35, %v251_v34 }
  0x53   :  { %493 = vmatmul.mubr.f32.gmra.mrb[2].mxu1 %v87_v53  ;;  %2847 = vmatprep.subr.bf16.mxu0 %v2846_v57  ;;  %v122_v40 = vld [vmem:[#allocation4 + $0x158] sm:$0xff]  ;;  %v124_v42 = vld [vmem:[#allocation4 + $0x168] sm:$0xff]  ;;  %v2866_v43 = vpack.c.bf16 %v270_v37, %v269_v36  ;;  %v253_v44 = vld [vmem:[#allocation7 + $0x270] sm:$0xff] }
  0x54   :  { %497 = vmatprep.mubr.f32.mxu1 %v94_v56  ;;  %v254_v45 = vld [vmem:[#allocation7 + $0x278] sm:$0xff]  ;;  %v121_v46 = vld [vmem:[#allocation4 + $0x150] sm:$0xff]  ;;  %v123_v47 = vld [vmem:[#allocation4 + $0x160] sm:$0xff] }
  0x55   :  { %353 = vmatmul.mubr.f32.gmra.mrb[4].mxu0 %v91_v62  ;;  %v128_v48 = vld [vmem:[#allocation4 + $0x188] sm:$0xff]  ;;  %v2868_v49 = vpack.c.bf16 %v254_v45, %v253_v44  ;;  %v130_v50 = vld [vmem:[#allocation4 + $0x198] sm:$0xff]  ;;  %v127_v51 = vld [vmem:[#allocation4 + $0x180] sm:$0xff] }
  0x56   :  { %357 = vmatprep.mubr.f32.mxu0 %v98_v0  ;;  %2849 = vmatpush3.bf16.msra.mxu0 %v2848_v1  ;;  %v129_v52 = vld [vmem:[#allocation4 + $0x190] sm:$0xff]  ;;  %v134_v53 = vld [vmem:[#allocation4 + $0x1b8] sm:$0xff]  ;;  %v136_v54 = vld [vmem:[#allocation4 + $0x1c8] sm:$0xff] }
  0x57   :  { %498 = vmatmul.mubr.f32.gmra.mrb[4].mxu1 %v93_v63  ;;  %2851 = vmatprep.subr.bf16.mxu0 %v2850_v3  ;;  %v133_v55 = vld [vmem:[#allocation4 + $0x1b0] sm:$0xff]  ;;  %v135_v56 = vld [vmem:[#allocation4 + $0x1c0] sm:$0xff]  ;;  %v140_v57 = vld [vmem:[#allocation4 + $0x1e8] sm:$0xff] }
  0x58   :  { %502 = vmatprep.mubr.f32.mxu1 %v100_v2  ;;  %v142_v58 = vld [vmem:[#allocation4 + $0x1f8] sm:$0xff]  ;;  %v139_v59 = vld [vmem:[#allocation4 + $0x1e0] sm:$0xff]  ;;  %v141_v60 = vld [vmem:[#allocation4 + $0x1f0] sm:$0xff] }
  0x59   :  { %358 = vmatmul.mubr.f32.gmra.mrb[6].mxu0 %v97_v8  ;;  %v146_v61 = vld [vmem:[#allocation4 + $0x218] sm:$0xff]  ;;  %v148_v62 = vld [vmem:[#allocation4 + $0x228] sm:$0xff]  ;;  %v145_v63 = vld [vmem:[#allocation4 + $0x210] sm:$0xff] }
  0x5a   :  { %362 = vmatprep.mubr.f32.mxu0 %v104_v10  ;;  %2853 = vmatpush3.bf16.msra.mxu0 %v2852_v11  ;;  %v147_v0 = vld [vmem:[#allocation4 + $0x220] sm:$0xff]  ;;  %v152_v1 = vld [vmem:[#allocation4 + $0x248] sm:$0xff]  ;;  %v154_v2 = vld [vmem:[#allocation4 + $0x258] sm:$0xff] }
  0x5b   :  { %503 = vmatmul.mubr.f32.gmra.mrb[6].mxu1 %v99_v9  ;;  %2855 = vmatprep.subr.bf16.mxu0 %v2854_v13  ;;  %v151_v3 = vld [vmem:[#allocation4 + $0x240] sm:$0xff]  ;;  %v153_v4 = vld [vmem:[#allocation4 + $0x250] sm:$0xff]  ;;  %v158_v5 = vld [vmem:[#allocation4 + $0x278] sm:$0xff] }
  0x5c   :  { %507 = vmatprep.mubr.f32.mxu1 %v106_v12  ;;  %v160_v6 = vld [vmem:[#allocation4 + $0x288] sm:$0xff]  ;;  %v157_v7 = vld [vmem:[#allocation4 + $0x270] sm:$0xff]  ;;  %v159_v8 = vld [vmem:[#allocation4 + $0x280] sm:$0xff] }
  0x5d   :  { %363 = vmatmul.mubr.f32.gmra.mrb[8].mxu0 %v103_v18  ;;  %v164_v9 = vld [vmem:[#allocation4 + $0x2a8] sm:$0xff]  ;;  %v166_v10 = vld [vmem:[#allocation4 + $0x2b8] sm:$0xff]  ;;  %v163_v11 = vld [vmem:[#allocation4 + $0x2a0] sm:$0xff] }
  0x5e   :  { %367 = vmatprep.mubr.f32.mxu0 %v110_v20  ;;  %2857 = vmatpush3.bf16.msra.mxu0 %v2856_v21  ;;  %v165_v12 = vld [vmem:[#allocation4 + $0x2b0] sm:$0xff]  ;;  %v170_v13 = vld [vmem:[#allocation4 + $0x2d8] sm:$0xff]  ;;  %v172_v14 = vld [vmem:[#allocation4 + $0x2e8] sm:$0xff] }
  0x5f   :  { %508 = vmatmul.mubr.f32.gmra.mrb[8].mxu1 %v105_v19  ;;  %2859 = vmatprep.subr.bf16.mxu0 %v2858_v23  ;;  %v169_v15 = vld [vmem:[#allocation4 + $0x2d0] sm:$0xff]  ;;  %v171_v16 = vld [vmem:[#allocation4 + $0x2e0] sm:$0xff]  ;;  %v84_v17 = vld [vmem:[#allocation4 + $0x28] sm:$0xff] }
  0x60   :  { %512 = vmatprep.mubr.f32.mxu1 %v112_v22  ;;  %v83_v18 = vld [vmem:[#allocation4 + $0x20] sm:$0xff]  ;;  %v90_v19 = vld [vmem:[#allocation4 + $0x58] sm:$0xff]  ;;  %v89_v20 = vld [vmem:[#allocation4 + $0x50] sm:$0xff] }
  0x61   :  { %368 = vmatmul.mubr.f32.gmra.mrb[10].mxu0 %v109_v28  ;;  %v96_v21 = vld [vmem:[#allocation4 + $0x88] sm:$0xff]  ;;  %v95_v22 = vld [vmem:[#allocation4 + $0x80] sm:$0xff]  ;;  %v102_v23 = vld [vmem:[#allocation4 + $0xb8] sm:$0xff] }
  0x62   :  { %372 = vmatprep.mubr.f32.mxu0 %v116_v30  ;;  %2861 = vmatpush3.bf16.msra.mxu0 %v2860_v31  ;;  %v101_v24 = vld [vmem:[#allocation4 + $0xb0] sm:$0xff]  ;;  %v108_v25 = vld [vmem:[#allocation4 + $0xe8] sm:$0xff]  ;;  %v107_v26 = vld [vmem:[#allocation4 + $0xe0] sm:$0xff] }
  0x63   :  { %513 = vmatmul.mubr.f32.gmra.mrb[10].mxu1 %v111_v29  ;;  %2863 = vmatprep.subr.bf16.mxu0 %v2862_v33  ;;  %v114_v27 = vld [vmem:[#allocation4 + $0x118] sm:$0xff]  ;;  %v113_v28 = vld [vmem:[#allocation4 + $0x110] sm:$0xff]  ;;  %v120_v29 = vld [vmem:[#allocation4 + $0x148] sm:$0xff] }
  0x64   :  { %517 = vmatprep.mubr.f32.mxu1 %v118_v32  ;;  %v119_v30 = vld [vmem:[#allocation4 + $0x140] sm:$0xff]  ;;  %v126_v31 = vld [vmem:[#allocation4 + $0x178] sm:$0xff]  ;;  %v125_v32 = vld [vmem:[#allocation4 + $0x170] sm:$0xff] }
  0x65   :  { %373 = vmatmul.mubr.f32.gmra.mrb[12].mxu0 %v115_v38  ;;  %v132_v33 = vld [vmem:[#allocation4 + $0x1a8] sm:$0xff]  ;;  %v131_v34 = vld [vmem:[#allocation4 + $0x1a0] sm:$0xff]  ;;  %v138_v35 = vld [vmem:[#allocation4 + $0x1d8] sm:$0xff] }
  0x66   :  { %377 = vmatprep.mubr.f32.mxu0 %v122_v40  ;;  %2865 = vmatpush3.bf16.msra.mxu0 %v2864_v41  ;;  %v137_v36 = vld [vmem:[#allocation4 + $0x1d0] sm:$0xff]  ;;  %v144_v37 = vld [vmem:[#allocation4 + $0x208] sm:$0xff]  ;;  %v143_v38 = vld [vmem:[#allocation4 + $0x200] sm:$0xff] }
  0x67   :  { %518 = vmatmul.mubr.f32.gmra.mrb[12].mxu1 %v117_v39  ;;  %2867 = vmatprep.subr.bf16.mxu0 %v2866_v43  ;;  %v150_v39 = vld [vmem:[#allocation4 + $0x238] sm:$0xff]  ;;  %v149_v40 = vld [vmem:[#allocation4 + $0x230] sm:$0xff]  ;;  %v156_v41 = vld [vmem:[#allocation4 + $0x268] sm:$0xff] }
  0x68   :  { %522 = vmatprep.mubr.f32.mxu1 %v124_v42  ;;  %v155_v42 = vld [vmem:[#allocation4 + $0x260] sm:$0xff]  ;;  %v162_v43 = vld [vmem:[#allocation4 + $0x298] sm:$0xff]  ;;  %v161_v44 = vld [vmem:[#allocation4 + $0x290] sm:$0xff] }
  0x69   :  { %378 = vmatmul.mubr.f32.gmra.mrb[14].mxu0 %v121_v46  ;;  %v168_v45 = vld [vmem:[#allocation4 + $0x2c8] sm:$0xff]  ;;  %v729_v46 = vld [vmem:[%s3799_s3] sm:$0xff] }
  0x6a   :  { %382 = vmatprep.mubr.f32.mxu0 %v128_v48  ;;  %2869 = vmatpush3.bf16.msra.mxu0 %v2868_v49  ;;  %v167_v49 = vld [vmem:[#allocation4 + $0x2c0] sm:$0xff] }
  0x6b   :  { %523 = vmatmul.mubr.f32.gmra.mrb[14].mxu1 %v123_v47  ;;  %v730_v47 = vld [vmem:[%s3799_s3 + $0x8] sm:$0xff] }
  0x6c   :  { %527 = vmatprep.mubr.f32.mxu1 %v130_v50  ;;  %v2870_v48 = vpack.c.bf16 %v730_v47, %v729_v46  ;;  %v174_v50 = vld [vmem:[#allocation4 + $0x2f8] sm:$0xff] }
  0x6d   :  { %383 = vmatmul.mubr.f32.gmra.mrb[16].mxu0 %v127_v51  ;;  %v173_v51 = vld [vmem:[#allocation4 + $0x2f0] sm:$0xff] }
  0x6e   :  { %387 = vmatprep.mubr.f32.mxu0 %v134_v53  ;;  %2871 = vmatprep.subr.bf16.mxu1 %v2870_v48  ;;  %v732_v53 = vld [vmem:[%s3799_s3 + $0x18] sm:$0xff] }
  0x6f   :  { %528 = vmatmul.mubr.f32.gmra.mrb[16].mxu1 %v129_v52  ;;  %v731_v52 = vld [vmem:[%s3799_s3 + $0x10] sm:$0xff] }
  0x70   :  { %532 = vmatprep.mubr.f32.mxu1 %v136_v54  ;;  %2873 = vmatpush3.bf16.msra.mxu1 %v2870_v48  ;;  %v2874_v54 = vpack.c.bf16 %v732_v53, %v731_v52 }
  0x71   :  { %388 = vmatmul.mubr.f32.gmra.mrb[18].mxu0 %v133_v55  ;;  %v733_v55 = vld [vmem:[%s3799_s3 + $0x20] sm:$0xff] }
  0x72   :  { %392 = vmatprep.mubr.f32.mxu0 %v140_v57  ;;  %2875 = vmatprep.subr.bf16.mxu1 %v2874_v54 }
  0x73   :  { %533 = vmatmul.mubr.f32.gmra.mrb[18].mxu1 %v135_v56  ;;  %v734_v56 = vld [vmem:[%s3799_s3 + $0x28] sm:$0xff] }
  0x74   :  { %537 = vmatprep.mubr.f32.mxu1 %v142_v58  ;;  %2877 = vmatpush3.bf16.msra.mxu1 %v2874_v54  ;;  %v2878_v57 = vpack.c.bf16 %v734_v56, %v733_v55  ;;  %v735_v58 = vld [vmem:[%s3799_s3 + $0x30] sm:$0xff] }
  0x75   :  { %393 = vmatmul.mubr.f32.gmra.mrb[20].mxu0 %v139_v59  ;;  %v736_v59 = vld [vmem:[%s3799_s3 + $0x38] sm:$0xff] }
  0x76   :  { %397 = vmatprep.mubr.f32.mxu0 %v146_v61  ;;  %2879 = vmatprep.subr.bf16.mxu1 %v2878_v57  ;;  %v737_v61 = vld [vmem:[%s3799_s3 + $0x40] sm:$0xff] }
  0x77   :  { %538 = vmatmul.mubr.f32.gmra.mrb[20].mxu1 %v141_v60  ;;  %v2882_v60 = vpack.c.bf16 %v736_v59, %v735_v58 }
  0x78   :  { %542 = vmatprep.mubr.f32.mxu1 %v148_v62  ;;  %2881 = vmatpush3.bf16.msra.mxu1 %v2878_v57  ;;  %v738_v62 = vld [vmem:[%s3799_s3 + $0x48] sm:$0xff] }
  0x79   :  { %398 = vmatmul.mubr.f32.gmra.mrb[22].mxu0 %v145_v63  ;;  %2883 = vmatprep.subr.bf16.mxu1 %v2882_v60  ;;  %v2886_v63 = vpack.c.bf16 %v738_v62, %v737_v61 }
  0x7a   :  { %402 = vmatprep.mubr.f32.mxu0 %v152_v1  ;;  %v740_v1 = vld [vmem:[%s3799_s3 + $0x58] sm:$0xff] }
  0x7b   :  { %543 = vmatmul.mubr.f32.gmra.mrb[22].mxu1 %v147_v0  ;;  %v739_v0 = vld [vmem:[%s3799_s3 + $0x50] sm:$0xff] }
  0x7c   :  { %547 = vmatprep.mubr.f32.mxu1 %v154_v2  ;;  %2885 = vmatpush3.bf16.msra.mxu1 %v2882_v60  ;;  %v2890_v2 = vpack.c.bf16 %v740_v1, %v739_v0 }
  0x7d   :  { %403 = vmatmul.mubr.f32.gmra.mrb[24].mxu0 %v151_v3  ;;  %2887 = vmatprep.subr.bf16.mxu1 %v2886_v63  ;;  %v741_v3 = vld [vmem:[%s3799_s3 + $0x60] sm:$0xff] }
  0x7e   :  { %407 = vmatprep.mubr.f32.mxu0 %v158_v5 }
  0x7f   :  { %548 = vmatmul.mubr.f32.gmra.mrb[24].mxu1 %v153_v4  ;;  %v742_v4 = vld [vmem:[%s3799_s3 + $0x68] sm:$0xff] }
  0x80   :  { %552 = vmatprep.mubr.f32.mxu1 %v160_v6  ;;  %2889 = vmatpush3.bf16.msra.mxu1 %v2886_v63  ;;  %v2894_v5 = vpack.c.bf16 %v742_v4, %v741_v3  ;;  %v743_v6 = vld [vmem:[%s3799_s3 + $0x70] sm:$0xff] }
  0x81   :  { %408 = vmatmul.mubr.f32.gmra.mrb[26].mxu0 %v157_v7  ;;  %2891 = vmatprep.subr.bf16.mxu1 %v2890_v2  ;;  %v744_v7 = vld [vmem:[%s3799_s3 + $0x78] sm:$0xff] }
  0x82   :  { %412 = vmatprep.mubr.f32.mxu0 %v164_v9 }
  0x83   :  { %553 = vmatmul.mubr.f32.gmra.mrb[26].mxu1 %v159_v8  ;;  %v2898_v8 = vpack.c.bf16 %v744_v7, %v743_v6 }
  0x84   :  { %557 = vmatprep.mubr.f32.mxu1 %v166_v10  ;;  %2893 = vmatpush3.bf16.msra.mxu1 %v2890_v2  ;;  %v3299_v10 = vld [vmem:[%s3798_s2] ss:$0 sm:$0xff] }
  0x85   :  { %413 = vmatmul.mubr.f32.gmra.mrb[28].mxu0 %v163_v11  ;;  %2895 = vmatprep.subr.bf16.mxu1 %v2894_v5 }
  0x86   :  { %417 = vmatprep.mubr.f32.mxu0 %v170_v13 }
  0x87   :  { %558 = vmatmul.mubr.f32.gmra.mrb[28].mxu1 %v165_v12 }
  0x88   :  { %562 = vmatprep.mubr.f32.mxu1 %v172_v14  ;;  %2897 = vmatpush3.bf16.msra.mxu1 %v2894_v5 }
  0x89   :  { %418 = vmatmul.mubr.f32.gmra.mrb[30].mxu0 %v169_v15  ;;  %2899 = vmatprep.subr.bf16.mxu1 %v2898_v8 }
  0x8a   :  { %632 = vmatprep.mubr.f32.mxu0 %v84_v17 }
  0x8b   :  { %563 = vmatmul.mubr.f32.gmra.mrb[30].mxu1 %v171_v16 }
  0x8c   :  { %2901 = vmatpush3.bf16.msra.mxu1 %v2898_v8 }
  0x8d   :  { %633 = vmatmul.mubr.f32.vlgmr.msra.gmra.mrb[32].mxu0 %v83_v18  ;;  %v913_v18 = vld [vmem:[%s3801_s5] sm:$0xff] }
  0x8e   :  { %637 = vmatprep.mubr.f32.mxu0 %v90_v19  ;;  %v914_v19 = vld [vmem:[%s3801_s5 + $0x8] sm:$0xff] }
  0x91   :  { %638 = vmatmul.mubr.f32.gmra.mrb[34].mxu0 %v89_v20 }
  0x92   :  { %642 = vmatprep.mubr.f32.mxu0 %v96_v21 }
  0x95   :  { %643 = vmatmul.mubr.f32.gmra.mrb[36].mxu0 %v95_v22  ;;  %v3308_v22 = vpack.c.bf16 %v914_v19, %v913_v18 }
  0x96   :  { %647 = vmatprep.mubr.f32.mxu0 %v102_v23 }
  0x97   :  { %2903 = vmatprep.subr.bf16.mxu1 %v3308_v22 }
  0x99   :  { %648 = vmatmul.mubr.f32.gmra.mrb[38].mxu0 %v101_v24 }
  0x9a   :  { %652 = vmatprep.mubr.f32.mxu0 %v108_v25 }
  0x9d   :  { %653 = vmatmul.mubr.f32.gmra.mrb[40].mxu0 %v107_v26 }
  0x9e   :  { %657 = vmatprep.mubr.f32.mxu0 %v114_v27 }
  0xa1   :  { %658 = vmatmul.mubr.f32.gmra.mrb[42].mxu0 %v113_v28 }
  0xa2   :  { %662 = vmatprep.mubr.f32.mxu0 %v120_v29 }
  0xa5   :  { %663 = vmatmul.mubr.f32.gmra.mrb[44].mxu0 %v119_v30 }
  0xa6   :  { %667 = vmatprep.mubr.f32.mxu0 %v126_v31 }
  0xa9   :  { %668 = vmatmul.mubr.f32.gmra.mrb[46].mxu0 %v125_v32 }
  0xaa   :  { %672 = vmatprep.mubr.f32.mxu0 %v132_v33 }
  0xad   :  { %673 = vmatmul.mubr.f32.gmra.mrb[48].mxu0 %v131_v34 }
  0xae   :  { %677 = vmatprep.mubr.f32.mxu0 %v138_v35 }
  0xb1   :  { %678 = vmatmul.mubr.f32.gmra.mrb[50].mxu0 %v137_v36 }
  0xb2   :  { %682 = vmatprep.mubr.f32.mxu0 %v144_v37 }
  0xb5   :  { %683 = vmatmul.mubr.f32.gmra.mrb[52].mxu0 %v143_v38 }
  0xb6   :  { %687 = vmatprep.mubr.f32.mxu0 %v150_v39 }
  0xb9   :  { %688 = vmatmul.mubr.f32.gmra.mrb[54].mxu0 %v149_v40 }
  0xba   :  { %692 = vmatprep.mubr.f32.mxu0 %v156_v41 }
  0xbd   :  { %693 = vmatmul.mubr.f32.gmra.mrb[56].mxu0 %v155_v42 }
  0xbe   :  { %697 = vmatprep.mubr.f32.mxu0 %v162_v43 }
  0xc1   :  { %698 = vmatmul.mubr.f32.gmra.mrb[58].mxu0 %v161_v44 }
  0xc2   :  { %702 = vmatprep.mubr.f32.mxu0 %v168_v45 }
  0xc5   :  { %703 = vmatmul.mubr.f32.gmra.mrb[60].mxu0 %v167_v49 }
  0xc6   :  { %707 = vmatprep.mubr.f32.mxu0 %v174_v50 }
  0xc9   :  { %708 = vmatmul.mubr.f32.gmra.mrb[62].mxu0 %v173_v51 }
 0x120   :  { %v2414_v9 = vpop.f32.mrb[0].mxu0 }
 0x121   :  { %v2415_v11 = vpop.f32.mrb[1].mxu0 }
 0x122   :  { %v2494_v12 = vpop.f32.mrb[0].mxu1  ;;  %v2416_v13 = vadd.f32 %v2415_v11, %v2414_v9 }
 0x123   :  { %v2495_v14 = vpop.f32.mrb[1].mxu1 }
 0x124   :  { %v2496_v15 = vadd.f32 %v2495_v14, %v2494_v12  ;;  %v345_v16 = vadd.f32 %v2416_v13, %v3299_v10  ;;  %v2417_v17 = vpop.f32.mrb[2].mxu0 }
 0x125   :  { %v2418_v20 = vpop.f32.mrb[3].mxu0 }
 0x126   :  { %v2497_v21 = vpop.f32.mrb[2].mxu1  ;;  %v3310_v23 = vadd.f32 %v2496_v15, %v345_v16  ;;  %v2419_v24 = vadd.f32 %v2418_v20, %v2417_v17 }
 0x127   :  { %v2498_v25 = vpop.f32.mrb[3].mxu1 }
 0x128   :  { %v2499_v26 = vadd.f32 %v2498_v25, %v2497_v21  ;;  %v350_v27 = vadd.f32 %v2419_v24, %v3299_v10  ;;  %v2420_v28 = vpop.f32.mrb[4].mxu0 }
 0x129   :  { %v2421_v29 = vpop.f32.mrb[5].mxu0 }
 0x12a   :  { %v2500_v30 = vpop.f32.mrb[4].mxu1  ;;  %v3314_v31 = vadd.f32 %v2499_v26, %v350_v27  ;;  %v2422_v32 = vadd.f32 %v2421_v29, %v2420_v28 }
 0x12b   :  { %v2501_v33 = vpop.f32.mrb[5].mxu1 }
 0x12c   :  { %v2502_v34 = vadd.f32 %v2501_v33, %v2500_v30  ;;  %v355_v35 = vadd.f32 %v2422_v32, %v3299_v10  ;;  %v2423_v36 = vpop.f32.mrb[6].mxu0 }
 0x12d   :  { %v2424_v37 = vpop.f32.mrb[7].mxu0 }
 0x12e   :  { %v2503_v38 = vpop.f32.mrb[6].mxu1  ;;  %v3317_v39 = vadd.f32 %v2502_v34, %v355_v35  ;;  %v2425_v40 = vadd.f32 %v2424_v37, %v2423_v36 }
 0x12f   :  { %v2504_v41 = vpop.f32.mrb[7].mxu1 }
 0x130   :  { %v2505_v42 = vadd.f32 %v2504_v41, %v2503_v38  ;;  %v360_v43 = vadd.f32 %v2425_v40, %v3299_v10  ;;  %v2426_v44 = vpop.f32.mrb[8].mxu0 }
 0x131   :  { %v2427_v45 = vpop.f32.mrb[9].mxu0 }
 0x132   :  { %v2506_v46 = vpop.f32.mrb[8].mxu1  ;;  %v3320_v47 = vadd.f32 %v2505_v42, %v360_v43  ;;  %v2428_v48 = vadd.f32 %v2427_v45, %v2426_v44 }
 0x133   :  { %v2507_v49 = vpop.f32.mrb[9].mxu1 }
 0x134   :  { %v2508_v50 = vadd.f32 %v2507_v49, %v2506_v46  ;;  %v365_v51 = vadd.f32 %v2428_v48, %v3299_v10  ;;  %v2429_v52 = vpop.f32.mrb[10].mxu0 }
 0x135   :  { %v2430_v53 = vpop.f32.mrb[11].mxu0 }
 0x136   :  { %v2509_v54 = vpop.f32.mrb[10].mxu1  ;;  %v3323_v55 = vadd.f32 %v2508_v50, %v365_v51  ;;  %v2431_v56 = vadd.f32 %v2430_v53, %v2429_v52 }
 0x137   :  { %v2510_v57 = vpop.f32.mrb[11].mxu1 }
 0x138   :  { %v2511_v58 = vadd.f32 %v2510_v57, %v2509_v54  ;;  %v370_v59 = vadd.f32 %v2431_v56, %v3299_v10  ;;  %v2432_v60 = vpop.f32.mrb[12].mxu0 }
 0x139   :  { %v2433_v61 = vpop.f32.mrb[13].mxu0 }
 0x13a   :  { %v2512_v62 = vpop.f32.mrb[12].mxu1  ;;  %v3326_v63 = vadd.f32 %v2511_v58, %v370_v59  ;;  %v2434_v0 = vadd.f32 %v2433_v61, %v2432_v60 }
 0x13b   :  { %v2513_v1 = vpop.f32.mrb[13].mxu1 }
 0x13c   :  { %v2514_v2 = vadd.f32 %v2513_v1, %v2512_v62  ;;  %v375_v3 = vadd.f32 %v2434_v0, %v3299_v10  ;;  %v2435_v4 = vpop.f32.mrb[14].mxu0 }
 0x13d   :  { %v2436_v5 = vpop.f32.mrb[15].mxu0 }
 0x13e   :  { %v2515_v6 = vpop.f32.mrb[14].mxu1  ;;  %v3329_v7 = vadd.f32 %v2514_v2, %v375_v3  ;;  %v2437_v8 = vadd.f32 %v2436_v5, %v2435_v4 }
 0x13f   :  { %v2516_v9 = vpop.f32.mrb[15].mxu1 }
 0x140   :  { %v2517_v11 = vadd.f32 %v2516_v9, %v2515_v6  ;;  %v380_v12 = vadd.f32 %v2437_v8, %v3299_v10  ;;  %v2438_v13 = vpop.f32.mrb[16].mxu0 }
 0x141   :  { %v2439_v14 = vpop.f32.mrb[17].mxu0 }
 0x142   :  { %v2518_v15 = vpop.f32.mrb[16].mxu1  ;;  %v3332_v16 = vadd.f32 %v2517_v11, %v380_v12  ;;  %v2440_v17 = vadd.f32 %v2439_v14, %v2438_v13 }
 0x143   :  { %v2519_v18 = vpop.f32.mrb[17].mxu1 }
 0x144   :  { %v2520_v19 = vadd.f32 %v2519_v18, %v2518_v15  ;;  %v385_v20 = vadd.f32 %v2440_v17, %v3299_v10  ;;  %v2441_v21 = vpop.f32.mrb[18].mxu0 }
 0x145   :  { %v2442_v24 = vpop.f32.mrb[19].mxu0 }
 0x146   :  { %v2521_v25 = vpop.f32.mrb[18].mxu1  ;;  %v3335_v26 = vadd.f32 %v2520_v19, %v385_v20  ;;  %v2443_v27 = vadd.f32 %v2442_v24, %v2441_v21 }
 0x147   :  { %v2522_v28 = vpop.f32.mrb[19].mxu1 }
 0x148   :  { %v2523_v29 = vadd.f32 %v2522_v28, %v2521_v25  ;;  %v390_v30 = vadd.f32 %v2443_v27, %v3299_v10  ;;  %v2444_v32 = vpop.f32.mrb[20].mxu0 }
 0x149   :  { %v2445_v33 = vpop.f32.mrb[21].mxu0 }
 0x14a   :  { %v2524_v34 = vpop.f32.mrb[20].mxu1  ;;  %v3338_v35 = vadd.f32 %v2523_v29, %v390_v30  ;;  %v2446_v36 = vadd.f32 %v2445_v33, %v2444_v32 }
 0x14b   :  { %v2525_v37 = vpop.f32.mrb[21].mxu1 }
 0x14c   :  { %v2526_v38 = vadd.f32 %v2525_v37, %v2524_v34  ;;  %v395_v40 = vadd.f32 %v2446_v36, %v3299_v10  ;;  %v2447_v41 = vpop.f32.mrb[22].mxu0  ;;  %v915_v37 = vld [vmem:[%s3801_s5 + $0x10] sm:$0xff] }
 0x14d   :  { %v2448_v42 = vpop.f32.mrb[23].mxu0 }
 0x14e   :  { %v2527_v43 = vpop.f32.mrb[22].mxu1  ;;  %v3341_v44 = vadd.f32 %v2526_v38, %v395_v40  ;;  %v2449_v45 = vadd.f32 %v2448_v42, %v2447_v41  ;;  %v916_v38 = vld [vmem:[%s3801_s5 + $0x18] sm:$0xff] }
 0x14f   :  { %v2528_v46 = vpop.f32.mrb[23].mxu1 }
 0x150   :  { %v2529_v48 = vadd.f32 %v2528_v46, %v2527_v43  ;;  %v400_v49 = vadd.f32 %v2449_v45, %v3299_v10  ;;  %v2450_v50 = vpop.f32.mrb[24].mxu0  ;;  %v917_v45 = vld [vmem:[%s3801_s5 + $0x20] sm:$0xff]  ;;  %v918_v46 = vld [vmem:[%s3801_s5 + $0x28] sm:$0xff] }
 0x151   :  { %v2451_v51 = vpop.f32.mrb[25].mxu0 }
 0x152   :  { %v2530_v52 = vpop.f32.mrb[24].mxu1  ;;  %v3344_v53 = vadd.f32 %v2529_v48, %v400_v49  ;;  %v2452_v54 = vadd.f32 %v2451_v51, %v2450_v50 }
 0x153   :  { %v2531_v56 = vpop.f32.mrb[25].mxu1 }
 0x154   :  { %v2532_v57 = vadd.f32 %v2531_v56, %v2530_v52  ;;  %v405_v58 = vadd.f32 %v2452_v54, %v3299_v10  ;;  %v2453_v59 = vpop.f32.mrb[26].mxu0  ;;  %v2910_v52 = vpack.c.bf16 %v918_v46, %v917_v45 }
 0x155   :  { %v2454_v60 = vpop.f32.mrb[27].mxu0 }
 0x156   :  { %v2533_v61 = vpop.f32.mrb[26].mxu1  ;;  %v3347_v62 = vadd.f32 %v2532_v57, %v405_v58  ;;  %v2455_v0 = vadd.f32 %v2454_v60, %v2453_v59 }
 0x157   :  { %v2534_v1 = vpop.f32.mrb[27].mxu1 }
 0x158   :  { %v2535_v2 = vadd.f32 %v2534_v1, %v2533_v61  ;;  %v410_v3 = vadd.f32 %v2455_v0, %v3299_v10  ;;  %v2456_v4 = vpop.f32.mrb[28].mxu0 }
 0x159   :  { %v2457_v5 = vpop.f32.mrb[29].mxu0 }
 0x15a   :  { %v2536_v6 = vpop.f32.mrb[28].mxu1  ;;  %v3350_v8 = vadd.f32 %v2535_v2, %v410_v3  ;;  %v2458_v9 = vadd.f32 %v2457_v5, %v2456_v4 }
 0x15b   :  { %v2537_v11 = vpop.f32.mrb[29].mxu1 }
 0x15c   :  { %v2538_v12 = vadd.f32 %v2537_v11, %v2536_v6  ;;  %v415_v13 = vadd.f32 %v2458_v9, %v3299_v10  ;;  %v2459_v14 = vpop.f32.mrb[30].mxu0 }
 0x15d   :  { %v2460_v15 = vpop.f32.mrb[31].mxu0 }
 0x15e   :  { %v2539_v17 = vpop.f32.mrb[30].mxu1  ;;  %v3353_v18 = vadd.f32 %v2538_v12, %v415_v13  ;;  %v2461_v19 = vadd.f32 %v2460_v15, %v2459_v14 }
 0x15f   :  { %v2540_v20 = vpop.f32.mrb[31].mxu1 }
 0x160   :  { %v2541_v21 = vadd.f32 %v2540_v20, %v2539_v17  ;;  %v420_v24 = vadd.f32 %v2461_v19, %v3299_v10  ;;  %v2574_v25 = vpop.f32.mrb[32].mxu0 }
 0x161   :  { %v2575_v27 = vpop.f32.mrb[33].mxu0 }
 0x162   :  { %v3356_v28 = vadd.f32 %v2541_v21, %v420_v24  ;;  %v2576_v29 = vadd.f32 %v2575_v27, %v2574_v25 }
 0x164   :  { %v635_v30 = vadd.f32 %v2576_v29, %v3310_v23  ;;  %v2577_v32 = vpop.f32.mrb[34].mxu0  ;;  %v2906_v23 = vpack.c.bf16 %v916_v38, %v915_v37 }
 0x165   :  { %v2578_v33 = vpop.f32.mrb[35].mxu0 }
 0x166   :  { %v713_v34 = vmax.f32 %v635_v30, 0.0  ;;  %v2579_v36 = vadd.f32 %v2578_v33, %v2577_v32 }
 0x168   :  { %v640_v10 = vadd.f32 %v2579_v36, %v3314_v31  ;;  %v2580_v40 = vpop.f32.mrb[36].mxu0  ;;  %2710 = vmatprep.mubr.f32.mxu1 %v713_v34 }
 0x169   :  { %v2581_v41 = vpop.f32.mrb[37].mxu0 }
 0x16a   :  { %v714_v42 = vmax.f32 %v640_v10, 0.0  ;;  %v2582_v43 = vadd.f32 %v2581_v41, %v2580_v40 }
 0x16c   :  { %v645_v48 = vadd.f32 %v2582_v43, %v3317_v39  ;;  %v2583_v49 = vpop.f32.mrb[38].mxu0  ;;  %2711 = vmatmul.mubr.f32.vlgmr.msra.gmra.mrb[32].mxu1 %v714_v42 }
 0x16d   :  { %v2584_v50 = vpop.f32.mrb[39].mxu0  ;;  %2905 = vmatpush3.bf16.msra.mxu1 %v3308_v22 }
 0x16e   :  { %v715_v31 = vmax.f32 %v645_v48, 0.0  ;;  %v2585_v51 = vadd.f32 %v2584_v50, %v2583_v49  ;;  %2907 = vmatprep.subr.bf16.mxu1 %v2906_v23 }
 0x170   :  { %v650_v54 = vadd.f32 %v2585_v51, %v3320_v47  ;;  %v2586_v56 = vpop.f32.mrb[40].mxu0  ;;  %2713 = vmatprep.mubr.f32.mxu1 %v715_v31 }
 0x171   :  { %v2587_v57 = vpop.f32.mrb[41].mxu0  ;;  %2909 = vmatpush3.bf16.msra.mxu1 %v2906_v23 }
 0x172   :  { %v716_v58 = vmax.f32 %v650_v54, 0.0  ;;  %v2588_v59 = vadd.f32 %v2587_v57, %v2586_v56  ;;  %2911 = vmatprep.subr.bf16.mxu1 %v2910_v52  ;;  %v920_v56 = vld [vmem:[%s3801_s5 + $0x38] sm:$0xff] }
 0x174   :  { %v655_v39 = vadd.f32 %v2588_v59, %v3323_v55  ;;  %v2589_v60 = vpop.f32.mrb[42].mxu0  ;;  %2714 = vmatmul.mubr.f32.gmra.mrb[34].mxu1 %v716_v58 }
 0x175   :  { %v2590_v61 = vpop.f32.mrb[43].mxu0  ;;  %2913 = vmatpush3.bf16.msra.mxu1 %v2910_v52 }
 0x176   :  { %v717_v22 = vmax.f32 %v655_v39, 0.0  ;;  %v2591_v0 = vadd.f32 %v2590_v61, %v2589_v60 }
 0x178   :  { %v660_v1 = vadd.f32 %v2591_v0, %v3326_v63  ;;  %v2592_v2 = vpop.f32.mrb[44].mxu0  ;;  %2716 = vmatprep.mubr.f32.mxu1 %v717_v22 }
 0x179   :  { %v2593_v47 = vpop.f32.mrb[45].mxu0 }
 0x17a   :  { %v718_v3 = vmax.f32 %v660_v1, 0.0  ;;  %v2594_v4 = vadd.f32 %v2593_v47, %v2592_v2 }
 0x17c   :  { %v665_v5 = vadd.f32 %v2594_v4, %v3329_v7  ;;  %v2595_v6 = vpop.f32.mrb[46].mxu0  ;;  %2717 = vmatmul.mubr.f32.gmra.mrb[36].mxu1 %v718_v3 }
 0x17d   :  { %v2596_v9 = vpop.f32.mrb[47].mxu0 }
 0x17e   :  { %v719_v11 = vmax.f32 %v665_v5, 0.0  ;;  %v2597_v55 = vadd.f32 %v2596_v9, %v2595_v6 }
 0x180   :  { %v670_v12 = vadd.f32 %v2597_v55, %v3332_v16  ;;  %v2598_v13 = vpop.f32.mrb[48].mxu0  ;;  %2719 = vmatprep.mubr.f32.mxu1 %v719_v11 }
 0x181   :  { %v2599_v14 = vpop.f32.mrb[49].mxu0 }
 0x182   :  { %v720_v15 = vmax.f32 %v670_v12, 0.0  ;;  %v2600_v17 = vadd.f32 %v2599_v14, %v2598_v13 }
 0x184   :  { %v675_v63 = vadd.f32 %v2600_v17, %v3335_v26  ;;  %v2601_v19 = vpop.f32.mrb[50].mxu0  ;;  %2720 = vmatmul.mubr.f32.gmra.mrb[38].mxu1 %v720_v15 }
 0x185   :  { %v2602_v20 = vpop.f32.mrb[51].mxu0 }
 0x186   :  { %v721_v21 = vmax.f32 %v675_v63, 0.0  ;;  %v2603_v24 = vadd.f32 %v2602_v20, %v2601_v19 }
 0x188   :  { %v680_v7 = vadd.f32 %v2603_v24, %v3338_v35  ;;  %v2604_v25 = vpop.f32.mrb[52].mxu0  ;;  %2722 = vmatprep.mubr.f32.mxu1 %v721_v21 }
 0x189   :  { %v2605_v27 = vpop.f32.mrb[53].mxu0 }
 0x18a   :  { %v722_v29 = vmax.f32 %v680_v7, 0.0  ;;  %v2606_v30 = vadd.f32 %v2605_v27, %v2604_v25 }
 0x18c   :  { %v685_v16 = vadd.f32 %v2606_v30, %v3341_v44  ;;  %v2607_v32 = vpop.f32.mrb[54].mxu0  ;;  %2723 = vmatmul.mubr.f32.gmra.mrb[40].mxu1 %v722_v29 }
 0x18d   :  { %v2608_v33 = vpop.f32.mrb[55].mxu0 }
 0x18e   :  { %v723_v34 = vmax.f32 %v685_v16, 0.0  ;;  %v2609_v36 = vadd.f32 %v2608_v33, %v2607_v32 }
 0x190   :  { %v690_v26 = vadd.f32 %v2609_v36, %v3344_v53  ;;  %v2610_v37 = vpop.f32.mrb[56].mxu0  ;;  %2725 = vmatprep.mubr.f32.mxu1 %v723_v34 }
 0x191   :  { %v2611_v38 = vpop.f32.mrb[57].mxu0 }
 0x192   :  { %v724_v10 = vmax.f32 %v690_v26, 0.0  ;;  %v2612_v40 = vadd.f32 %v2611_v38, %v2610_v37 }
 0x194   :  { %v695_v35 = vadd.f32 %v2612_v40, %v3347_v62  ;;  %v2613_v41 = vpop.f32.mrb[58].mxu0  ;;  %2726 = vmatmul.mubr.f32.gmra.mrb[42].mxu1 %v724_v10 }
 0x195   :  { %v2614_v42 = vpop.f32.mrb[59].mxu0 }
 0x196   :  { %v725_v43 = vmax.f32 %v695_v35, 0.0  ;;  %v2615_v23 = vadd.f32 %v2614_v42, %v2613_v41 }
 0x198   :  { %v700_v44 = vadd.f32 %v2615_v23, %v3350_v8  ;;  %v2616_v45 = vpop.f32.mrb[60].mxu0  ;;  %2728 = vmatprep.mubr.f32.mxu1 %v725_v43  ;;  %v919_v8 = vld [vmem:[%s3801_s5 + $0x30] sm:$0xff] }
 0x199   :  { %v2617_v46 = vpop.f32.mrb[61].mxu0  ;;  %v2914_v57 = vpack.c.bf16 %v920_v56, %v919_v8 }
 0x19a   :  { %v726_v48 = vmax.f32 %v700_v44, 0.0  ;;  %v2618_v49 = vadd.f32 %v2617_v46, %v2616_v45  ;;  %v3415_v44 = vld [vmem:[%s3802_s6] ss:$0 sm:$0xff]  ;;  %s3167_s6 = smov [#allocation9]  }
 0x19b   :  { %2915 = vmatprep.subr.bf16.mxu1 %v2914_v57 }
 0x19c   :  { %v705_v53 = vadd.f32 %v2618_v49, %v3353_v18  ;;  %v2619_v50 = vpop.f32.mrb[62].mxu0  ;;  %2729 = vmatmul.mubr.f32.gmra.mrb[44].mxu1 %v726_v48  ;;  %v2362_v18 = vld [vmem:[%s3800_s4] ss:$0 sm:$0xff] }
 0x19d   :  { %v2620_v31 = vpop.f32.mrb[63].mxu0  ;;  %2917 = vmatpush3.bf16.msra.mxu1 %v2914_v57 }
 0x19e   :  { %v727_v51 = vmax.f32 %v705_v53, 0.0  ;;  %v2621_v52 = vadd.f32 %v2620_v31, %v2619_v50  ;;  %v3422_v53 = vld [vmem:[%s3803_s7] ss:$0 sm:$0xff]  ;;  %s2348_s7 = sshll.u32 %s3167_s6, 4  ;;  %s2349_s7 = int_to_ptr.vmem [resolvable:$true] %s2348_s7 }
 0x19f   :  { %s3132_s24 = scalar_lea.vmem %s2349_s7, 1536  ;;  %p3137_p3 = scmp.lt.s32.totalorder %s2349_s7, %s2349_s7 }
 0x1a0   :  { %v710_v62 = vadd.f32 %v2621_v52, %v3356_v28  ;;  %2731 = vmatprep.mubr.f32.mxu1 %v727_v51  ;;  %p3133_p2 = scmp.ne.s32.totalorder %s2349_s7, %s3132_s24  ;;  %p3138_p4 = scmp.lt.s32.totalorder %s3132_s24, %s3132_s24 }
 0x1a2   :  { %v728_v54 = vmax.f32 %v710_v62, 0.0  ;;  %p3139_p5 = por %p3138_p4, %p3137_p3 }
 0x1a4   :  { %2732 = vmatmul.mubr.f32.gmra.mrb[46].mxu1 %v728_v54  ;;  %p3140_p6 = pnand %p3139_p5, %p3133_p2 }
 0x23f   :  { %v2712_v58 = vpop.f32.mrb[32].mxu1 }
 0x240   :  { %v824_v28 = vadd.f32 %v2712_v58, %v2362_v18  ;;  %v818_v59 = vpop.f32.mrb[33].mxu1 }
 0x241   :  { %v819_v39 = vadd.f32 %v2362_v18, %v818_v59 }
 0x242   :  { %v898_v61 = vmax.f32 %v824_v28, 0.0 }
 0x243   :  { %v897_v60 = vmax.f32 %v819_v39, 0.0 }
 0x245   :  { %2750 = vmatprep.mubr.msk.f32.mxu1 %vm928_vm0, %v897_v60 }
 0x246   :  { %2751 = vmatmul.mubr.msk.f32.vlgmr.msra.gmra.mrb[48].mxu1 %vm928_vm0, %v898_v61 }
 0x247   :  { %v2715_v22 = vpop.f32.mrb[34].mxu1 }
 0x248   :  { %v834_v0 = vadd.f32 %v2715_v22, %v2362_v18  ;;  %v828_v1 = vpop.f32.mrb[35].mxu1 }
 0x249   :  { %v829_v2 = vadd.f32 %v2362_v18, %v828_v1 }
 0x24a   :  { %v900_v3 = vmax.f32 %v834_v0, 0.0 }
 0x24b   :  { %v899_v47 = vmax.f32 %v829_v2, 0.0 }
 0x24d   :  { %2753 = vmatprep.mubr.msk.f32.mxu1 %vm928_vm0, %v899_v47 }
 0x24e   :  { %2754 = vmatmul.mubr.msk.f32.gmra.mrb[50].mxu1 %vm928_vm0, %v900_v3 }
 0x24f   :  { %v2718_v4 = vpop.f32.mrb[36].mxu1 }
 0x250   :  { %v844_v5 = vadd.f32 %v2718_v4, %v2362_v18  ;;  %v838_v6 = vpop.f32.mrb[37].mxu1 }
 0x251   :  { %v839_v9 = vadd.f32 %v2362_v18, %v838_v6 }
 0x252   :  { %v902_v55 = vmax.f32 %v844_v5, 0.0 }
 0x253   :  { %v901_v11 = vmax.f32 %v839_v9, 0.0 }
 0x255   :  { %2756 = vmatprep.mubr.msk.f32.mxu1 %vm928_vm0, %v901_v11 }
 0x256   :  { %2757 = vmatmul.mubr.msk.f32.gmra.mrb[52].mxu1 %vm928_vm0, %v902_v55 }
 0x257   :  { %v2721_v12 = vpop.f32.mrb[38].mxu1 }
 0x258   :  { %v854_v13 = vadd.f32 %v2721_v12, %v2362_v18  ;;  %v848_v14 = vpop.f32.mrb[39].mxu1 }
 0x259   :  { %v849_v15 = vadd.f32 %v2362_v18, %v848_v14 }
 0x25a   :  { %v904_v63 = vmax.f32 %v854_v13, 0.0 }
 0x25b   :  { %v903_v17 = vmax.f32 %v849_v15, 0.0 }
 0x25d   :  { %2759 = vmatprep.mubr.msk.f32.mxu1 %vm928_vm0, %v903_v17 }
 0x25e   :  { %2760 = vmatmul.mubr.msk.f32.gmra.mrb[54].mxu1 %vm928_vm0, %v904_v63 }
 0x25f   :  { %v2724_v19 = vpop.f32.mrb[40].mxu1 }
 0x260   :  { %v864_v20 = vadd.f32 %v2724_v19, %v2362_v18  ;;  %v858_v21 = vpop.f32.mrb[41].mxu1 }
 0x261   :  { %v859_v24 = vadd.f32 %v2362_v18, %v858_v21 }
 0x262   :  { %v906_v25 = vmax.f32 %v864_v20, 0.0 }
 0x263   :  { %v905_v7 = vmax.f32 %v859_v24, 0.0 }
 0x265   :  { %2762 = vmatprep.mubr.msk.f32.mxu1 %vm928_vm0, %v905_v7 }
 0x266   :  { %2763 = vmatmul.mubr.msk.f32.gmra.mrb[56].mxu1 %vm928_vm0, %v906_v25 }
 0x267   :  { %v2727_v27 = vpop.f32.mrb[42].mxu1 }
 0x268   :  { %v874_v29 = vadd.f32 %v2727_v27, %v2362_v18  ;;  %v868_v30 = vpop.f32.mrb[43].mxu1 }
 0x269   :  { %v869_v16 = vadd.f32 %v2362_v18, %v868_v30 }
 0x26a   :  { %v908_v33 = vmax.f32 %v874_v29, 0.0 }
 0x26b   :  { %v907_v32 = vmax.f32 %v869_v16, 0.0 }
 0x26d   :  { %2765 = vmatprep.mubr.msk.f32.mxu1 %vm928_vm0, %v907_v32 }
 0x26e   :  { %2766 = vmatmul.mubr.msk.f32.gmra.mrb[58].mxu1 %vm928_vm0, %v908_v33 }
 0x26f   :  { %v2730_v34 = vpop.f32.mrb[44].mxu1 }
 0x270   :  { %v884_v36 = vadd.f32 %v2730_v34, %v2362_v18  ;;  %v878_v26 = vpop.f32.mrb[45].mxu1 }
 0x271   :  { %v879_v37 = vadd.f32 %v2362_v18, %v878_v26 }
 0x272   :  { %v910_v10 = vmax.f32 %v884_v36, 0.0 }
 0x273   :  { %v909_v38 = vmax.f32 %v879_v37, 0.0 }
 0x275   :  { %2768 = vmatprep.mubr.msk.f32.mxu1 %vm928_vm0, %v909_v38 }
 0x276   :  { %2769 = vmatmul.mubr.msk.f32.gmra.mrb[60].mxu1 %vm928_vm0, %v910_v10 }
 0x277   :  { %v2733_v40 = vpop.f32.mrb[46].mxu1 }
 0x278   :  { %v894_v35 = vadd.f32 %v2733_v40, %v2362_v18  ;;  %v888_v41 = vpop.f32.mrb[47].mxu1 }
 0x279   :  { %v889_v42 = vadd.f32 %v2362_v18, %v888_v41 }
 0x27a   :  { %v912_v23 = vmax.f32 %v894_v35, 0.0 }
 0x27b   :  { %v911_v43 = vmax.f32 %v889_v42, 0.0 }
 0x27d   :  { %2771 = vmatprep.mubr.msk.f32.mxu1 %vm928_vm0, %v911_v43 }
 0x27e   :  { %2772 = vmatmul.mubr.msk.f32.gmra.mrb[62].mxu1 %vm928_vm0, %v912_v23 }
 0x319   :  { %v2752_v45 = vpop.f32.mrb[48].mxu1 }
 0x31a   :  { %v1049_v46 = vadd.f32 %v2752_v45, %v3415_v44  ;;  %v1043_v48 = vpop.f32.mrb[49].mxu1 }
 0x31b   :  { %v1044_v49 = vadd.f32 %v3415_v44, %v1043_v48 }
 0x31c   :  { %v1123_v50 = vmax.f32 %v1049_v46, 0.0 }
 0x31d   :  { %v1122_v31 = vmax.f32 %v1044_v49, 0.0 }
 0x31e   :  { %v1147_v51 = vmul.f32 %v3422_v53, %v1123_v50  ;;  %v3166_v50 = vmov 0  }
 0x31f   :  { %v1146_v62 = vmul.f32 %v3422_v53, %v1122_v31  ;;  %2927 = vset.pattern.permute.xlu0 %v3166_v50  ;;  %2926 = vset.pattern.permute.xlu1 %v3166_v50 }
 0x320   :  { %v1166_v52 = vsel %vm1162_vm1, %v1147_v51, 0.0 }
 0x321   :  { %1167 = vadd.xlane.f32.xlu0 %v1166_v52  ;;  %v2755_v54 = vpop.f32.mrb[50].mxu1  ;;  %v1163_v58 = vsel %vm1162_vm1, %v1146_v62, 0.0 }
 0x322   :  { %v1059_v8 = vadd.f32 %v2755_v54, %v3415_v44  ;;  %v1053_v56 = vpop.f32.mrb[51].mxu1 }
 0x323   :  { %v1054_v57 = vadd.f32 %v3415_v44, %v1053_v56 }
 0x324   :  { %v1125_v18 = vmax.f32 %v1059_v8, 0.0 }
 0x325   :  { %v1124_v28 = vmax.f32 %v1054_v57, 0.0  ;;  %1164 = vadd.xlane.f32.xlu0 %v1163_v58 }
 0x326   :  { %v1149_v59 = vmul.f32 %v3422_v53, %v1125_v18 }
 0x327   :  { %v1148_v60 = vmul.f32 %v3422_v53, %v1124_v28 }
 0x328   :  { %v1172_v39 = vsel %vm1162_vm1, %v1149_v59, 0.0 }
 0x329   :  { %v2758_v61 = vpop.f32.mrb[52].mxu1  ;;  %1173 = vadd.xlane.f32.xlu0 %v1172_v39  ;;  %v1169_v47 = vsel %vm1162_vm1, %v1148_v60, 0.0 }
 0x32a   :  { %v1069_v22 = vadd.f32 %v2758_v61, %v3415_v44  ;;  %v1063_v0 = vpop.f32.mrb[53].mxu1  ;;  %v3470_v61 = vld [vmem:[#allocation3] ss:$0 sm:$0xff] }
 0x32b   :  { %v1064_v1 = vadd.f32 %v3415_v44, %v1063_v0 }
 0x32c   :  { %v1127_v2 = vmax.f32 %v1069_v22, 0.0 }
 0x32d   :  { %v1126_v3 = vmax.f32 %v1064_v1, 0.0  ;;  %1170 = vadd.xlane.f32.xlu0 %v1169_v47 }
 0x32e   :  { %v1151_v4 = vmul.f32 %v3422_v53, %v1127_v2 }
 0x32f   :  { %v1150_v6 = vmul.f32 %v3422_v53, %v1126_v3 }
 0x330   :  { %v1178_v5 = vsel %vm1162_vm1, %v1151_v4, 0.0 }
 0x331   :  { %v2761_v9 = vpop.f32.mrb[54].mxu1  ;;  %1179 = vadd.xlane.f32.xlu0 %v1178_v5  ;;  %v1175_v13 = vsel %vm1162_vm1, %v1150_v6, 0.0 }
 0x332   :  { %v1079_v11 = vadd.f32 %v2761_v9, %v3415_v44  ;;  %v1073_v55 = vpop.f32.mrb[55].mxu1 }
 0x333   :  { %v1074_v12 = vadd.f32 %v3415_v44, %v1073_v55 }
 0x334   :  { %v1129_v14 = vmax.f32 %v1079_v11, 0.0 }
 0x335   :  { %v1128_v15 = vmax.f32 %v1074_v12, 0.0  ;;  %1176 = vadd.xlane.f32.xlu0 %v1175_v13 }
 0x336   :  { %v1153_v20 = vmul.f32 %v3422_v53, %v1129_v14 }
 0x337   :  { %v1152_v17 = vmul.f32 %v3422_v53, %v1128_v15 }
 0x338   :  { %v1184_v29 = vsel %vm1162_vm1, %v1153_v20, 0.0 }
 0x339   :  { %v2764_v63 = vpop.f32.mrb[56].mxu1  ;;  %v1181_v19 = vsel %vm1162_vm1, %v1152_v17, 0.0 }
 0x33a   :  { %v1089_v21 = vadd.f32 %v2764_v63, %v3415_v44  ;;  %v1083_v24 = vpop.f32.mrb[57].mxu1  ;;  %1182 = vadd.xlane.f32.xlu0 %v1181_v19 }
 0x33b   :  { %v1084_v7 = vadd.f32 %v3415_v44, %v1083_v24 }
 0x33c   :  { %v1131_v25 = vmax.f32 %v1089_v21, 0.0 }
 0x33d   :  { %v1130_v27 = vmax.f32 %v1084_v7, 0.0 }
 0x33e   :  { %1185 = vadd.xlane.f32.xlu0 %v1184_v29  ;;  %v1155_v30 = vmul.f32 %v3422_v53, %v1131_v25 }
 0x33f   :  { %v1154_v32 = vmul.f32 %v3422_v53, %v1130_v27 }
 0x340   :  { %v1190_v16 = vsel %vm1162_vm1, %v1155_v30, 0.0 }
 0x341   :  { %1191 = vadd.xlane.f32.xlu1 %v1190_v16  ;;  %v2767_v33 = vpop.f32.mrb[58].mxu1  ;;  %v1187_v38 = vsel %vm1162_vm1, %v1154_v32, 0.0 }
 0x342   :  { %v1099_v34 = vadd.f32 %v2767_v33, %v3415_v44  ;;  %v1093_v36 = vpop.f32.mrb[59].mxu1 }
 0x343   :  { %v1094_v26 = vadd.f32 %v3415_v44, %v1093_v36 }
 0x344   :  { %v1133_v37 = vmax.f32 %v1099_v34, 0.0 }
 0x345   :  { %v1132_v10 = vmax.f32 %v1094_v26, 0.0  ;;  %1188 = vadd.xlane.f32.xlu1 %v1187_v38 }
 0x346   :  { %v1157_v40 = vmul.f32 %v3422_v53, %v1133_v37 }
 0x347   :  { %v1156_v41 = vmul.f32 %v3422_v53, %v1132_v10 }
 0x348   :  { %v1196_v35 = vsel %vm1162_vm1, %v1157_v40, 0.0 }
 0x349   :  { %v2770_v42 = vpop.f32.mrb[60].mxu1  ;;  %1197 = vadd.xlane.f32.xlu1 %v1196_v35  ;;  %v1193_v48 = vsel %vm1162_vm1, %v1156_v41, 0.0 }
 0x34a   :  { %v1109_v43 = vadd.f32 %v2770_v42, %v3415_v44  ;;  %v1103_v23 = vpop.f32.mrb[61].mxu1 }
 0x34b   :  { %v1104_v45 = vadd.f32 %v3415_v44, %v1103_v23 }
 0x34c   :  { %v1135_v46 = vmax.f32 %v1109_v43, 0.0 }
 0x34d   :  { %v1134_v49 = vmax.f32 %v1104_v45, 0.0  ;;  %1194 = vadd.xlane.f32.xlu1 %v1193_v48 }
 0x34e   :  { %v1159_v31 = vmul.f32 %v3422_v53, %v1135_v46 }
 0x34f   :  { %v1158_v52 = vmul.f32 %v3422_v53, %v1134_v49 }
 0x350   :  { %v1202_v51 = vsel %vm1162_vm1, %v1159_v31, 0.0 }
 0x351   :  { %v2773_v62 = vpop.f32.mrb[62].mxu1  ;;  %1203 = vadd.xlane.f32.xlu1 %v1202_v51  ;;  %v1199_v57 = vsel %vm1162_vm1, %v1158_v52, 0.0 }
 0x352   :  { %v1119_v54 = vadd.f32 %v2773_v62, %v3415_v44  ;;  %v1113_v8 = vpop.f32.mrb[63].mxu1 }
 0x353   :  { %v1114_v56 = vadd.f32 %v3415_v44, %v1113_v8 }
 0x354   :  { %v1137_v18 = vmax.f32 %v1119_v54, 0.0 }
 0x355   :  { %v1136_v58 = vmax.f32 %v1114_v56, 0.0  ;;  %1200 = vadd.xlane.f32.xlu1 %v1199_v57 }
 0x356   :  { %v1161_v39 = vmul.f32 %v3422_v53, %v1137_v18 }
 0x357   :  { %v1160_v28 = vmul.f32 %v3422_v53, %v1136_v58 }
 0x358   :  { %v1208_v60 = vsel %vm1162_vm1, %v1161_v39, 0.0 }
 0x359   :  { %v1205_v59 = vsel %vm1162_vm1, %v1160_v28, 0.0 }
 0x35a   :  { %1206 = vadd.xlane.f32.xlu1 %v1205_v59 }
 0x35e   :  { %1209 = vadd.xlane.f32.xlu1 %v1208_v60 }
 0x3ae   :  { %v1168_v22 = vpop.xlane.xlu0 %1167 }
 0x3af   :  { %v1218_v44 = vadd.f32 %v3470_v61, %v1168_v22 }
 0x3b1   :  { %v1234_v0 = vsub.f32 0.0, %v1218_v44 }
 0x3b2   :  { %v1165_v1 = vpop.xlane.xlu0 %1164 }
 0x3b3   :  { %v1251_v2 = vmul.f32 1.442695, %v1234_v0  ;;  %v1217_v47 = vadd.f32 %v3470_v61, %v1165_v1 }
 0x3b5   :  { %2928 = vpow2.f32 %v1251_v2  ;;  %v1233_v3 = vsub.f32 0.0, %v1217_v47 }
 0x3b6   :  { %v1174_v4 = vpop.xlane.xlu0 %1173 }
 0x3b7   :  { %v1249_v5 = vmul.f32 1.442695, %v1233_v3  ;;  %v1220_v53 = vadd.f32 %v3470_v61, %v1174_v4 }
 0x3b9   :  { %2930 = vpow2.f32 %v1249_v5  ;;  %v1236_v6 = vsub.f32 0.0, %v1220_v53 }
 0x3ba   :  { %v1171_v9 = vpop.xlane.xlu0 %1170 }
 0x3bb   :  { %v1255_v11 = vmul.f32 1.442695, %v1236_v6  ;;  %v1219_v55 = vadd.f32 %v3470_v61, %v1171_v9 }
 0x3bd   :  { %2932 = vpow2.f32 %v1255_v11  ;;  %v1235_v12 = vsub.f32 0.0, %v1219_v55 }
 0x3be   :  { %v1180_v13 = vpop.xlane.xlu0 %1179 }
 0x3bf   :  { %v2929_v14 = vpop.eup %2928  ;;  %v1253_v15 = vmul.f32 1.442695, %v1235_v12  ;;  %v1222_v17 = vadd.f32 %v3470_v61, %v1180_v13 }
 0x3c0   :  { %v1282_v63 = vadd.f32 1.0, %v2929_v14 }
 0x3c1   :  { %2934 = vpow2.f32 %v1253_v15  ;;  %v1238_v19 = vsub.f32 0.0, %v1222_v17 }
 0x3c2   :  { %2936 = vrcp.f32 %v1282_v63  ;;  %v1177_v20 = vpop.xlane.xlu0 %1176 }
 0x3c3   :  { %v2931_v21 = vpop.eup %2930  ;;  %v1259_v24 = vmul.f32 1.442695, %v1238_v19  ;;  %v1221_v7 = vadd.f32 %v3470_v61, %v1177_v20 }
 0x3c4   :  { %v1281_v25 = vadd.f32 1.0, %v2931_v21 }
 0x3c5   :  { %2938 = vpow2.f32 %v1259_v24  ;;  %v1237_v27 = vsub.f32 0.0, %v1221_v7 }
 0x3c6   :  { %2940 = vrcp.f32 %v1281_v25 }
 0x3c7   :  { %v2933_v29 = vpop.eup %2932  ;;  %v1257_v30 = vmul.f32 1.442695, %v1237_v27  ;;  %v1183_v37 = vpop.xlane.xlu0 %1182 }
 0x3c8   :  { %v1284_v16 = vadd.f32 1.0, %v2933_v29  ;;  %v1223_v48 = vadd.f32 %v3470_v61, %v1183_v37 }
 0x3c9   :  { %2942 = vpow2.f32 %v1257_v30 }
 0x3ca   :  { %2944 = vrcp.f32 %v1284_v16  ;;  %v1239_v54 = vsub.f32 0.0, %v1223_v48 }
 0x3cb   :  { %v2935_v32 = vpop.eup %2934  ;;  %v1186_v49 = vpop.xlane.xlu0 %1185 }
 0x3cc   :  { %v2937_v33 = vpop.eup %2936  ;;  %v1283_v34 = vadd.f32 1.0, %v2935_v32  ;;  %v1224_v8 = vadd.f32 %v3470_v61, %v1186_v49  ;;  %v1261_v59 = vmul.f32 1.442695, %v1239_v54  ;;  %v2994_v54 = vld [vmem:[#allocation4 + $0x40] sm:$0xff] }
 0x3cd   :  { %1336 = vperm.xlu1 %2926, %v2937_v33  }
 0x3ce   :  { %2946 = vrcp.f32 %v1283_v34  ;;  %v1192_v36 = vpop.xlane.xlu1 %1191  ;;  %v1240_v39 = vsub.f32 0.0, %v1224_v8 }
 0x3cf   :  { %v2939_v26 = vpop.eup %2938  ;;  %v1226_v38 = vadd.f32 %v3470_v61, %v1192_v36 }
 0x3d0   :  { %v2941_v10 = vpop.eup %2940  ;;  %v1286_v40 = vadd.f32 1.0, %v2939_v26  ;;  %v1263_v47 = vmul.f32 1.442695, %v1240_v39 }
 0x3d1   :  { %v1242_v35 = vsub.f32 0.0, %v1226_v38  ;;  %1331 = vperm.xlu0 %2927, %v2941_v10  }
 0x3d2   :  { %2948 = vrcp.f32 %v1286_v40  ;;  %v1189_v41 = vpop.xlane.xlu1 %1188 }
 0x3d3   :  { %v2943_v42 = vpop.eup %2942  ;;  %v1267_v43 = vmul.f32 1.442695, %v1242_v35  ;;  %v1225_v23 = vadd.f32 %v3470_v61, %v1189_v41 }
 0x3d4   :  { %v2945_v45 = vpop.eup %2944  ;;  %v1285_v46 = vadd.f32 1.0, %v2943_v42 }
 0x3d5   :  { %2950 = vpow2.f32 %v1267_v43  ;;  %v1241_v50 = vsub.f32 0.0, %v1225_v23  ;;  %1346 = vperm.xlu1 %2926, %v2945_v45  }
 0x3d6   :  { %2952 = vrcp.f32 %v1285_v46  ;;  %v1198_v31 = vpop.xlane.xlu1 %1197 }
 0x3d7   :  { %v1265_v51 = vmul.f32 1.442695, %v1241_v50  ;;  %v1228_v52 = vadd.f32 %v3470_v61, %v1198_v31  ;;  %v2992_v31 = vld [vmem:[#allocation4 + $0x30] sm:$0xff] }
 0x3d8   :  { %v2947_v62 = vpop.eup %2946 }
 0x3d9   :  { %2954 = vpow2.f32 %v1265_v51  ;;  %v1244_v56 = vsub.f32 0.0, %v1228_v52  ;;  %1341 = vperm.xlu1 %2926, %v2947_v62   ;;  %v2993_v52 = vld [vmem:[#allocation4 + $0x38] sm:$0xff] }
 0x3da   :  { %v1195_v57 = vpop.xlane.xlu1 %1194 }
 0x3db   :  { %v1271_v18 = vmul.f32 1.442695, %v1244_v56  ;;  %v1227_v58 = vadd.f32 %v3470_v61, %v1195_v57  ;;  %v2995_v56 = vld [vmem:[#allocation4 + $0x48] sm:$0xff] }
 0x3dc   :  { %v2949_v28 = vpop.eup %2948 }
 0x3dd   :  { %2956 = vpow2.f32 %v1271_v18  ;;  %v1243_v60 = vsub.f32 0.0, %v1227_v58  ;;  %1356 = vperm.xlu1 %2926, %v2949_v28   ;;  %v2996_v18 = vld [vmem:[#allocation4 + $0x50] sm:$0xff]  ;;  %v2997_v28 = vld [vmem:[#allocation4 + $0x58] sm:$0xff] }
 0x3de   :  { %v1204_v22 = vpop.xlane.xlu1 %1203  ;;  %2958 = vpow2.f32 %v1261_v59 }
 0x3df   :  { %v2951_v44 = vpop.eup %2950  ;;  %v1269_v0 = vmul.f32 1.442695, %v1243_v60  ;;  %v1230_v1 = vadd.f32 %v3470_v61, %v1204_v22 }
 0x3e0   :  { %v2953_v2 = vpop.eup %2952  ;;  %v1290_v3 = vadd.f32 1.0, %v2951_v44 }
 0x3e1   :  { %2960 = vpow2.f32 %v1269_v0  ;;  %v1246_v4 = vsub.f32 0.0, %v1230_v1  ;;  %1351 = vperm.xlu1 %2926, %v2953_v2  }
 0x3e2   :  { %2962 = vrcp.f32 %v1290_v3  ;;  %v1201_v5 = vpop.xlane.xlu1 %1200 }
 0x3e3   :  { %v2955_v53 = vpop.eup %2954  ;;  %v1275_v6 = vmul.f32 1.442695, %v1246_v4  ;;  %v1229_v9 = vadd.f32 %v3470_v61, %v1201_v5  ;;  %2964 = vpow2.f32 %v1263_v47 }
 0x3e4   :  { %v1289_v11 = vadd.f32 1.0, %v2955_v53 }
 0x3e5   :  { %2966 = vpow2.f32 %v1275_v6  ;;  %v1245_v55 = vsub.f32 0.0, %v1229_v9  ;;  %v2998_v9 = vld [vmem:[#allocation4] sm:$0xff] }
 0x3e6   :  { %2968 = vrcp.f32 %v1289_v11 }
 0x3e7   :  { %v2957_v12 = vpop.eup %2956  ;;  %v1273_v13 = vmul.f32 1.442695, %v1245_v55  ;;  %v1207_v14 = vpop.xlane.xlu1 %1206  ;;  %v2999_v55 = vld [vmem:[#allocation4 + $0x8] sm:$0xff] }
 0x3e8   :  { %v1292_v15 = vadd.f32 1.0, %v2957_v12  ;;  %v1231_v17 = vadd.f32 %v3470_v61, %v1207_v14  ;;  %v2959_v63 = vpop.eup %2958 }
 0x3e9   :  { %2970 = vpow2.f32 %v1273_v13  ;;  %v1287_v29 = vadd.f32 1.0, %v2959_v63  ;;  %v3000_v63 = vld [vmem:[#allocation4 + $0x10] sm:$0xff] }
 0x3ea   :  { %2972 = vrcp.f32 %v1292_v15  ;;  %v1247_v19 = vsub.f32 0.0, %v1231_v17 }
 0x3eb   :  { %v2961_v20 = vpop.eup %2960  ;;  %v1210_v21 = vpop.xlane.xlu1 %1209 }
 0x3ec   :  { %v2963_v24 = vpop.eup %2962  ;;  %v1291_v7 = vadd.f32 1.0, %v2961_v20  ;;  %v1277_v25 = vmul.f32 1.442695, %v1247_v19  ;;  %v1232_v27 = vadd.f32 %v3470_v61, %v1210_v21  ;;  %v3001_v20 = vld [vmem:[#allocation4 + $0x18] sm:$0xff] }
 0x3ed   :  { %1376 = vperm.xlu1 %2926, %v2963_v24   ;;  %v2965_v30 = vpop.eup %2964  ;;  %v3002_v24 = vld [vmem:[#allocation4 + $0x20] sm:$0xff] }
 0x3ee   :  { %2974 = vrcp.f32 %v1291_v7  ;;  %v1248_v16 = vsub.f32 0.0, %v1232_v27  ;;  %v1288_v26 = vadd.f32 1.0, %v2965_v30 }
 0x3ef   :  { %v2967_v32 = vpop.eup %2966  ;;  %2976 = vpow2.f32 %v1277_v25  ;;  %v3003_v25 = vld [vmem:[#allocation4 + $0x28] sm:$0xff] }
 0x3f0   :  { %v2969_v33 = vpop.eup %2968  ;;  %v1294_v34 = vadd.f32 1.0, %v2967_v32  ;;  %v1279_v36 = vmul.f32 1.442695, %v1248_v16  ;;  %2978 = vrcp.f32 %v1287_v29 }
 0x3f1   :  { %1371 = vperm.xlu1 %2926, %v2969_v33  }
 0x3f2   :  { %2980 = vrcp.f32 %v1294_v34 }
 0x3f3   :  { %v2971_v37 = vpop.eup %2970  ;;  %2982 = vpow2.f32 %v1279_v36 }
 0x3f4   :  { %v2973_v38 = vpop.eup %2972  ;;  %v1293_v10 = vadd.f32 1.0, %v2971_v37  ;;  %2984 = vrcp.f32 %v1288_v26 }
 0x3f5   :  { %1386 = vperm.xlu1 %2926, %v2973_v38  }
 0x3f6   :  { %2986 = vrcp.f32 %v1293_v10 }
 0x3f8   :  { %v2975_v61 = vpop.eup %2974 }
 0x3f9   :  { %v2977_v40 = vpop.eup %2976  ;;  %1381 = vperm.xlu1 %2926, %v2975_v61  }
 0x3fa   :  { %v1295_v35 = vadd.f32 1.0, %v2977_v40  ;;  %v2979_v41 = vpop.eup %2978 }
 0x3fc   :  { %v2981_v42 = vpop.eup %2980  ;;  %2988 = vrcp.f32 %v1295_v35 }
 0x3fd   :  { %v2983_v43 = vpop.eup %2982  ;;  %1396 = vperm.xlu0 %2927, %v2981_v42   ;;  %1361 = vperm.xlu1 %2926, %v2979_v41  }
 0x3fe   :  { %v1296_v23 = vadd.f32 1.0, %v2983_v43  ;;  %v2985_v45 = vpop.eup %2984 }
 0x400   :  { %v2987_v46 = vpop.eup %2986  ;;  %2990 = vrcp.f32 %v1296_v23 }
 0x401   :  { %1391 = vperm.xlu0 %2927, %v2987_v46   ;;  %1366 = vperm.xlu1 %2926, %v2985_v45  }
 0x406   :  { %v2989_v48 = vpop.eup %2988 }
 0x407   :  { %1401 = vperm.xlu0 %2927, %v2989_v48  }
 0x40a   :  { %v2991_v49 = vpop.eup %2990 }
 0x40b   :  { %1406 = vperm.xlu0 %2927, %v2991_v49  }
 0x44c   :  { %v1337_v50 = vpop.permute.xlu1 %1336 }
 0x44d   :  { %v1415_v51 = vmul.f32 %v2992_v31, %v1337_v50  ;;  %v1416_v62 = vmul.f32 %v2993_v52, %v1337_v50  ;;  %v1417_v8 = vmul.f32 %v2994_v54, %v1337_v50  ;;  %v1418_v57 = vmul.f32 %v2995_v56, %v1337_v50  ;;  %v3004_v52 = vld [vmem:[#allocation4 + $0x90] sm:$0xff]  ;;  %v3005_v54 = vld [vmem:[#allocation4 + $0x98] sm:$0xff] }
 0x44e   :  { %v1419_v58 = vmul.f32 %v2996_v18, %v1337_v50  ;;  %v1420_v59 = vmul.f32 %v2997_v28, %v1337_v50 }
 0x44f   :  { %v1553_v39 = vrot.slane %v1415_v51, 4  ;;  %v1559_v60 = vrot.slane %v1416_v62, 4  ;;  %v1565_v22 = vrot.slane %v1417_v8, 4  ;;  %v1571_v44 = vrot.slane %v1418_v57, 4 }
 0x450   :  { %v1577_v0 = vrot.slane %v1419_v58, 4  ;;  %v1583_v1 = vrot.slane %v1420_v59, 4  ;;  %v1332_v3 = vpop.permute.xlu0 %1331 }
 0x451   :  { %v1554_v2 = vadd.f32 %v1553_v39, %v1415_v51  ;;  %v1560_v47 = vadd.f32 %v1559_v60, %v1416_v62  ;;  %v1566_v4 = vadd.f32 %v1565_v22, %v1417_v8  ;;  %v1572_v5 = vadd.f32 %v1571_v44, %v1418_v57 }
 0x452   :  { %v1578_v53 = vadd.f32 %v1577_v0, %v1419_v58  ;;  %v1584_v6 = vadd.f32 %v1583_v1, %v1420_v59  ;;  %v1409_v11 = vmul.f32 %v2998_v9, %v1332_v3  ;;  %v1410_v12 = vmul.f32 %v2999_v55, %v1332_v3  ;;  %v3006_v0 = vld [vmem:[#allocation4 + $0xa0] sm:$0xff]  ;;  %v3007_v9 = vld [vmem:[#allocation4 + $0xa8] sm:$0xff] }
 0x453   :  { %v1555_v13 = vrot.slane %v1554_v2, 2  ;;  %v1561_v14 = vrot.slane %v1560_v47, 2  ;;  %v1567_v15 = vrot.slane %v1566_v4, 2  ;;  %v1573_v17 = vrot.slane %v1572_v5, 2 }
 0x454   :  { %v1411_v19 = vmul.f32 %v3000_v63, %v1332_v3  ;;  %v1412_v21 = vmul.f32 %v3001_v20, %v1332_v3  ;;  %v1413_v7 = vmul.f32 %v3002_v24, %v1332_v3  ;;  %v1414_v27 = vmul.f32 %v3003_v25, %v1332_v3  ;;  %v1347_v41 = vpop.permute.xlu1 %1346  ;;  %v3008_v63 = vld [vmem:[#allocation4 + $0xb0] sm:$0xff]  ;;  %v3009_v20 = vld [vmem:[#allocation4 + $0xb8] sm:$0xff] }
 0x455   :  { %v1579_v29 = vrot.slane %v1578_v53, 2  ;;  %v1585_v30 = vrot.slane %v1584_v6, 2  ;;  %v1517_v16 = vrot.slane %v1409_v11, 4  ;;  %v1523_v32 = vrot.slane %v1410_v12, 4 }
 0x456   :  { %v1556_v33 = vadd.f32 %v1555_v13, %v1554_v2  ;;  %v1562_v34 = vadd.f32 %v1561_v14, %v1560_v47  ;;  %v1568_v36 = vadd.f32 %v1567_v15, %v1566_v4  ;;  %v1574_v26 = vadd.f32 %v1573_v17, %v1572_v5 }
 0x457   :  { %v1518_v37 = vadd.f32 %v1517_v16, %v1409_v11  ;;  %v1524_v38 = vadd.f32 %v1523_v32, %v1410_v12  ;;  %v1529_v10 = vrot.slane %v1411_v19, 4  ;;  %v1535_v61 = vrot.slane %v1412_v21, 4 }
 0x458   :  { %v1541_v40 = vrot.slane %v1413_v7, 4  ;;  %v1547_v35 = vrot.slane %v1414_v27, 4  ;;  %v1580_v42 = vadd.f32 %v1579_v29, %v1578_v53  ;;  %v1586_v43 = vadd.f32 %v1585_v30, %v1584_v6 }
 0x459   :  { %v1519_v23 = vrot.slane %v1518_v37, 2  ;;  %v1525_v45 = vrot.slane %v1524_v38, 2  ;;  %v1530_v46 = vadd.f32 %v1529_v10, %v1411_v19  ;;  %v1536_v48 = vadd.f32 %v1535_v61, %v1412_v21 }
 0x45a   :  { %v1542_v49 = vadd.f32 %v1541_v40, %v1413_v7  ;;  %v1548_v50 = vadd.f32 %v1547_v35, %v1414_v27  ;;  %v1427_v62 = vmul.f32 %v3004_v52, %v1347_v41  ;;  %v1428_v8 = vmul.f32 %v3005_v54, %v1347_v41 }
 0x45b   :  { %v1520_v31 = vadd.f32 %v1519_v23, %v1518_v37  ;;  %v1526_v51 = vadd.f32 %v1525_v45, %v1524_v38  ;;  %v1557_v56 = vrot.slane %v1556_v33, 1  ;;  %v1563_v57 = vrot.slane %v1562_v34, 1 }
 0x45c   :  { %v1569_v18 = vrot.slane %v1568_v36, 1  ;;  %v1575_v58 = vrot.slane %v1574_v26, 1  ;;  %v1581_v28 = vrot.slane %v1580_v42, 1  ;;  %v1531_v59 = vrot.slane %v1530_v46, 2 }
 0x45d   :  { %v1537_v39 = vrot.slane %v1536_v48, 2  ;;  %v1587_v60 = vrot.slane %v1586_v43, 1  ;;  %v1543_v22 = vrot.slane %v1542_v49, 2  ;;  %v1549_v44 = vrot.slane %v1548_v50, 2 }
 0x45e   :  { %v1429_v1 = vmul.f32 %v3006_v0, %v1347_v41  ;;  %v1521_v2 = vrot.slane %v1520_v31, 1  ;;  %v1527_v47 = vrot.slane %v1526_v51, 1  ;;  %v1625_v3 = vrot.slane %v1427_v62, 4 }
 0x45f   :  { %v1631_v4 = vrot.slane %v1428_v8, 4  ;;  %v1558_v5 = vadd.f32 %v1557_v56, %v1556_v33  ;;  %v1564_v53 = vadd.f32 %v1563_v57, %v1562_v34  ;;  %v3488_v6 = vadd.f32 %v1569_v18, %v1568_v36  ;;  %v1342_v33 = vpop.permute.xlu1 %1341 }
 0x460   :  { %v1430_v11 = vmul.f32 %v3007_v9, %v1347_v41  ;;  %v1532_v55 = vadd.f32 %v1531_v59, %v1530_v46  ;;  %v1538_v12 = vadd.f32 %v1537_v39, %v1536_v48  ;;  %v1626_v13 = vadd.f32 %v1625_v3, %v1427_v62  ;;  %v3015_v39 = vld [vmem:[#allocation4 + $0x88] sm:$0xff] }
 0x461   :  { %v1632_v14 = vadd.f32 %v1631_v4, %v1428_v8  ;;  %v1544_v15 = vadd.f32 %v1543_v22, %v1542_v49  ;;  %v1550_v17 = vadd.f32 %v1549_v44, %v1548_v50  ;;  %v1431_v19 = vmul.f32 %v3008_v63, %v1347_v41  ;;  %v3012_v49 = vld [vmem:[#allocation4 + $0x70] sm:$0xff] }
 0x462   :  { %v1432_v21 = vmul.f32 %v3009_v20, %v1347_v41  ;;  %v1576_v24 = vadd.f32 %v1575_v58, %v1574_v26  ;;  %v1522_v7 = vadd.f32 %v1521_v2, %v1520_v31  ;;  %v1528_v25 = vadd.f32 %v1527_v47, %v1526_v51  ;;  %v3010_v41 = vld [vmem:[#allocation4 + $0x60] sm:$0xff]  ;;  %v3013_v31 = vld [vmem:[#allocation4 + $0x78] sm:$0xff] }
 0x463   :  { %v1637_v27 = vrot.slane %v1429_v1, 4  ;;  %v1582_v29 = vadd.f32 %v1581_v28, %v1580_v42  ;;  %v1588_v30 = vadd.f32 %v1587_v60, %v1586_v43  ;;  %v1627_v16 = vrot.slane %v1626_v13, 2  ;;  %v3011_v43 = vld [vmem:[#allocation4 + $0x68] sm:$0xff]  ;;  %v3014_v28 = vld [vmem:[#allocation4 + $0x80] sm:$0xff] }
 0x464   :  { %v1633_v32 = vrot.slane %v1632_v14, 2  ;;  %v1533_v34 = vrot.slane %v1532_v55, 1  ;;  %v1539_v36 = vrot.slane %v1538_v12, 1  ;;  %v1643_v38 = vrot.slane %v1430_v11, 4 }
 0x465   :  { %v1638_v37 = vadd.f32 %v1637_v27, %v1429_v1  ;;  %v1545_v10 = vrot.slane %v1544_v15, 1  ;;  %v1551_v61 = vrot.slane %v1550_v17, 1  ;;  %v1649_v40 = vrot.slane %v1431_v19, 4 }
 0x466   :  { %v1655_v35 = vrot.slane %v1432_v21, 4  ;;  %v3491_v23 = vsel %vm2189_vm2, %v1558_v5, %v1522_v7  ;;  %v3494_v26 = vsel %vm2189_vm2, %v1564_v53, %v1528_v25  ;;  %v1421_v42 = vmul.f32 %v3010_v41, %v1342_v33  ;;  %v3017_v41 = vld [vmem:[#allocation4 + $0xf8] sm:$0xff] }
 0x467   :  { %v1422_v45 = vmul.f32 %v3011_v43, %v1342_v33  ;;  %v1628_v46 = vadd.f32 %v1627_v16, %v1626_v13  ;;  %v1634_v48 = vadd.f32 %v1633_v32, %v1632_v14  ;;  %v1423_v50 = vmul.f32 %v3012_v49, %v1342_v33  ;;  %v1357_v32 = vpop.permute.xlu1 %1356 }
 0x468   :  { %v1424_v51 = vmul.f32 %v3013_v31, %v1342_v33  ;;  %v1534_v52 = vadd.f32 %v1533_v34, %v1532_v55  ;;  %v1540_v62 = vadd.f32 %v1539_v36, %v1538_v12  ;;  %v1639_v54 = vrot.slane %v1638_v37, 2 }
 0x469   :  { %v1644_v8 = vadd.f32 %v1643_v38, %v1430_v11  ;;  %v1546_v56 = vadd.f32 %v1545_v10, %v1544_v15  ;;  %v1552_v57 = vadd.f32 %v1551_v61, %v1550_v17  ;;  %v1650_v18 = vadd.f32 %v1649_v40, %v1431_v19 }
 0x46a   :  { %v1656_v58 = vadd.f32 %v1655_v35, %v1432_v21  ;;  %v1425_v59 = vmul.f32 %v3014_v28, %v1342_v33  ;;  %v1426_v60 = vmul.f32 %v3015_v39, %v1342_v33  ;;  %v1589_v22 = vrot.slane %v1421_v42, 4 }
 0x46b   :  { %v1595_v44 = vrot.slane %v1422_v45, 4  ;;  %v1629_v0 = vrot.slane %v1628_v46, 1  ;;  %v1635_v1 = vrot.slane %v1634_v48, 1  ;;  %v1601_v2 = vrot.slane %v1423_v50, 4 }
 0x46c   :  { %v1607_v47 = vrot.slane %v1424_v51, 4  ;;  %v1640_v3 = vadd.f32 %v1639_v54, %v1638_v37  ;;  %v1645_v4 = vrot.slane %v1644_v8, 2  ;;  %v1590_v5 = vadd.f32 %v1589_v22, %v1421_v42 }
 0x46d   :  { %v1596_v53 = vadd.f32 %v1595_v44, %v1422_v45  ;;  %v1651_v9 = vrot.slane %v1650_v18, 2  ;;  %v1657_v11 = vrot.slane %v1656_v58, 2  ;;  %v1602_v55 = vadd.f32 %v1601_v2, %v1423_v50  ;;  %v3018_v45 = vld [vmem:[#allocation4 + $0x100] sm:$0xff] }
 0x46e   :  { %v1608_v12 = vadd.f32 %v1607_v47, %v1424_v51  ;;  %v1591_v13 = vrot.slane %v1590_v5, 2  ;;  %v1613_v15 = vrot.slane %v1425_v59, 4  ;;  %v1619_v17 = vrot.slane %v1426_v60, 4  ;;  %v3020_v51 = vld [vmem:[#allocation4 + $0x110] sm:$0xff] }
 0x46f   :  { %v1597_v14 = vrot.slane %v1596_v53, 2  ;;  %v3498_v63 = vsel %vm2189_vm2, %v3488_v6, %v1534_v52  ;;  %v3501_v19 = vsel %vm2189_vm2, %v1576_v24, %v1540_v62  ;;  %v1603_v20 = vrot.slane %v1602_v55, 2  ;;  %v3021_v62 = vld [vmem:[#allocation4 + $0x118] sm:$0xff] }
 0x470   :  { %v1609_v21 = vrot.slane %v1608_v12, 2  ;;  %v3504_v7 = vsel %vm2189_vm2, %v1582_v29, %v1546_v56  ;;  %v3507_v25 = vsel %vm2189_vm2, %v1588_v30, %v1552_v57  ;;  %v1614_v27 = vadd.f32 %v1613_v15, %v1425_v59  ;;  %v3016_v29 = vld [vmem:[#allocation4 + $0xf0] sm:$0xff] }
 0x471   :  { %v1620_v16 = vadd.f32 %v1619_v17, %v1426_v60  ;;  %v3509_v33 = vadd.f32 %v1629_v0, %v1628_v46  ;;  %v3511_v34 = vadd.f32 %v1635_v1, %v1634_v48  ;;  %v1641_v6 = vrot.slane %v1640_v3, 1  ;;  %v3019_v46 = vld [vmem:[#allocation4 + $0x108] sm:$0xff] }
 0x472   :  { %v1646_v36 = vadd.f32 %v1645_v4, %v1644_v8  ;;  %v1652_v37 = vadd.f32 %v1651_v9, %v1650_v18  ;;  %v1658_v24 = vadd.f32 %v1657_v11, %v1656_v58  ;;  %v1592_v38 = vadd.f32 %v1591_v13, %v1590_v5 }
 0x473   :  { %v1598_v10 = vadd.f32 %v1597_v14, %v1596_v53  ;;  %v1604_v61 = vadd.f32 %v1603_v20, %v1602_v55  ;;  %v1610_v40 = vadd.f32 %v1609_v21, %v1608_v12  ;;  %v1439_v35 = vmul.f32 %v3016_v29, %v1357_v32  ;;  %v1352_v14 = vpop.permute.xlu1 %1351 }
 0x474   :  { %v1440_v30 = vmul.f32 %v3017_v41, %v1357_v32  ;;  %v1615_v42 = vrot.slane %v1614_v27, 2  ;;  %v1621_v43 = vrot.slane %v1620_v16, 2  ;;  %v1441_v49 = vmul.f32 %v3018_v45, %v1357_v32  ;;  %v3023_v41 = vld [vmem:[#allocation4 + $0xc8] sm:$0xff] }
 0x475   :  { %v1442_v50 = vmul.f32 %v3019_v46, %v1357_v32  ;;  %v3513_v48 = vadd.f32 %v1641_v6, %v1640_v3  ;;  %v1647_v31 = vrot.slane %v1646_v36, 1  ;;  %v1443_v52 = vmul.f32 %v3020_v51, %v1357_v32 }
 0x476   :  { %v1444_v54 = vmul.f32 %v3021_v62, %v1357_v32  ;;  %v1653_v8 = vrot.slane %v1652_v37, 1  ;;  %v1659_v56 = vrot.slane %v1658_v24, 1  ;;  %v1593_v57 = vrot.slane %v1592_v38, 1 }
 0x477   :  { %v1599_v18 = vrot.slane %v1598_v10, 1  ;;  %v1605_v58 = vrot.slane %v1604_v61, 1  ;;  %v1611_v28 = vrot.slane %v1610_v40, 1  ;;  %v1697_v59 = vrot.slane %v1439_v35, 4 }
 0x478   :  { %v1703_v39 = vrot.slane %v1440_v30, 4  ;;  %v1616_v60 = vadd.f32 %v1615_v42, %v1614_v27  ;;  %v1622_v22 = vadd.f32 %v1621_v43, %v1620_v16  ;;  %v1709_v44 = vrot.slane %v1441_v49, 4  ;;  %v3024_v43 = vld [vmem:[#allocation4 + $0xd0] sm:$0xff] }
 0x479   :  { %v1715_v0 = vrot.slane %v1442_v50, 4  ;;  %v1698_v1 = vadd.f32 %v1697_v59, %v1439_v35  ;;  %v1721_v47 = vrot.slane %v1443_v52, 4  ;;  %v1727_v3 = vrot.slane %v1444_v54, 4 }
 0x47a   :  { %v1704_v2 = vadd.f32 %v1703_v39, %v1440_v30  ;;  %v3515_v4 = vadd.f32 %v1647_v31, %v1646_v36  ;;  %v3517_v5 = vadd.f32 %v1653_v8, %v1652_v37  ;;  %v1710_v53 = vadd.f32 %v1709_v44, %v1441_v49  ;;  %v3022_v37 = vld [vmem:[#allocation4 + $0xc0] sm:$0xff]  ;;  %v3025_v49 = vld [vmem:[#allocation4 + $0xd8] sm:$0xff] }
 0x47b   :  { %v1716_v9 = vadd.f32 %v1715_v0, %v1442_v50  ;;  %v3519_v11 = vadd.f32 %v1659_v56, %v1658_v24  ;;  %v1699_v55 = vrot.slane %v1698_v1, 2  ;;  %v1722_v12 = vadd.f32 %v1721_v47, %v1443_v52  ;;  %v3027_v50 = vld [vmem:[#allocation4 + $0xe8] sm:$0xff] }
 0x47c   :  { %v1728_v13 = vadd.f32 %v1727_v3, %v1444_v54  ;;  %v1594_v15 = vadd.f32 %v1593_v57, %v1592_v38  ;;  %v1600_v17 = vadd.f32 %v1599_v18, %v1598_v10  ;;  %v1606_v20 = vadd.f32 %v1605_v58, %v1604_v61  ;;  %v3026_v61 = vld [vmem:[#allocation4 + $0xe0] sm:$0xff] }
 0x47d   :  { %v1612_v21 = vadd.f32 %v1611_v28, %v1610_v40  ;;  %v1617_v27 = vrot.slane %v1616_v60, 1  ;;  %v1623_v16 = vrot.slane %v1622_v22, 1  ;;  %v1705_v32 = vrot.slane %v1704_v2, 2 }
 0x47e   :  { %v1711_v6 = vrot.slane %v1710_v53, 2  ;;  %v1700_v36 = vadd.f32 %v1699_v55, %v1698_v1  ;;  %v1717_v29 = vrot.slane %v1716_v9, 2  ;;  %v1433_v35 = vmul.f32 %v3022_v37, %v1352_v14 }
 0x47f   :  { %v1434_v30 = vmul.f32 %v3023_v41, %v1352_v14  ;;  %v1723_v24 = vrot.slane %v1722_v12, 2  ;;  %v1729_v42 = vrot.slane %v1728_v13, 2  ;;  %v1435_v45 = vmul.f32 %v3024_v43, %v1352_v14 }
 0x480   :  { %v1436_v46 = vmul.f32 %v3025_v49, %v1352_v14  ;;  %v2192_v38 = vsel %vm2191_vm3, %v1594_v15, %v3491_v23  ;;  %v3525_v10 = vsel %vm2191_vm3, %v1600_v17, %v3494_v26  ;;  %v1437_v40 = vmul.f32 %v3026_v61, %v1352_v14 }
 0x481   :  { %v1438_v31 = vmul.f32 %v3027_v50, %v1352_v14  ;;  %v1618_v51 = vadd.f32 %v1617_v27, %v1616_v60  ;;  %v1624_v52 = vadd.f32 %v1623_v16, %v1622_v22  ;;  %v1706_v62 = vadd.f32 %v1705_v32, %v1704_v2 }
 0x482   :  { %v1712_v54 = vadd.f32 %v1711_v6, %v1710_v53  ;;  %v1701_v8 = vrot.slane %v1700_v36, 1  ;;  %v1718_v56 = vadd.f32 %v1717_v29, %v1716_v9  ;;  %v1661_v57 = vrot.slane %v1433_v35, 4 }
 0x483   :  { %v1667_v18 = vrot.slane %v1434_v30, 4  ;;  %v1724_v58 = vadd.f32 %v1723_v24, %v1722_v12  ;;  %v1730_v28 = vadd.f32 %v1729_v42, %v1728_v13  ;;  %v1673_v23 = vrot.slane %v1435_v45, 4 }
 0x484   :  { %v1679_v59 = vrot.slane %v1436_v46, 4  ;;  %v1662_v39 = vadd.f32 %v1661_v57, %v1433_v35  ;;  %v1685_v44 = vrot.slane %v1437_v40, 4  ;;  %v1691_v0 = vrot.slane %v1438_v31, 4  ;;  %v1377_v35 = vpop.permute.xlu1 %1376 }
 0x485   :  { %v1668_v26 = vadd.f32 %v1667_v18, %v1434_v30  ;;  %v1707_v1 = vrot.slane %v1706_v62, 1  ;;  %v1713_v47 = vrot.slane %v1712_v54, 1  ;;  %v1674_v3 = vadd.f32 %v1673_v23, %v1435_v45  ;;  %v3029_v45 = vld [vmem:[#allocation4 + $0x1b8] sm:$0xff]  ;;  %v3032_v18 = vld [vmem:[#allocation4 + $0x1d0] sm:$0xff] }
 0x486   :  { %v1680_v60 = vadd.f32 %v1679_v59, %v1436_v46  ;;  %v1663_v22 = vrot.slane %v1662_v39, 2  ;;  %v1686_v53 = vadd.f32 %v1685_v44, %v1437_v40  ;;  %v1692_v55 = vadd.f32 %v1691_v0, %v1438_v31  ;;  %v3030_v40 = vld [vmem:[#allocation4 + $0x1c0] sm:$0xff]  ;;  %v3031_v31 = vld [vmem:[#allocation4 + $0x1c8] sm:$0xff] }
 0x487   :  { %v1669_v2 = vrot.slane %v1668_v26, 2  ;;  %v1719_v9 = vrot.slane %v1718_v56, 1  ;;  %v1725_v14 = vrot.slane %v1724_v58, 1  ;;  %v1675_v15 = vrot.slane %v1674_v3, 2 }
 0x488   :  { %v1681_v17 = vrot.slane %v1680_v60, 2  ;;  %v2211_v12 = vsel %vm2191_vm3, %v1606_v20, %v3498_v63  ;;  %v2218_v13 = vsel %vm2191_vm3, %v1612_v21, %v3501_v19  ;;  %v1731_v27 = vrot.slane %v1730_v28, 1 }
 0x489   :  { %v1687_v16 = vrot.slane %v1686_v53, 2  ;;  %v2225_v32 = vsel %vm2191_vm3, %v1618_v51, %v3504_v7  ;;  %v2232_v6 = vsel %vm2191_vm3, %v1624_v52, %v3507_v25  ;;  %v3535_v29 = vadd.f32 %v1701_v8, %v1700_v36  ;;  %v3028_v36 = vld [vmem:[#allocation4 + $0x1b0] sm:$0xff] }
 0x48a   :  { %v1693_v37 = vrot.slane %v1692_v55, 2  ;;  %v3537_v41 = vadd.f32 %v1707_v1, %v1706_v62  ;;  %v1664_v30 = vadd.f32 %v1663_v22, %v1662_v39  ;;  %v1670_v24 = vadd.f32 %v1669_v2, %v1668_v26 }
 0x48b   :  { %v1676_v63 = vadd.f32 %v1675_v15, %v1674_v3  ;;  %v3539_v20 = vadd.f32 %v1713_v47, %v1712_v54  ;;  %v3541_v19 = vadd.f32 %v1719_v9, %v1718_v56  ;;  %v3543_v21 = vadd.f32 %v1725_v14, %v1724_v58  ;;  %v1372_v47 = vpop.permute.xlu1 %1371  ;;  %v3034_v9 = vld [vmem:[#allocation4 + $0x180] sm:$0xff]  ;;  %v3035_v15 = vld [vmem:[#allocation4 + $0x188] sm:$0xff] }
 0x48c   :  { %v1682_v7 = vadd.f32 %v1681_v17, %v1680_v60  ;;  %v3545_v42 = vadd.f32 %v1731_v27, %v1730_v28  ;;  %v1688_v25 = vadd.f32 %v1687_v16, %v1686_v53  ;;  %v1463_v43 = vmul.f32 %v3028_v36, %v1377_v35  ;;  %v3033_v28 = vld [vmem:[#allocation4 + $0x1d8] sm:$0xff] }
 0x48d   :  { %v1464_v49 = vmul.f32 %v3029_v45, %v1377_v35  ;;  %v1694_v46 = vadd.f32 %v1693_v37, %v1692_v55  ;;  %v2194_v61 = vsel %vm2193_vm4, %v3509_v33, %v2192_v38  ;;  %v1465_v50 = vmul.f32 %v3030_v40, %v1377_v35 }
 0x48e   :  { %v1466_v51 = vmul.f32 %v3031_v31, %v1377_v35  ;;  %v1665_v52 = vrot.slane %v1664_v30, 1  ;;  %v1671_v62 = vrot.slane %v1670_v24, 1  ;;  %v1677_v54 = vrot.slane %v1676_v63, 1 }
 0x48f   :  { %v2205_v8 = vsel %vm2193_vm4, %v3511_v34, %v3525_v10  ;;  %v1683_v56 = vrot.slane %v1682_v7, 1  ;;  %v2212_v57 = vsel %vm2193_vm4, %v3513_v48, %v2211_v12  ;;  %v1467_v58 = vmul.f32 %v3032_v18, %v1377_v35 }
 0x490   :  { %v1468_v23 = vmul.f32 %v3033_v28, %v1377_v35  ;;  %v1689_v33 = vrot.slane %v1688_v25, 1  ;;  %v2219_v38 = vsel %vm2193_vm4, %v3515_v4, %v2218_v13  ;;  %v1841_v59 = vrot.slane %v1463_v43, 4 }
 0x491   :  { %v1847_v39 = vrot.slane %v1464_v49, 4  ;;  %v1695_v26 = vrot.slane %v1694_v46, 1  ;;  %v1853_v44 = vrot.slane %v1465_v50, 4  ;;  %v1859_v0 = vrot.slane %v1466_v51, 4 }
 0x492   :  { %v1865_v1 = vrot.slane %v1467_v58, 4  ;;  %v1666_v34 = vadd.f32 %v1665_v52, %v1664_v30  ;;  %v1672_v10 = vadd.f32 %v1671_v62, %v1670_v24  ;;  %v1678_v3 = vadd.f32 %v1677_v54, %v1676_v63  ;;  %v3036_v63 = vld [vmem:[#allocation4 + $0x190] sm:$0xff] }
 0x493   :  { %v1871_v60 = vrot.slane %v1468_v23, 4  ;;  %v1684_v48 = vadd.f32 %v1683_v56, %v1682_v7  ;;  %v1842_v22 = vadd.f32 %v1841_v59, %v1463_v43  ;;  %v1848_v2 = vadd.f32 %v1847_v39, %v1464_v49 }
 0x494   :  { %v1854_v53 = vadd.f32 %v1853_v44, %v1465_v50  ;;  %v2226_v55 = vsel %vm2193_vm4, %v3517_v5, %v2225_v32  ;;  %v2233_v4 = vsel %vm2193_vm4, %v3519_v11, %v2232_v6  ;;  %v1457_v14 = vmul.f32 %v3034_v9, %v1372_v47  ;;  %v3039_v50 = vld [vmem:[#allocation4 + $0x1a8] sm:$0xff] }
 0x495   :  { %v1458_v17 = vmul.f32 %v3035_v15, %v1372_v47  ;;  %v1690_v12 = vadd.f32 %v1689_v33, %v1688_v25  ;;  %v1696_v13 = vadd.f32 %v1695_v26, %v1694_v46  ;;  %v1860_v27 = vadd.f32 %v1859_v0, %v1466_v51  ;;  %v3037_v25 = vld [vmem:[#allocation4 + $0x198] sm:$0xff] }
 0x496   :  { %v1866_v16 = vadd.f32 %v1865_v1, %v1467_v58  ;;  %v3561_v37 = vsel %vm2195_vm5, %v1666_v34, %v2194_v61  ;;  %v3564_v35 = vsel %vm2195_vm5, %v1672_v10, %v2205_v8  ;;  %v3567_v30 = vsel %vm2195_vm5, %v1678_v3, %v2212_v57  ;;  %v3038_v61 = vld [vmem:[#allocation4 + $0x1a0] sm:$0xff] }
 0x497   :  { %v1872_v5 = vadd.f32 %v1871_v60, %v1468_v23  ;;  %v3570_v11 = vsel %vm2195_vm5, %v1684_v48, %v2219_v38  ;;  %v1843_v32 = vrot.slane %v1842_v22, 2  ;;  %v1849_v6 = vrot.slane %v1848_v2, 2  ;;  %v1387_v38 = vpop.permute.xlu1 %1386  ;;  %v3040_v60 = vld [vmem:[#allocation4 + $0x210] sm:$0xff] }
 0x498   :  { %v1855_v24 = vrot.slane %v1854_v53, 2  ;;  %v1459_v7 = vmul.f32 %v3036_v63, %v1372_v47  ;;  %v1460_v36 = vmul.f32 %v3037_v25, %v1372_v47  ;;  %v1805_v43 = vrot.slane %v1457_v14, 4 }
 0x499   :  { %v1811_v45 = vrot.slane %v1458_v17, 4  ;;  %v1861_v49 = vrot.slane %v1860_v27, 2  ;;  %v1867_v46 = vrot.slane %v1866_v16, 2  ;;  %v1461_v40 = vmul.f32 %v3038_v61, %v1372_v47 }
 0x49a   :  { %v1462_v31 = vmul.f32 %v3039_v50, %v1372_v47  ;;  %v3573_v51 = vsel %vm2195_vm5, %v1690_v12, %v2226_v55  ;;  %v1873_v52 = vrot.slane %v1872_v5, 2  ;;  %v1806_v62 = vadd.f32 %v1805_v43, %v1457_v14 }
 0x49b   :  { %v1812_v54 = vadd.f32 %v1811_v45, %v1458_v17  ;;  %v3576_v8 = vsel %vm2195_vm5, %v1696_v13, %v2233_v4  ;;  %v1844_v56 = vadd.f32 %v1843_v32, %v1842_v22  ;;  %v1850_v57 = vadd.f32 %v1849_v6, %v1848_v2  ;;  %v3041_v22 = vld [vmem:[#allocation4 + $0x218] sm:$0xff]  ;;  %v3043_v32 = vld [vmem:[#allocation4 + $0x228] sm:$0xff] }
 0x49c   :  { %v1856_v18 = vadd.f32 %v1855_v24, %v1854_v53  ;;  %v1807_v58 = vrot.slane %v1806_v62, 2  ;;  %v1817_v23 = vrot.slane %v1459_v7, 4  ;;  %v1823_v33 = vrot.slane %v1460_v36, 4 }
 0x49d   :  { %v1813_v28 = vrot.slane %v1812_v54, 2  ;;  %v1862_v59 = vadd.f32 %v1861_v49, %v1860_v27  ;;  %v1868_v39 = vadd.f32 %v1867_v46, %v1866_v16  ;;  %v1829_v26 = vrot.slane %v1461_v40, 4  ;;  %v3042_v16 = vld [vmem:[#allocation4 + $0x220] sm:$0xff] }
 0x49e   :  { %v1835_v44 = vrot.slane %v1462_v31, 4  ;;  %v1874_v0 = vadd.f32 %v1873_v52, %v1872_v5  ;;  %v1808_v1 = vadd.f32 %v1807_v58, %v1806_v62  ;;  %v1818_v47 = vadd.f32 %v1817_v23, %v1459_v7  ;;  %v3045_v62 = vld [vmem:[#allocation4 + $0x238] sm:$0xff] }
 0x49f   :  { %v1824_v34 = vadd.f32 %v1823_v33, %v1460_v36  ;;  %v1814_v10 = vadd.f32 %v1813_v28, %v1812_v54  ;;  %v1830_v3 = vadd.f32 %v1829_v26, %v1461_v40  ;;  %v1475_v48 = vmul.f32 %v3040_v60, %v1387_v38 }
 0x4a0   :  { %v1476_v2 = vmul.f32 %v3041_v22, %v1387_v38  ;;  %v1845_v53 = vrot.slane %v1844_v56, 1  ;;  %v1851_v55 = vrot.slane %v1850_v57, 1  ;;  %v1809_v4 = vrot.slane %v1808_v1, 1 }
 0x4a1   :  { %v1836_v9 = vadd.f32 %v1835_v44, %v1462_v31  ;;  %v1857_v14 = vrot.slane %v1856_v18, 1  ;;  %v1863_v15 = vrot.slane %v1862_v59, 1  ;;  %v1819_v17 = vrot.slane %v1818_v47, 2  ;;  %v3044_v31 = vld [vmem:[#allocation4 + $0x230] sm:$0xff] }
 0x4a2   :  { %v1825_v12 = vrot.slane %v1824_v34, 2  ;;  %v1869_v13 = vrot.slane %v1868_v39, 1  ;;  %v1875_v27 = vrot.slane %v1874_v0, 1  ;;  %v1477_v5 = vmul.f32 %v3042_v16, %v1387_v38 }
 0x4a3   :  { %v1478_v6 = vmul.f32 %v3043_v32, %v1387_v38  ;;  %v1815_v24 = vrot.slane %v1814_v10, 1  ;;  %v1831_v63 = vrot.slane %v1830_v3, 2  ;;  %v1913_v7 = vrot.slane %v1475_v48, 4 }
 0x4a4   :  { %v1919_v25 = vrot.slane %v1476_v2, 4  ;;  %v1846_v36 = vadd.f32 %v1845_v53, %v1844_v56  ;;  %v1852_v43 = vadd.f32 %v1851_v55, %v1850_v57  ;;  %v1810_v45 = vadd.f32 %v1809_v4, %v1808_v1  ;;  %v1382_v1 = vpop.permute.xlu1 %1381 }
 0x4a5   :  { %v1837_v49 = vrot.slane %v1836_v9, 2  ;;  %v1820_v46 = vadd.f32 %v1819_v17, %v1818_v47  ;;  %v1826_v61 = vadd.f32 %v1825_v12, %v1824_v34  ;;  %v1914_v40 = vadd.f32 %v1913_v7, %v1475_v48 }
 0x4a6   :  { %v1920_v50 = vadd.f32 %v1919_v25, %v1476_v2  ;;  %v1479_v52 = vmul.f32 %v3044_v31, %v1387_v38  ;;  %v1480_v54 = vmul.f32 %v3045_v62, %v1387_v38  ;;  %v1925_v58 = vrot.slane %v1477_v5, 4  ;;  %v3050_v25 = vld [vmem:[#allocation4 + $0x200] sm:$0xff] }
 0x4a7   :  { %v1931_v28 = vrot.slane %v1478_v6, 4  ;;  %v1858_v23 = vadd.f32 %v1857_v14, %v1856_v18  ;;  %v1864_v33 = vadd.f32 %v1863_v15, %v1862_v59  ;;  %v1816_v26 = vadd.f32 %v1815_v24, %v1814_v10  ;;  %v3046_v59 = vld [vmem:[#allocation4 + $0x1e0] sm:$0xff] }
 0x4a8   :  { %v1832_v44 = vadd.f32 %v1831_v63, %v1830_v3  ;;  %v1870_v60 = vadd.f32 %v1869_v13, %v1868_v39  ;;  %v1876_v22 = vadd.f32 %v1875_v27, %v1874_v0  ;;  %v1838_v56 = vadd.f32 %v1837_v49, %v1836_v9  ;;  %v3047_v0 = vld [vmem:[#allocation4 + $0x1e8] sm:$0xff]  ;;  %v3048_v27 = vld [vmem:[#allocation4 + $0x1f0] sm:$0xff] }
 0x4a9   :  { %v1915_v57 = vrot.slane %v1914_v40, 2  ;;  %v1821_v53 = vrot.slane %v1820_v46, 1  ;;  %v1827_v47 = vrot.slane %v1826_v61, 1  ;;  %v3579_v34 = vsel %vm2189_vm2, %v1846_v36, %v1810_v45 }
 0x4aa   :  { %v1921_v48 = vrot.slane %v1920_v50, 2  ;;  %v1926_v2 = vadd.f32 %v1925_v58, %v1477_v5  ;;  %v1932_v55 = vadd.f32 %v1931_v28, %v1478_v6  ;;  %v1937_v38 = vrot.slane %v1479_v52, 4  ;;  %v3049_v5 = vld [vmem:[#allocation4 + $0x1f8] sm:$0xff] }
 0x4ab   :  { %v1943_v4 = vrot.slane %v1480_v54, 4  ;;  %v1833_v17 = vrot.slane %v1832_v44, 1  ;;  %v3582_v18 = vsel %vm2189_vm2, %v1852_v43, %v1816_v26  ;;  %v1469_v39 = vmul.f32 %v3046_v59, %v1382_v1  ;;  %v3051_v43 = vld [vmem:[#allocation4 + $0x208] sm:$0xff] }
 0x4ac   :  { %v1470_v10 = vmul.f32 %v3047_v0, %v1382_v1  ;;  %v1839_v3 = vrot.slane %v1838_v56, 1  ;;  %v1916_v9 = vadd.f32 %v1915_v57, %v1914_v40  ;;  %v1938_v14 = vadd.f32 %v1937_v38, %v1479_v52  ;;  %v1362_v0 = vpop.permute.xlu1 %1361 }
 0x4ad   :  { %v1944_v15 = vadd.f32 %v1943_v4, %v1480_v54  ;;  %v1822_v12 = vadd.f32 %v1821_v53, %v1820_v46  ;;  %v1828_v13 = vadd.f32 %v1827_v47, %v1826_v61  ;;  %v1471_v16 = vmul.f32 %v3048_v27, %v1382_v1 }
 0x4ae   :  { %v1472_v32 = vmul.f32 %v3049_v5, %v1382_v1  ;;  %v1922_v6 = vadd.f32 %v1921_v48, %v1920_v50  ;;  %v1927_v24 = vrot.slane %v1926_v2, 2  ;;  %v1933_v63 = vrot.slane %v1932_v55, 2 }
 0x4af   :  { %v1939_v7 = vrot.slane %v1938_v14, 2  ;;  %v1473_v36 = vmul.f32 %v3050_v25, %v1382_v1  ;;  %v1474_v45 = vmul.f32 %v3051_v43, %v1382_v1  ;;  %v1877_v49 = vrot.slane %v1469_v39, 4 }
 0x4b0   :  { %v1883_v31 = vrot.slane %v1470_v10, 4  ;;  %v1834_v62 = vadd.f32 %v1833_v17, %v1832_v44  ;;  %v1840_v40 = vadd.f32 %v1839_v3, %v1838_v56  ;;  %v1917_v52 = vrot.slane %v1916_v9, 1 }
 0x4b1   :  { %v1945_v54 = vrot.slane %v1944_v15, 2  ;;  %v1878_v46 = vadd.f32 %v1877_v49, %v1469_v39  ;;  %v1889_v58 = vrot.slane %v1471_v16, 4  ;;  %v1895_v28 = vrot.slane %v1472_v32, 4 }
 0x4b2   :  { %v1884_v61 = vadd.f32 %v1883_v31, %v1470_v10  ;;  %v1928_v26 = vadd.f32 %v1927_v24, %v1926_v2  ;;  %v1934_v57 = vadd.f32 %v1933_v63, %v1932_v55  ;;  %v1901_v50 = vrot.slane %v1473_v36, 4  ;;  %v3053_v24 = vld [vmem:[#allocation4 + $0x128] sm:$0xff] }
 0x4b3   :  { %v1907_v53 = vrot.slane %v1474_v45, 4  ;;  %v1923_v47 = vrot.slane %v1922_v6, 1  ;;  %v1940_v48 = vadd.f32 %v1939_v7, %v1938_v14  ;;  %v1879_v38 = vrot.slane %v1878_v46, 2  ;;  %v3054_v7 = vld [vmem:[#allocation4 + $0x130] sm:$0xff] }
 0x4b4   :  { %v1885_v4 = vrot.slane %v1884_v61, 2  ;;  %v3585_v1 = vsel %vm2189_vm2, %v1858_v23, %v1822_v12  ;;  %v3588_v44 = vsel %vm2189_vm2, %v1864_v33, %v1828_v13  ;;  %v1890_v56 = vadd.f32 %v1889_v58, %v1471_v16 }
 0x4b5   :  { %v1896_v17 = vadd.f32 %v1895_v28, %v1472_v32  ;;  %v3591_v59 = vsel %vm2189_vm2, %v1870_v60, %v1834_v62  ;;  %v3594_v2 = vsel %vm2189_vm2, %v1876_v22, %v1840_v40  ;;  %v1946_v55 = vadd.f32 %v1945_v54, %v1944_v15  ;;  %v3052_v60 = vld [vmem:[#allocation4 + $0x120] sm:$0xff]  ;;  %v3057_v54 = vld [vmem:[#allocation4 + $0x148] sm:$0xff] }
 0x4b6   :  { %v1902_v39 = vadd.f32 %v1901_v50, %v1473_v36  ;;  %v1929_v10 = vrot.slane %v1928_v26, 1  ;;  %v1935_v3 = vrot.slane %v1934_v57, 1  ;;  %v1880_v14 = vadd.f32 %v1879_v38, %v1878_v46  ;;  %v3055_v36 = vld [vmem:[#allocation4 + $0x138] sm:$0xff]  ;;  %v3056_v40 = vld [vmem:[#allocation4 + $0x140] sm:$0xff] }
 0x4b7   :  { %v1908_v27 = vadd.f32 %v1907_v53, %v1474_v45  ;;  %v3596_v23 = vadd.f32 %v1917_v52, %v1916_v9  ;;  %v3598_v12 = vadd.f32 %v1923_v47, %v1922_v6  ;;  %v1941_v33 = vrot.slane %v1940_v48, 1 }
 0x4b8   :  { %v1886_v13 = vadd.f32 %v1885_v4, %v1884_v61  ;;  %v1891_v16 = vrot.slane %v1890_v56, 2  ;;  %v1897_v5 = vrot.slane %v1896_v17, 2  ;;  %v1445_v32 = vmul.f32 %v3052_v60, %v1362_v0 }
 0x4b9   :  { %v1446_v22 = vmul.f32 %v3053_v24, %v1362_v0  ;;  %v1947_v63 = vrot.slane %v1946_v55, 1  ;;  %v1903_v15 = vrot.slane %v1902_v39, 2  ;;  %v1447_v25 = vmul.f32 %v3054_v7, %v1362_v0  ;;  %v1397_v7 = vpop.permute.xlu0 %1396 }
 0x4ba   :  { %v1448_v43 = vmul.f32 %v3055_v36, %v1362_v0  ;;  %v3600_v49 = vadd.f32 %v1929_v10, %v1928_v26  ;;  %v3602_v9 = vadd.f32 %v1935_v3, %v1934_v57  ;;  %v1881_v6 = vrot.slane %v1880_v14, 1 }
 0x4bb   :  { %v1909_v45 = vrot.slane %v1908_v27, 2  ;;  %v3604_v31 = vadd.f32 %v1941_v33, %v1940_v48  ;;  %v1887_v62 = vrot.slane %v1886_v13, 1  ;;  %v1449_v52 = vmul.f32 %v3056_v40, %v1362_v0  ;;  %v3058_v40 = vld [vmem:[#allocation4 + $0x270] sm:$0xff] }
 0x4bc   :  { %v1450_v46 = vmul.f32 %v3057_v54, %v1362_v0  ;;  %v1892_v61 = vadd.f32 %v1891_v16, %v1890_v56  ;;  %v1898_v58 = vadd.f32 %v1897_v5, %v1896_v17  ;;  %v1733_v28 = vrot.slane %v1445_v32, 4 }
 0x4bd   :  { %v1739_v50 = vrot.slane %v1446_v22, 4  ;;  %v3606_v53 = vadd.f32 %v1947_v63, %v1946_v55  ;;  %v1904_v47 = vadd.f32 %v1903_v15, %v1902_v39  ;;  %v1745_v26 = vrot.slane %v1447_v25, 4 }
 0x4be   :  { %v1751_v38 = vrot.slane %v1448_v43, 4  ;;  %v1882_v57 = vadd.f32 %v1881_v6, %v1880_v14  ;;  %v1910_v4 = vadd.f32 %v1909_v45, %v1908_v27  ;;  %v1734_v10 = vadd.f32 %v1733_v28, %v1445_v32  ;;  %v3059_v27 = vld [vmem:[#allocation4 + $0x278] sm:$0xff]  ;;  %v3061_v28 = vld [vmem:[#allocation4 + $0x288] sm:$0xff] }
 0x4bf   :  { %v1740_v3 = vadd.f32 %v1739_v50, %v1446_v22  ;;  %v1746_v48 = vadd.f32 %v1745_v26, %v1447_v25  ;;  %v1757_v60 = vrot.slane %v1449_v52, 4  ;;  %v1763_v24 = vrot.slane %v1450_v46, 4 }
 0x4c0   :  { %v1752_v33 = vadd.f32 %v1751_v38, %v1448_v43  ;;  %v1888_v36 = vadd.f32 %v1887_v62, %v1886_v13  ;;  %v1893_v0 = vrot.slane %v1892_v61, 1  ;;  %v1899_v56 = vrot.slane %v1898_v58, 1  ;;  %v3060_v13 = vld [vmem:[#allocation4 + $0x280] sm:$0xff] }
 0x4c1   :  { %v1735_v17 = vrot.slane %v1734_v10, 2  ;;  %v1741_v16 = vrot.slane %v1740_v3, 2  ;;  %v1747_v5 = vrot.slane %v1746_v48, 2  ;;  %v1758_v55 = vadd.f32 %v1757_v60, %v1449_v52  ;;  %v3062_v52 = vld [vmem:[#allocation4 + $0x290] sm:$0xff]  ;;  %v3063_v60 = vld [vmem:[#allocation4 + $0x298] sm:$0xff] }
 0x4c2   :  { %v1764_v63 = vadd.f32 %v1763_v24, %v1450_v46  ;;  %v1905_v39 = vrot.slane %v1904_v47, 1  ;;  %v1911_v15 = vrot.slane %v1910_v4, 1  ;;  %v1487_v14 = vmul.f32 %v3058_v40, %v1397_v7 }
 0x4c3   :  { %v1488_v32 = vmul.f32 %v3059_v27, %v1397_v7  ;;  %v1736_v22 = vadd.f32 %v1735_v17, %v1734_v10  ;;  %v1753_v25 = vrot.slane %v1752_v33, 2  ;;  %v1759_v43 = vrot.slane %v1758_v55, 2 }
 0x4c4   :  { %v1765_v6 = vrot.slane %v1764_v63, 2  ;;  %v1894_v45 = vadd.f32 %v1893_v0, %v1892_v61  ;;  %v1900_v54 = vadd.f32 %v1899_v56, %v1898_v58  ;;  %v1489_v62 = vmul.f32 %v3060_v13, %v1397_v7 }
 0x4c5   :  { %v1490_v50 = vmul.f32 %v3061_v28, %v1397_v7  ;;  %v1742_v26 = vadd.f32 %v1741_v16, %v1740_v3  ;;  %v1748_v38 = vadd.f32 %v1747_v5, %v1746_v48  ;;  %v1491_v46 = vmul.f32 %v3062_v52, %v1397_v7 }
 0x4c6   :  { %v1492_v24 = vmul.f32 %v3063_v60, %v1397_v7  ;;  %v3610_v40 = vsel %vm2191_vm3, %v1882_v57, %v3579_v34  ;;  %v3614_v10 = vsel %vm2191_vm3, %v1888_v36, %v3582_v18  ;;  %v1985_v61 = vrot.slane %v1487_v14, 4 }
 0x4c7   :  { %v1991_v58 = vrot.slane %v1488_v32, 4  ;;  %v1737_v0 = vrot.slane %v1736_v22, 1  ;;  %v1754_v56 = vadd.f32 %v1753_v25, %v1752_v33  ;;  %v1760_v17 = vadd.f32 %v1759_v43, %v1758_v55 }
 0x4c8   :  { %v1766_v27 = vadd.f32 %v1765_v6, %v1764_v63  ;;  %v1986_v3 = vadd.f32 %v1985_v61, %v1487_v14  ;;  %v1997_v16 = vrot.slane %v1489_v62, 4  ;;  %v2003_v5 = vrot.slane %v1490_v50, 4 }
 0x4c9   :  { %v1992_v48 = vadd.f32 %v1991_v58, %v1488_v32  ;;  %v1743_v13 = vrot.slane %v1742_v26, 1  ;;  %v1749_v7 = vrot.slane %v1748_v38, 1  ;;  %v2009_v28 = vrot.slane %v1491_v46, 4  ;;  %v1367_v32 = vpop.permute.xlu1 %1366  ;;  %v3066_v58 = vld [vmem:[#allocation4 + $0x160] sm:$0xff] }
 0x4ca   :  { %v2015_v52 = vrot.slane %v1492_v24, 4  ;;  %v3616_v34 = vadd.f32 %v1905_v39, %v1904_v47  ;;  %v3618_v57 = vadd.f32 %v1911_v15, %v1910_v4  ;;  %v1987_v18 = vrot.slane %v1986_v3, 2 }
 0x4cb   :  { %v1993_v36 = vrot.slane %v1992_v48, 2  ;;  %v3622_v33 = vsel %vm2191_vm3, %v1894_v45, %v3585_v1  ;;  %v3626_v55 = vsel %vm2191_vm3, %v1900_v54, %v3588_v44  ;;  %v1998_v63 = vadd.f32 %v1997_v16, %v1489_v62  ;;  %v3064_v44 = vld [vmem:[#allocation4 + $0x150] sm:$0xff]  ;;  %v3065_v62 = vld [vmem:[#allocation4 + $0x158] sm:$0xff]  ;;  %v3067_v16 = vld [vmem:[#allocation4 + $0x168] sm:$0xff] }
 0x4cc   :  { %v2004_v14 = vadd.f32 %v2003_v5, %v1490_v50  ;;  %v1738_v25 = vadd.f32 %v1737_v0, %v1736_v22  ;;  %v1755_v43 = vrot.slane %v1754_v56, 1  ;;  %v1761_v47 = vrot.slane %v1760_v17, 1 }
 0x4cd   :  { %v1767_v39 = vrot.slane %v1766_v27, 1  ;;  %v1744_v4 = vadd.f32 %v1743_v13, %v1742_v26  ;;  %v3628_v15 = vadd.f32 %v1749_v7, %v1748_v38  ;;  %v3630_v6 = vadd.f32 %v2009_v28, %v1491_v46  ;;  %v3069_v7 = vld [vmem:[#allocation4 + $0x178] sm:$0xff] }
 0x4ce   :  { %v3632_v60 = vadd.f32 %v2015_v52, %v1492_v24  ;;  %v3634_v1 = vadd.f32 %v1987_v18, %v1986_v3  ;;  %v3636_v45 = vadd.f32 %v1993_v36, %v1992_v48  ;;  %v1451_v54 = vmul.f32 %v3064_v44, %v1367_v32  ;;  %v3068_v48 = vld [vmem:[#allocation4 + $0x170] sm:$0xff] }
 0x4cf   :  { %v1452_v50 = vmul.f32 %v3065_v62, %v1367_v32  ;;  %v1999_v61 = vrot.slane %v1998_v63, 2  ;;  %v2005_v22 = vrot.slane %v2004_v14, 2  ;;  %v1453_v0 = vmul.f32 %v3066_v58, %v1367_v32 }
 0x4d0   :  { %v1454_v26 = vmul.f32 %v3067_v16, %v1367_v32  ;;  %v1756_v38 = vadd.f32 %v1755_v43, %v1754_v56  ;;  %v3638_v5 = vadd.f32 %v1761_v47, %v1760_v17  ;;  %v3640_v46 = vadd.f32 %v1767_v39, %v1766_v27 }
 0x4d1   :  { %v1455_v13 = vmul.f32 %v3068_v48, %v1367_v32  ;;  %v1456_v28 = vmul.f32 %v3069_v7, %v1367_v32  ;;  %v1989_v52 = vrot.slane %v3634_v1, 1  ;;  %v1995_v18 = vrot.slane %v3636_v45, 1 }
 0x4d2   :  { %v1769_v36 = vrot.slane %v1451_v54, 4  ;;  %v1775_v44 = vrot.slane %v1452_v50, 4  ;;  %v3646_v56 = vadd.f32 %v1999_v61, %v1998_v63  ;;  %v3648_v17 = vadd.f32 %v2005_v22, %v2004_v14 }
 0x4d3   :  { %v1781_v27 = vrot.slane %v1453_v0, 4  ;;  %v1787_v43 = vrot.slane %v1454_v26, 4  ;;  %v1793_v62 = vrot.slane %v1455_v13, 4  ;;  %v1799_v58 = vrot.slane %v1456_v28, 4 }
 0x4d4   :  { %v1770_v47 = vadd.f32 %v1769_v36, %v1451_v54  ;;  %v1776_v39 = vadd.f32 %v1775_v44, %v1452_v50  ;;  %v2198_v32 = vsel %vm2197_vm6, %v3535_v29, %v3561_v37  ;;  %v2207_v63 = vsel %vm2197_vm6, %v3537_v41, %v3564_v35 }
 0x4d5   :  { %v1782_v16 = vadd.f32 %v1781_v27, %v1453_v0  ;;  %v1788_v48 = vadd.f32 %v1787_v43, %v1454_v26  ;;  %v1794_v22 = vadd.f32 %v1793_v62, %v1455_v13  ;;  %v1800_v7 = vadd.f32 %v1799_v58, %v1456_v28 }
 0x4d6   :  { %v1771_v61 = vrot.slane %v1770_v47, 2  ;;  %v1777_v14 = vrot.slane %v1776_v39, 2  ;;  %v2200_v54 = vsel %vm2199_vm7, %v1738_v25, %v2198_v32  ;;  %v2208_v50 = vsel %vm2199_vm7, %v1744_v4, %v2207_v63 }
 0x4d7   :  { %v1783_v3 = vrot.slane %v1782_v16, 2  ;;  %v1789_v24 = vrot.slane %v1788_v48, 2  ;;  %v1795_v36 = vrot.slane %v1794_v22, 2  ;;  %v1801_v44 = vrot.slane %v1800_v7, 2 }
 0x4d8   :  { %v1772_v0 = vadd.f32 %v1771_v61, %v1770_v47  ;;  %v1778_v26 = vadd.f32 %v1777_v14, %v1776_v39  ;;  %v2214_v41 = vsel %vm2197_vm6, %v3539_v20, %v3567_v30  ;;  %v2221_v37 = vsel %vm2197_vm6, %v3541_v19, %v3570_v11  ;;  %v1392_v20 = vpop.permute.xlu0 %1391 }
 0x4d9   :  { %v1784_v27 = vadd.f32 %v1783_v3, %v1782_v16  ;;  %v1790_v29 = vadd.f32 %v1789_v24, %v1788_v48  ;;  %v1796_v28 = vadd.f32 %v1795_v36, %v1794_v22  ;;  %v1802_v25 = vadd.f32 %v1801_v44, %v1800_v7  ;;  %v3070_v7 = vld [vmem:[#allocation4 + $0x240] sm:$0xff] }
 0x4da   :  { %v1773_v35 = vrot.slane %v1772_v0, 1  ;;  %v1779_v13 = vrot.slane %v1778_v26, 1  ;;  %v2215_v47 = vsel %vm2199_vm7, %v3628_v15, %v2214_v41  ;;  %v2222_v3 = vsel %vm2199_vm7, %v1756_v38, %v2221_v37  ;;  %v3074_v44 = vld [vmem:[#allocation4 + $0x260] sm:$0xff] }
 0x4db   :  { %v1785_v43 = vrot.slane %v1784_v27, 1  ;;  %v1791_v4 = vrot.slane %v1790_v29, 1  ;;  %v1797_v62 = vrot.slane %v1796_v28, 1  ;;  %v1803_v58 = vrot.slane %v1802_v25, 1 }
 0x4dc   :  { %v1774_v24 = vadd.f32 %v1773_v35, %v1772_v0  ;;  %v1780_v39 = vadd.f32 %v1779_v13, %v1778_v26  ;;  %v2228_v19 = vsel %vm2197_vm6, %v3543_v21, %v3573_v51  ;;  %v2235_v11 = vsel %vm2197_vm6, %v3545_v42, %v3576_v8  ;;  %v1402_v26 = vpop.permute.xlu0 %1401 }
 0x4dd   :  { %v1786_v30 = vadd.f32 %v1785_v43, %v1784_v27  ;;  %v1792_v16 = vadd.f32 %v1791_v4, %v1790_v29  ;;  %v1798_v48 = vadd.f32 %v1797_v62, %v1796_v28  ;;  %v1804_v32 = vadd.f32 %v1803_v58, %v1802_v25  ;;  %v3075_v29 = vld [vmem:[#allocation4 + $0x268] sm:$0xff]  ;;  %v3076_v43 = vld [vmem:[#allocation4 + $0x2a0] sm:$0xff] }
 0x4de   :  { %v2202_v15 = vsel %vm2201_vm8, %v1774_v24, %v2200_v54  ;;  %v2209_v38 = vsel %vm2201_vm8, %v1780_v39, %v2208_v50  ;;  %v2229_v14 = vsel %vm2199_vm7, %v3638_v5, %v2228_v19  ;;  %v2236_v21 = vsel %vm2199_vm7, %v3640_v46, %v2235_v11  ;;  %v3072_v50 = vld [vmem:[#allocation4 + $0x250] sm:$0xff] }
 0x4df   :  { %v2216_v63 = vsel %vm2201_vm8, %v1786_v30, %v2215_v47  ;;  %v2223_v61 = vsel %vm2201_vm8, %v1792_v16, %v2222_v3  ;;  %2331 = vst [vmem:[#allocation9] sm:$0xff] %v2202_v15  ;;  %2332 = vst [vmem:[#allocation9 + $0x8] sm:$0xff] %v2209_v38  ;;  %v3684_v42 = vsel %vm2191_vm3, %v3616_v34, %v3591_v59  ;;  %v2001_v36 = vrot.slane %v3646_v56, 1  ;;  %v3077_v47 = vld [vmem:[#allocation4 + $0x2a8] sm:$0xff] }
 0x4e0   :  { %v3689_v51 = vsel %vm2191_vm3, %v3618_v57, %v3594_v2  ;;  %v2230_v8 = vsel %vm2201_vm8, %v1798_v48, %v2229_v14  ;;  %v2237_v22 = vsel %vm2201_vm8, %v1804_v32, %v2236_v21  ;;  %2333 = vst [vmem:[#allocation9 + $0x10] sm:$0xff] %v2216_v63  ;;  %2334 = vst [vmem:[#allocation9 + $0x18] sm:$0xff] %v2223_v61  ;;  %v3806_v2 = vrot.slane %v3630_v6, 2 }
 0x4e1   :  { %v3696_v5 = vadd.f32 %v1989_v52, %v3634_v1  ;;  %v3701_v59 = vadd.f32 %v1995_v18, %v3636_v45  ;;  %v3807_v57 = vrot.slane %v3632_v60, 2  ;;  %2335 = vst [vmem:[#allocation9 + $0x20] sm:$0xff] %v2230_v8  ;;  %2336 = vst [vmem:[#allocation9 + $0x28] sm:$0xff] %v2237_v22  ;;  %v1481_v1 = vmul.f32 %v3070_v7, %v1392_v20  ;;  %v3071_v52 = vld [vmem:[#allocation4 + $0x248] sm:$0xff]  ;;  %v3073_v45 = vld [vmem:[#allocation4 + $0x258] sm:$0xff] }
 0x4e2   :  { %v3706_v34 = vadd.f32 %v3806_v2, %v3630_v6  ;;  %v1482_v54 = vmul.f32 %v3071_v52, %v1392_v20  ;;  %v1483_v0 = vmul.f32 %v3072_v50, %v1392_v20  ;;  %v1484_v18 = vmul.f32 %v3073_v45, %v1392_v20 }
 0x4e3   :  { %v3711_v46 = vadd.f32 %v3807_v57, %v3632_v60  ;;  %v2007_v6 = vrot.slane %v3648_v17, 1  ;;  %v1485_v27 = vmul.f32 %v3074_v44, %v1392_v20  ;;  %v1486_v60 = vmul.f32 %v3075_v29, %v1392_v20 }
 0x4e4   :  { %v1949_v41 = vrot.slane %v1481_v1, 4  ;;  %v1955_v37 = vrot.slane %v1482_v54, 4  ;;  %v1961_v35 = vrot.slane %v1483_v0, 4  ;;  %v1967_v13 = vrot.slane %v1484_v18, 4 }
 0x4e5   :  { %v1973_v28 = vrot.slane %v1485_v27, 4  ;;  %v1979_v25 = vrot.slane %v1486_v60, 4  ;;  %v1493_v4 = vmul.f32 %v3076_v43, %v1402_v26  ;;  %v1494_v3 = vmul.f32 %v3077_v47, %v1402_v26 }
 0x4e6   :  { %v1950_v24 = vadd.f32 %v1949_v41, %v1481_v1  ;;  %v1956_v39 = vadd.f32 %v1955_v37, %v1482_v54  ;;  %v1962_v62 = vadd.f32 %v1961_v35, %v1483_v0  ;;  %v1968_v58 = vadd.f32 %v1967_v13, %v1484_v18  ;;  %v3078_v0 = vld [vmem:[#allocation4 + $0x2b0] sm:$0xff]  ;;  %v3079_v18 = vld [vmem:[#allocation4 + $0x2b8] sm:$0xff]  ;;  %v3080_v13 = vld [vmem:[#allocation4 + $0x2c0] sm:$0xff] }
 0x4e7   :  { %v2013_v30 = vrot.slane %v3706_v34, 1  ;;  %v2019_v16 = vrot.slane %v3711_v46, 1  ;;  %v1974_v19 = vadd.f32 %v1973_v28, %v1485_v27  ;;  %v1980_v20 = vadd.f32 %v1979_v25, %v1486_v60  ;;  %v3081_v25 = vld [vmem:[#allocation4 + $0x2c8] sm:$0xff] }
 0x4e8   :  { %v1951_v11 = vrot.slane %v1950_v24, 2  ;;  %v1957_v48 = vrot.slane %v1956_v39, 2  ;;  %v1963_v32 = vrot.slane %v1962_v62, 2  ;;  %v1969_v15 = vrot.slane %v1968_v58, 2 }
 0x4e9   :  { %v1975_v38 = vrot.slane %v1974_v19, 2  ;;  %v1981_v63 = vrot.slane %v1980_v20, 2  ;;  %v2021_v61 = vrot.slane %v1493_v4, 4  ;;  %v2027_v14 = vrot.slane %v1494_v3, 4 }
 0x4ea   :  { %v1952_v21 = vadd.f32 %v1951_v11, %v1950_v24  ;;  %v1958_v8 = vadd.f32 %v1957_v48, %v1956_v39  ;;  %v1964_v22 = vadd.f32 %v1963_v32, %v1962_v62  ;;  %v1970_v2 = vadd.f32 %v1969_v15, %v1968_v58 }
 0x4eb   :  { %v1976_v57 = vadd.f32 %v1975_v38, %v1974_v19  ;;  %v1982_v7 = vadd.f32 %v1981_v63, %v1980_v20  ;;  %v2022_v1 = vadd.f32 %v2021_v61, %v1493_v4  ;;  %v2028_v52 = vadd.f32 %v2027_v14, %v1494_v3 }
 0x4ec   :  { %v3718_v54 = vadd.f32 %v2001_v36, %v3646_v56  ;;  %v3721_v50 = vadd.f32 %v2007_v6, %v3648_v17  ;;  %v1495_v45 = vmul.f32 %v3078_v0, %v1402_v26  ;;  %v1496_v44 = vmul.f32 %v3079_v18, %v1402_v26 }
 0x4ed   :  { %v1953_v27 = vrot.slane %v1952_v21, 1  ;;  %v1959_v29 = vrot.slane %v1958_v8, 1  ;;  %v2023_v60 = vrot.slane %v2022_v1, 2  ;;  %v2029_v41 = vrot.slane %v2028_v52, 2 }
 0x4ee   :  { %v1965_v37 = vrot.slane %v1964_v22, 1  ;;  %v1971_v35 = vrot.slane %v1970_v2, 1  ;;  %v1497_v28 = vmul.f32 %v3080_v13, %v1402_v26  ;;  %v1498_v43 = vmul.f32 %v3081_v25, %v1402_v26 }
 0x4ef   :  { %v1977_v4 = vrot.slane %v1976_v57, 1  ;;  %v1983_v56 = vrot.slane %v1982_v7, 1  ;;  %v2024_v36 = vadd.f32 %v2023_v60, %v2022_v1  ;;  %v2030_v47 = vadd.f32 %v2029_v41, %v2028_v52  ;;  %v3083_v52 = vld [vmem:[#allocation4 + $0x2d8] sm:$0xff] }
 0x4f0   :  { %v2240_v17 = vsel %vm2193_vm4, %v3596_v23, %v3610_v40  ;;  %v2247_v6 = vsel %vm2193_vm4, %v3598_v12, %v3614_v10  ;;  %v2254_v3 = vsel %vm2193_vm4, %v3600_v49, %v3622_v33  ;;  %v2261_v26 = vsel %vm2193_vm4, %v3602_v9, %v3626_v55  ;;  %v1407_v33 = vpop.permute.xlu0 %1406 }
 0x4f1   :  { %v1954_v24 = vadd.f32 %v1953_v27, %v1952_v21  ;;  %v1960_v39 = vadd.f32 %v1959_v29, %v1958_v8  ;;  %v2025_v62 = vrot.slane %v2024_v36, 1  ;;  %v2031_v58 = vrot.slane %v2030_v47, 1  ;;  %v3085_v29 = vld [vmem:[#allocation4 + $0x2e8] sm:$0xff] }
 0x4f2   :  { %v2033_v19 = vrot.slane %v1495_v45, 4  ;;  %v2039_v20 = vrot.slane %v1496_v44, 4  ;;  %v2045_v11 = vrot.slane %v1497_v28, 4  ;;  %v2051_v23 = vrot.slane %v1498_v43, 4 }
 0x4f3   :  { %v1966_v40 = vadd.f32 %v1965_v37, %v1964_v22  ;;  %v1972_v48 = vadd.f32 %v1971_v35, %v1970_v2  ;;  %v1978_v32 = vadd.f32 %v1977_v4, %v1976_v57  ;;  %v1984_v12 = vadd.f32 %v1983_v56, %v1982_v7  ;;  %v3082_v7 = vld [vmem:[#allocation4 + $0x2d0] sm:$0xff] }
 0x4f4   :  { %v2034_v10 = vadd.f32 %v2033_v19, %v1495_v45  ;;  %v2040_v15 = vadd.f32 %v2039_v20, %v1496_v44  ;;  %v2046_v38 = vadd.f32 %v2045_v11, %v1497_v28  ;;  %v2052_v49 = vadd.f32 %v2051_v23, %v1498_v43  ;;  %v3084_v44 = vld [vmem:[#allocation4 + $0x2e0] sm:$0xff] }
 0x4f5   :  { %v2268_v9 = vsel %vm2193_vm4, %v3604_v31, %v3684_v42  ;;  %v2275_v55 = vsel %vm2193_vm4, %v3606_v53, %v3689_v51  ;;  %v2241_v63 = vsel %vm2195_vm5, %v1954_v24, %v2240_v17  ;;  %v2248_v61 = vsel %vm2195_vm5, %v1960_v39, %v2247_v6  ;;  %v3087_v17 = vld [vmem:[#allocation4 + $0x2f8] sm:$0xff] }
 0x4f6   :  { %v2026_v14 = vadd.f32 %v2025_v62, %v2024_v36  ;;  %v2032_v21 = vadd.f32 %v2031_v58, %v2030_v47  ;;  %v2035_v8 = vrot.slane %v2034_v10, 2  ;;  %v2041_v22 = vrot.slane %v2040_v15, 2 }
 0x4f7   :  { %v2255_v2 = vsel %vm2195_vm5, %v1966_v40, %v2254_v3  ;;  %v2262_v57 = vsel %vm2195_vm5, %v1972_v48, %v2261_v26  ;;  %v1499_v1 = vmul.f32 %v3082_v7, %v1407_v33  ;;  %v1500_v31 = vmul.f32 %v3083_v52, %v1407_v33 }
 0x4f8   :  { %v3746_v42 = vsel %vm2195_vm5, %v1978_v32, %v2268_v9  ;;  %v3749_v53 = vsel %vm2195_vm5, %v1984_v12, %v2275_v55  ;;  %v2047_v51 = vrot.slane %v2046_v38, 2  ;;  %v2053_v0 = vrot.slane %v2052_v49, 2 }
 0x4f9   :  { %v2242_v45 = vsel %vm2197_vm6, %v3696_v5, %v2241_v63  ;;  %v2249_v18 = vsel %vm2197_vm6, %v3701_v59, %v2248_v61  ;;  %v1501_v27 = vmul.f32 %v3084_v44, %v1407_v33  ;;  %v1502_v60 = vmul.f32 %v3085_v29, %v1407_v33  ;;  %v3086_v5 = vld [vmem:[#allocation4 + $0x2f0] sm:$0xff] }
 0x4fa   :  { %v2036_v41 = vadd.f32 %v2035_v8, %v2034_v10  ;;  %v2042_v37 = vadd.f32 %v2041_v22, %v2040_v15  ;;  %v2243_v35 = vsel %vm2199_vm7, %v2026_v14, %v2242_v45  ;;  %v2250_v13 = vsel %vm2199_vm7, %v2032_v21, %v2249_v18 }
 0x4fb   :  { %v2057_v28 = vrot.slane %v1499_v1, 4  ;;  %v2063_v25 = vrot.slane %v1500_v31, 4  ;;  %v2069_v43 = vrot.slane %v1501_v27, 4  ;;  %v2075_v4 = vrot.slane %v1502_v60, 4 }
 0x4fc   :  { %v2048_v56 = vadd.f32 %v2047_v51, %v2046_v38  ;;  %v2054_v36 = vadd.f32 %v2053_v0, %v2052_v49  ;;  %v1503_v47 = vmul.f32 %v3086_v5, %v1407_v33  ;;  %v1504_v59 = vmul.f32 %v3087_v17, %v1407_v33 }
 0x4fd   :  { %v2058_v6 = vadd.f32 %v2057_v28, %v1499_v1  ;;  %v2064_v3 = vadd.f32 %v2063_v25, %v1500_v31  ;;  %v2070_v26 = vadd.f32 %v2069_v43, %v1501_v27  ;;  %v2076_v24 = vadd.f32 %v2075_v4, %v1502_v60 }
 0x4fe   :  { %v2037_v39 = vrot.slane %v2036_v41, 1  ;;  %v2043_v62 = vrot.slane %v2042_v37, 1  ;;  %v2256_v58 = vsel %vm2197_vm6, %v3718_v54, %v2255_v2  ;;  %v2263_v19 = vsel %vm2197_vm6, %v3721_v50, %v2262_v57 }
 0x4ff   :  { %v2059_v20 = vrot.slane %v2058_v6, 2  ;;  %v2065_v11 = vrot.slane %v2064_v3, 2  ;;  %v2071_v23 = vrot.slane %v2070_v26, 2  ;;  %v2077_v40 = vrot.slane %v2076_v24, 2 }
 0x500   :  { %v2049_v48 = vrot.slane %v2048_v56, 1  ;;  %v2055_v32 = vrot.slane %v2054_v36, 1  ;;  %v2081_v12 = vrot.slane %v1503_v47, 4  ;;  %v2087_v10 = vrot.slane %v1504_v59, 4 }
 0x501   :  { %v2060_v15 = vadd.f32 %v2059_v20, %v2058_v6  ;;  %v2066_v38 = vadd.f32 %v2065_v11, %v2064_v3  ;;  %v2072_v49 = vadd.f32 %v2071_v23, %v2070_v26  ;;  %v2078_v33 = vadd.f32 %v2077_v40, %v2076_v24 }
 0x502   :  { %v2038_v9 = vadd.f32 %v2037_v39, %v2036_v41  ;;  %v2044_v55 = vadd.f32 %v2043_v62, %v2042_v37  ;;  %v2082_v63 = vadd.f32 %v2081_v12, %v1503_v47  ;;  %v2088_v61 = vadd.f32 %v2087_v10, %v1504_v59 }
 0x503   :  { %v2061_v54 = vrot.slane %v2060_v15, 1  ;;  %v2067_v14 = vrot.slane %v2066_v38, 1  ;;  %v2073_v21 = vrot.slane %v2072_v49, 1  ;;  %v2079_v50 = vrot.slane %v2078_v33, 1 }
 0x504   :  { %v2050_v8 = vadd.f32 %v2049_v48, %v2048_v56  ;;  %v2056_v22 = vadd.f32 %v2055_v32, %v2054_v36  ;;  %v2083_v2 = vrot.slane %v2082_v63, 2  ;;  %v2089_v57 = vrot.slane %v2088_v61, 2 }
 0x505   :  { %v2062_v7 = vadd.f32 %v2061_v54, %v2060_v15  ;;  %v2068_v1 = vadd.f32 %v2067_v14, %v2066_v38  ;;  %v2074_v52 = vadd.f32 %v2073_v21, %v2072_v49  ;;  %v2080_v31 = vadd.f32 %v2079_v50, %v2078_v33 }
 0x506   :  { %v2257_v51 = vsel %vm2199_vm7, %v2038_v9, %v2256_v58  ;;  %v2264_v0 = vsel %vm2199_vm7, %v2044_v55, %v2263_v19  ;;  %v2084_v45 = vadd.f32 %v2083_v2, %v2082_v63  ;;  %v2090_v18 = vadd.f32 %v2089_v57, %v2088_v61 }
 0x507   :  { %v2244_v44 = vsel %vm2201_vm8, %v2062_v7, %v2243_v35  ;;  %v2251_v27 = vsel %vm2201_vm8, %v2068_v1, %v2250_v13  ;;  %v2258_v29 = vsel %vm2201_vm8, %v2074_v52, %v2257_v51  ;;  %v2265_v60 = vsel %vm2201_vm8, %v2080_v31, %v2264_v0 }
 0x508   :  { %v2014_v41 = vadd.f32 %v2013_v30, %v3706_v34  ;;  %v2020_v37 = vadd.f32 %v2019_v16, %v3711_v46  ;;  %v2085_v28 = vrot.slane %v2084_v45, 1  ;;  %v2091_v25 = vrot.slane %v2090_v18, 1  ;;  %2337 = vst [vmem:[#allocation9 + $0x30] sm:$0xff] %v2244_v44  ;;  %2338 = vst [vmem:[#allocation9 + $0x38] sm:$0xff] %v2251_v27 }
 0x509   :  { %2339 = vst [vmem:[#allocation9 + $0x40] sm:$0xff] %v2258_v29  ;;  %2340 = vst [vmem:[#allocation9 + $0x48] sm:$0xff] %v2265_v60 }
 0x50a   :  { %v2270_v35 = vsel %vm2197_vm6, %v2014_v41, %v3746_v42  ;;  %v2277_v13 = vsel %vm2197_vm6, %v2020_v37, %v3749_v53  ;;  %v2086_v43 = vadd.f32 %v2085_v28, %v2084_v45  ;;  %v2092_v34 = vadd.f32 %v2091_v25, %v2090_v18 }
 0x50b   :  { %v2271_v30 = vsel %vm2199_vm7, %v2050_v8, %v2270_v35  ;;  %v2278_v46 = vsel %vm2199_vm7, %v2056_v22, %v2277_v13 }
 0x50c   :  { %v2272_v16 = vsel %vm2201_vm8, %v2086_v43, %v2271_v30  ;;  %v2279_v4 = vsel %vm2201_vm8, %v2092_v34, %v2278_v46 }
 0x50d   :  { %2341 = vst [vmem:[#allocation9 + $0x50] sm:$0xff] %v2272_v16  ;;  %2342 = vst [vmem:[#allocation9 + $0x58] sm:$0xff] %v2279_v4 }
 0x50e   :  { %3143 = shalt.err (!%p3140_p6)
}
 0x50f   :  { %s3144_s27 = scalar_lea.hbm %s3805_s9, 1536 }
 0x510   :  { %p3145_p7 = scmp.ne.s32.totalorder %s3805_s9, %s3144_s27  ;;  %p3148_p8 = scmp.lt.u32.totalorder %s3144_s27, %s3805_s9 }
 0x512   :  { %p3150_p9 = pnand %p3148_p8, %p3145_p7 }
 0x514   :  { %3153 = shalt.err (!%p3150_p9)
}
 0x515   :  { %2354 = dma.vmem_to_hbm [thread:$0]  %s2349_s7, 1536, %s3805_s9, [#allocation6], %s3161_s20, %s3161_s20, %s3162_s21  }
 0x516   :  { %3158 = dma.done.wait [#allocation6], 1536  }
 0x517   :  { %3159 = vsyncadd [#allocation6], 4294965760 }
 0x518   :  { %2358 = vsyncpa [#allocation5], 1 }
 0x519   :  { %2359 = vsyncpa [#allocation8], 1 }
 0x51a   :  { %2360 = vsyncpa [#allocation6], 1 }

</bundles_post_ra>
